<compile_context>
chip_gen: v7x
topology: tpu7x:2x2x1
jax: 0.10.0
libtpu: 0.0.40
codegen_flags: <defaults>
</compile_context>

<pallas_src>
import jax
import jax.numpy as jnp
from jax.experimental import pallas as pl
from jax.experimental.pallas import tpu as pltpu


# ----------------------------------------------------------------------------
# Kernel: identity copy of one (tr, C) slab
# ----------------------------------------------------------------------------
def _identity_kernel(x_ref, o_ref):
    o_ref[...] = x_ref[...]


def _sublane_multiple(dtype) -> int:
    """Rows per packed vreg sublane group for this dtype."""
    itemsize = jnp.dtype(dtype).itemsize
    return {4: 8, 2: 16, 1: 32}.get(itemsize, 8)


def _pick_lane_width(total: int, cap: int = 2048) -> int:
    """Largest multiple of 128 (<= cap) dividing `total`, or 0 if none."""
    best = 0
    c = 128
    while c <= min(total, cap):
        if total % c == 0:
            best = c
        c += 128
    return best


# ----------------------------------------------------------------------------
# Wrapper: lane-dense flatten + ragged row tiling + pipelined pallas_call
# ----------------------------------------------------------------------------
def decoder_forward(x, *, target_tile_bytes: int = 4 << 20,
                    min_bytes_for_kernel: int = 4 << 20):
    """Identity forward of Decoder, x: (batch_size, seq_len, num_in_dim)."""
    orig_shape = x.shape
    total = x.size
    itemsize = jnp.dtype(x.dtype).itemsize

    # --- Small-input bypass: a single-tile grid gives zero pipelining and
    # only pays launch + step overhead; the identity is free without a kernel.
    if total == 0 or total * itemsize <= min_bytes_for_kernel:
        return x

    # --- 1) Lane-dense 2-D view. Prefer a last dim that is a multiple of 128
    # and divides the flat size exactly; otherwise pad the flat array up to a
    # multiple of 128 so every store is a full-width, unmasked vst.
    C = _pick_lane_width(total)
    pad = 0
    if C == 0:
        C = 128
        pad = (-total) % C
    flat = x.reshape(total)
    if pad:
        flat = jnp.pad(flat, (0, pad))
    padded_total = total + pad
    R = padded_total // C
    x2 = flat.reshape(R, C)

    # --- 2) Row tile: ~target_tile_bytes per slab, rounded to the dtype-aware
    # sublane multiple; ragged grid handles a non-dividing last block.
    sub = _sublane_multiple(x.dtype)
    rows_per_tile = max(1, target_tile_bytes // max(C * itemsize, 1))
    rows_per_tile = min(rows_per_tile, R)
    tr = (rows_per_tile // sub) * sub
    if tr == 0:
        tr = min(sub, R) if R % sub == 0 else R  # tiny R: full-extent block is legal
    grid_n = pl.cdiv(R, tr)

    # --- v7x tweak: prefer an even grid count >= 2 so the two TensorCores
    # split the "parallel" axis evenly (neutral on single-TC v5e/v6e).
    if grid_n > 1 and grid_n % 2 == 1:
        cand = ((pl.cdiv(R, grid_n + 1) + sub - 1) // sub) * sub
        if cand >= sub:
            tr = cand
            grid_n = pl.cdiv(R, tr)

    tile_bytes = tr * C * itemsize
    # Live set: 2 buffered input blocks + 2 buffered output blocks + headroom.
    vmem_limit = min(4 * tile_bytes + (8 << 20), 48 << 20)

    out2 = pl.pallas_call(
        _identity_kernel,
        out_shape=jax.ShapeDtypeStruct((R, C), x.dtype),
        grid=(grid_n,),
        in_specs=[pl.BlockSpec((tr, C), lambda i: (i, 0))],
        out_specs=pl.BlockSpec((tr, C), lambda i: (i, 0)),
        compiler_params=pltpu.CompilerParams(
            dimension_semantics=("parallel",),
            vmem_limit_bytes=vmem_limit,
        ),
        cost_estimate=pl.CostEstimate(
            flops=0, transcendentals=0,
            bytes_accessed=2 * total * itemsize,
        ),
    )(x2)

    out_flat = out2.reshape(padded_total)
    if pad:
        out_flat = out_flat[:total]
    return out_flat.reshape(orig_shape)


# ----------------------------------------------------------------------------
# Demo / self-check
# ----------------------------------------------------------------------------
if __name__ == "__main__":
    key = jax.random.PRNGKey(0)

    # (batch_size, seq_len, num_in_dim) as implied by Decoder.forward.
    B, S, D = 2, 8, 32
    x = jax.random.normal(key, (B, S, D), dtype=jnp.float32)
    y = jax.block_until_ready(decoder_forward(x))
    assert y.shape == x.shape and y.dtype == x.dtype
    assert bool(jnp.all(y == x)), "identity mismatch (small / bypass path)"

    # Larger shape -> exercises the tiled, ragged, even-grid kernel path.
    x_big = jax.random.normal(jax.random.PRNGKey(1), (8, 1000, 512),
                              dtype=jnp.float32)
    y_big = jax.block_until_ready(decoder_forward(x_big))
    assert bool(jnp.all(y_big == x_big)), "identity mismatch (large kernel path)"

    # Odd total (not a multiple of 128) -> exercises the lane-pad path;
    # force the kernel path by disabling the small-input bypass.
    x_odd = jax.random.normal(jax.random.PRNGKey(2), (3, 127, 129),
                              dtype=jnp.bfloat16)
    y_odd = jax.block_until_ready(
        decoder_forward(x_odd, min_bytes_for_kernel=0))
    assert bool(jnp.all(y_odd == x_odd)), "identity mismatch (padded path)"

    print("KERNEL_OK")
</pallas_src>

<mosaic_0001>
module attributes {stable_mosaic.version = 11 : i64} {
  func.func @_identity_kernel(%arg0: i32, %arg1: memref<512x2048xf32, #tpu.memory_space<vmem>>, %arg2: memref<512x2048xf32, #tpu.memory_space<vmem>>) attributes {dimension_semantics = [#tpu.dimension_semantics<parallel>], iteration_bounds = array<i64: 4>, scalar_prefetch = 0 : i64, scratch_operands = 0 : i64, tpu.core_type = #tpu.core_type<tc>, window_params = [{transform_indices = @transform_0, window_bounds = array<i64: 512, 2048>}, {transform_indices = @transform_1, window_bounds = array<i64: 512, 2048>}]} {
    %c0 = arith.constant 0 : index
    %c0_0 = arith.constant 0 : index
    %0 = vector.load %arg1[%c0, %c0_0] : memref<512x2048xf32, #tpu.memory_space<vmem>>, vector<512x2048xf32>
    %c0_1 = arith.constant 0 : index
    %c0_2 = arith.constant 0 : index
    %1 = vector.load %arg2[%c0_1, %c0_2] : memref<512x2048xf32, #tpu.memory_space<vmem>>, vector<512x2048xf32>
    tpu.vector_store %arg2[%c0_1, %c0_2], %0 {strides = array<i32>} : memref<512x2048xf32, #tpu.memory_space<vmem>>, vector<512x2048xf32>,
    return
  }
  func.func @transform_0(%arg0: i32) -> (i32, i32) {
    %c0_i32 = arith.constant 0 : i32
    %c0_i32_0 = arith.constant 0 : i32
    return %arg0, %c0_i32 : i32, i32
  }
  func.func @transform_1(%arg0: i32) -> (i32, i32) {
    %c0_i32 = arith.constant 0 : i32
    %c0_i32_0 = arith.constant 0 : i32
    return %arg0, %c0_i32 : i32, i32
  }
}

</mosaic_0001>

<bundles_post_ra>
// kernel: tpu_custom_call.1
= control target key start
LH: loop header
LB: loop body
LE: loop exit
PB: predicated region body
PF: predicated region fallthrough
CT: control target
= control target key end

     0   :  { %6 = vsyncpa [#allocation3], 0  ;;  %s4705_s0 = inlined_call_operand.hbm [shape: f32[2000,2048], index: 0, kind: input, shape index: {}]   ;;  %s4706_s1 = inlined_call_operand.hbm [shape: f32[2000,2048], index: 1, kind: output, shape index: {}]  }
   0x1   :  { %8 = vsyncpa [#allocation3 + $0x1], 0 }
   0x2   :  { %9 = vsyncpa [#allocation4], 0 }
   0x3   :  { %11 = vsyncpa [#allocation4 + $0x1], 0  ;;  %s2485_s6 = smov 0   ;;  %s2487_s7 = smov 0  }
   0x4   :  { %s2489_s8 = smov 0   ;;  %s2491_s9 = smov 0  }
   0x5 LB: > { %s2506_s10 = sadd.s32 4294967295, %s2467_s9   ;;  %s2298_s11 = sadd.s32 4294967294, %s2467_s9   ;;  %s2467_s9 = sphi %s2491_s9, %s4714_s9   ;;  %s2463_s8 = sphi %s2489_s8, %s4713_s8   ;;  %s2459_s7 = sphi %s2487_s7, %s4712_s7   ;;  %s2455_s6 = sphi %s2485_s6, %s4711_s6  }
   0x6   : > { %s2510_s12 = sadd.s32 1, %s2467_s9   ;;  %s24_s13 = sadd.s32 1, %s2463_s8 }
   0x7   : > { %s21_s14 = ssub.s32 %s2467_s9, %s2510_s12  ;;  %p31_p0 = scmp.ne.s32.totalorder %s2463_s8, %s2459_s7 }
   0x8   : > { %p22_p1 = scmp.eq.s32.totalorder %s21_s14, 0  ;;  %p32_p2 = scmp.eq.s32.totalorder %s2467_s9, 0 }
   0x9   : > { %p37_p3 = scmp.ne.s32.totalorder %s2459_s7, %s2455_s6  ;;  %p38_p4 = scmp.eq.s32.totalorder %s2506_s10, 0 }
   0xa   : > { %s2522_s15 = scalar_select %p22_p1, %s2463_s8, %s24_s13  }
   0xb   : > { %p33_p5 = por %p32_p2, %p31_p0  ;;  %p2524_p6 = por %p38_p4, %p37_p3 }
   0xc   : > { %p61_p7 = scmp.eq.s32.totalorder %s2506_s10, 3  ;;  %p67_p8 = scmp.eq.s32.totalorder %s2298_s11, 3 }
   0xd   : > { %p2300_p11 = scmp.ge.s32.totalorder %s2467_s9, 4 }
   0xe   : > { %p2529_p9 = por %p61_p7, %p31_p0  ;;  %p2533_p10 = por %p67_p8, %p37_p3 }
   0xf   : > { %83 = sbr.rel (%p2300_p11) target bundleno = 57 (0x39), region = 16 }
  0x10   : > { %s4709_s18 = scalar_select %p2533_p10, 1, 0 }
  0x16   : > { %86 = sbr.rel (!%p33_p5) target bundleno = 57 (0x39), region = 20  ;;  %s87_s19 = sand.u32 (%p33_p5), 1, %s2463_s8  }
  0x17   : > { %s2302_s20 = sshll.u32 (%p33_p5), %s2467_s9, 6  ;;  %s2301_s21 = sshll.u32 (%p33_p5), %s87_s19, 13 }
  0x18   : > { %s93_s22 = ssub.s32 (%p33_p5), 250, %s2302_s20  ;;  %s2543_s25 = scalar_lea.sflag (%p33_p5), [#allocation3], %s87_s19 }
  0x19   : > { %p94_p12 = scmp.lt.s32.totalorder (%p33_p5), %s93_s22, 64  ;;  %s91_s26 = scalar_lea.vmem (%p33_p5), [#allocation2], %s2301_s21 }
  0x1d   : > { %s4716_s22 = smov (!%p94_p12, %s93_s22), 64 }
  0x1e   : > { %s2540_s23 = sshll.u32 %s4716_s22, 11 }
  0x1f   : > { %s99_s24 = ssub.s32 131072, %s2540_s23 }
  0x20   : > { %100 = vsyncadd %s2543_s25, %s99_s24  ;;  %p2305_p13 = scmp.ne.s32.totalorder %s2540_s23, 0  ;;  %s2326_s27 = sshll.u32 %s2467_s9, 17 }
  0x21   : > { %s2551_s30 = scalar_lea.hbm %s4705_s0, %s2326_s27  ;;  %s106_s2 = sshll.u32 %s91_s26, 4  ;;  %s2553_s2 = int_to_ptr.vmem [resolvable:$true] %s106_s2 }
  0x22   : > { %s2373_s3 = scalar_lea.hbm %s2551_s30, %s2540_s23  ;;  %s2377_s11 = scalar_lea.hbm %s4705_s0, 512000 }
  0x23   : > { %p2374_p0 = scmp.ne.s32.totalorder %s2551_s30, %s2373_s3  ;;  %p2378_p3 = scmp.lt.u32.totalorder %s2551_s30, %s4705_s0 }
  0x24   : > { %p2379_p4 = scmp.lt.u32.totalorder %s2377_s11, %s2373_s3  ;;  %p2381_p7 = scmp.lt.u32.totalorder %s2373_s3, %s2551_s30 }
  0x25   : > { %p2375_p1 = pnand %p2374_p0, %p2305_p13 }
  0x26   : > { %p2380_p5 = por %p2379_p4, %p2378_p3 }
  0x27   : > { %p2376_p2 = pneg %p2375_p1 }
  0x28   : > { %p2382_p8 = por %p2381_p7, %p2380_p5 }
  0x2a   : > { %p2383_p11 = pnand %p2382_p8, %p2376_p2 }
  0x2c   : > { %2386 = shalt.err (!%p2383_p11)
}
  0x2d   : > { %s2387_s19 = scalar_lea.vmem %s2553_s2, %s2540_s23  ;;  %s2469_s20 = smov [#allocation2]  }
  0x2e   : > { %p2388_p12 = scmp.ne.s32.totalorder %s2553_s2, %s2387_s19  ;;  %s2391_s21 = sshll.u32 %s2469_s20, 4  ;;  %s2392_s21 = int_to_ptr.vmem [resolvable:$false] %s2391_s21 }
  0x2f   : > { %s2393_s22 = scalar_lea.vmem %s2392_s21, 262144  ;;  %p2394_p10 = scmp.lt.s32.totalorder %s2553_s2, %s2392_s21 }
  0x30   : > { %p2389_p0 = pnand %p2388_p12, %p2305_p13  ;;  %p2395_p3 = scmp.lt.s32.totalorder %s2393_s22, %s2387_s19 }
  0x32   : > { %p2390_p1 = pneg %p2389_p0  ;;  %p2396_p4 = por %p2395_p3, %p2394_p10 }
  0x34   : > { %p2397_p5 = pnand %p2396_p4, %p2390_p1 }
  0x36   : > { %2400 = shalt.err (!%p2397_p5)
}
  0x37   : > { %s2470_s24 = smov 2048   ;;  %s2471_s26 = smov 128  }
  0x38   : > { %112 = dma.hbm_to_vmem [thread:$0]  (%p2305_p13), %s2551_s30, %s2540_s23, %s2553_s2, %s2543_s25, %s2470_s24, %s2470_s24, %s2471_s26  }
  0x39 PF: > { %p2310_p2 = scmp.ge.s32.totalorder %s2467_s9, 1  ;;  %p114_p7 = scmp.lt.s32.totalorder %s2467_s9, 5 }
  0x3b   : > { %p115_p8 = pnand %p2310_p2, %p114_p7 }
  0x3c   : > { %s2583_s27 = sand.u32 (!%p115_p8), 1, %s2459_s7  }
  0x3d   : > { %118 = sbr.rel (%p115_p8) target bundleno = 610 (0x262), region = 24  ;;  %s2311_s28 = sshll.u32 (!%p115_p8), %s2583_s27, 13 }
  0x3e   : > { %s121_s29 = scalar_lea.sflag (!%p115_p8), [#allocation3], %s2583_s27  ;;  %s2587_s3 = scalar_lea.vmem (!%p115_p8), [#allocation2], %s2311_s28 }
  0x44   : > { %2446 = dma.done.wait (%p2524_p6), %s121_s29, 131072  }
  0x45   : > { %2448 = vsyncadd (%p2524_p6), %s121_s29, 4294836224  ;;  %v155_v0 = vld [vmem:[%s2587_s3] sm:$0xff]  ;;  %v156_v1 = vld [vmem:[%s2587_s3 + $0x8] sm:$0xff]  ;;  %s2596_s23 = scalar_lea.vmem [#allocation5], %s2311_s28  ;;  %s2204_s16 = scalar_lea.sflag [#allocation4], %s2583_s27 }
  0x46   : > { %v157_v2 = vld [vmem:[%s2587_s3 + $0x10] sm:$0xff]  ;;  %1179 = vst [vmem:[%s2596_s23] sm:$0xff] %v155_v0  ;;  %1180 = vst [vmem:[%s2596_s23 + $0x8] sm:$0xff] %v156_v1  ;;  %v158_v3 = vld [vmem:[%s2587_s3 + $0x18] sm:$0xff]  ;;  %s2314_s25 = sshll.u32 (%p2529_p9), %s2506_s10, 6 }
  0x47   : > { %1181 = vst [vmem:[%s2596_s23 + $0x10] sm:$0xff] %v157_v2  ;;  %v159_v4 = vld [vmem:[%s2587_s3 + $0x20] sm:$0xff]  ;;  %v160_v5 = vld [vmem:[%s2587_s3 + $0x28] sm:$0xff]  ;;  %1182 = vst [vmem:[%s2596_s23 + $0x18] sm:$0xff] %v158_v3  ;;  %s2212_s30 = ssub.s32 (%p2529_p9), 250, %s2314_s25 }
  0x48   : > { %1183 = vst [vmem:[%s2596_s23 + $0x20] sm:$0xff] %v159_v4  ;;  %1184 = vst [vmem:[%s2596_s23 + $0x28] sm:$0xff] %v160_v5  ;;  %v161_v6 = vld [vmem:[%s2587_s3 + $0x30] sm:$0xff]  ;;  %v162_v7 = vld [vmem:[%s2587_s3 + $0x38] sm:$0xff]  ;;  %p2213_p6 = scmp.lt.s32.totalorder (%p2529_p9), %s2212_s30, 64 }
  0x49   : > { %v163_v8 = vld [vmem:[%s2587_s3 + $0x40] sm:$0xff]  ;;  %1185 = vst [vmem:[%s2596_s23 + $0x30] sm:$0xff] %v161_v6  ;;  %1186 = vst [vmem:[%s2596_s23 + $0x38] sm:$0xff] %v162_v7  ;;  %v164_v9 = vld [vmem:[%s2587_s3 + $0x48] sm:$0xff] }
  0x4a   : > { %1187 = vst [vmem:[%s2596_s23 + $0x40] sm:$0xff] %v163_v8  ;;  %v165_v10 = vld [vmem:[%s2587_s3 + $0x50] sm:$0xff]  ;;  %v166_v11 = vld [vmem:[%s2587_s3 + $0x58] sm:$0xff]  ;;  %1188 = vst [vmem:[%s2596_s23 + $0x48] sm:$0xff] %v164_v9 }
  0x4b   : > { %1189 = vst [vmem:[%s2596_s23 + $0x50] sm:$0xff] %v165_v10  ;;  %1190 = vst [vmem:[%s2596_s23 + $0x58] sm:$0xff] %v166_v11  ;;  %v167_v12 = vld [vmem:[%s2587_s3 + $0x60] sm:$0xff]  ;;  %v168_v13 = vld [vmem:[%s2587_s3 + $0x68] sm:$0xff] }
  0x4c   : > { %v169_v14 = vld [vmem:[%s2587_s3 + $0x70] sm:$0xff]  ;;  %1191 = vst [vmem:[%s2596_s23 + $0x60] sm:$0xff] %v167_v12  ;;  %1192 = vst [vmem:[%s2596_s23 + $0x68] sm:$0xff] %v168_v13  ;;  %v170_v15 = vld [vmem:[%s2587_s3 + $0x78] sm:$0xff] }
  0x4d   : > { %1193 = vst [vmem:[%s2596_s23 + $0x70] sm:$0xff] %v169_v14  ;;  %v171_v16 = vld [vmem:[%s2587_s3 + $0x80] sm:$0xff]  ;;  %v172_v17 = vld [vmem:[%s2587_s3 + $0x88] sm:$0xff]  ;;  %1194 = vst [vmem:[%s2596_s23 + $0x78] sm:$0xff] %v170_v15 }
  0x4e   : > { %1195 = vst [vmem:[%s2596_s23 + $0x80] sm:$0xff] %v171_v16  ;;  %1196 = vst [vmem:[%s2596_s23 + $0x88] sm:$0xff] %v172_v17  ;;  %v173_v18 = vld [vmem:[%s2587_s3 + $0x90] sm:$0xff]  ;;  %v174_v19 = vld [vmem:[%s2587_s3 + $0x98] sm:$0xff] }
  0x4f   : > { %v175_v20 = vld [vmem:[%s2587_s3 + $0xa0] sm:$0xff]  ;;  %1197 = vst [vmem:[%s2596_s23 + $0x90] sm:$0xff] %v173_v18  ;;  %1198 = vst [vmem:[%s2596_s23 + $0x98] sm:$0xff] %v174_v19  ;;  %v176_v21 = vld [vmem:[%s2587_s3 + $0xa8] sm:$0xff] }
  0x50   : > { %1199 = vst [vmem:[%s2596_s23 + $0xa0] sm:$0xff] %v175_v20  ;;  %v177_v22 = vld [vmem:[%s2587_s3 + $0xb0] sm:$0xff]  ;;  %v178_v23 = vld [vmem:[%s2587_s3 + $0xb8] sm:$0xff]  ;;  %1200 = vst [vmem:[%s2596_s23 + $0xa8] sm:$0xff] %v176_v21 }
  0x51   : > { %1201 = vst [vmem:[%s2596_s23 + $0xb0] sm:$0xff] %v177_v22  ;;  %1202 = vst [vmem:[%s2596_s23 + $0xb8] sm:$0xff] %v178_v23  ;;  %v179_v24 = vld [vmem:[%s2587_s3 + $0xc0] sm:$0xff]  ;;  %v180_v25 = vld [vmem:[%s2587_s3 + $0xc8] sm:$0xff] }
  0x52   : > { %v181_v26 = vld [vmem:[%s2587_s3 + $0xd0] sm:$0xff]  ;;  %1203 = vst [vmem:[%s2596_s23 + $0xc0] sm:$0xff] %v179_v24  ;;  %1204 = vst [vmem:[%s2596_s23 + $0xc8] sm:$0xff] %v180_v25  ;;  %v182_v27 = vld [vmem:[%s2587_s3 + $0xd8] sm:$0xff] }
  0x53   : > { %1205 = vst [vmem:[%s2596_s23 + $0xd0] sm:$0xff] %v181_v26  ;;  %v183_v28 = vld [vmem:[%s2587_s3 + $0xe0] sm:$0xff]  ;;  %v184_v29 = vld [vmem:[%s2587_s3 + $0xe8] sm:$0xff]  ;;  %1206 = vst [vmem:[%s2596_s23 + $0xd8] sm:$0xff] %v182_v27 }
  0x54   : > { %1207 = vst [vmem:[%s2596_s23 + $0xe0] sm:$0xff] %v183_v28  ;;  %1208 = vst [vmem:[%s2596_s23 + $0xe8] sm:$0xff] %v184_v29  ;;  %v185_v30 = vld [vmem:[%s2587_s3 + $0xf0] sm:$0xff]  ;;  %v186_v31 = vld [vmem:[%s2587_s3 + $0xf8] sm:$0xff] }
  0x55   : > { %v187_v32 = vld [vmem:[%s2587_s3 + $0x100] sm:$0xff]  ;;  %1209 = vst [vmem:[%s2596_s23 + $0xf0] sm:$0xff] %v185_v30  ;;  %1210 = vst [vmem:[%s2596_s23 + $0xf8] sm:$0xff] %v186_v31  ;;  %v188_v33 = vld [vmem:[%s2587_s3 + $0x108] sm:$0xff] }
  0x56   : > { %1211 = vst [vmem:[%s2596_s23 + $0x100] sm:$0xff] %v187_v32  ;;  %v189_v34 = vld [vmem:[%s2587_s3 + $0x110] sm:$0xff]  ;;  %v190_v35 = vld [vmem:[%s2587_s3 + $0x118] sm:$0xff]  ;;  %1212 = vst [vmem:[%s2596_s23 + $0x108] sm:$0xff] %v188_v33 }
  0x57   : > { %1213 = vst [vmem:[%s2596_s23 + $0x110] sm:$0xff] %v189_v34  ;;  %1214 = vst [vmem:[%s2596_s23 + $0x118] sm:$0xff] %v190_v35  ;;  %v191_v36 = vld [vmem:[%s2587_s3 + $0x120] sm:$0xff]  ;;  %v192_v37 = vld [vmem:[%s2587_s3 + $0x128] sm:$0xff] }
  0x58   : > { %v193_v38 = vld [vmem:[%s2587_s3 + $0x130] sm:$0xff]  ;;  %1215 = vst [vmem:[%s2596_s23 + $0x120] sm:$0xff] %v191_v36  ;;  %1216 = vst [vmem:[%s2596_s23 + $0x128] sm:$0xff] %v192_v37  ;;  %v194_v39 = vld [vmem:[%s2587_s3 + $0x138] sm:$0xff] }
  0x59   : > { %1217 = vst [vmem:[%s2596_s23 + $0x130] sm:$0xff] %v193_v38  ;;  %v195_v40 = vld [vmem:[%s2587_s3 + $0x140] sm:$0xff]  ;;  %v196_v41 = vld [vmem:[%s2587_s3 + $0x148] sm:$0xff]  ;;  %1218 = vst [vmem:[%s2596_s23 + $0x138] sm:$0xff] %v194_v39 }
  0x5a   : > { %1219 = vst [vmem:[%s2596_s23 + $0x140] sm:$0xff] %v195_v40  ;;  %1220 = vst [vmem:[%s2596_s23 + $0x148] sm:$0xff] %v196_v41  ;;  %v197_v42 = vld [vmem:[%s2587_s3 + $0x150] sm:$0xff]  ;;  %v198_v43 = vld [vmem:[%s2587_s3 + $0x158] sm:$0xff] }
  0x5b   : > { %v199_v44 = vld [vmem:[%s2587_s3 + $0x160] sm:$0xff]  ;;  %1221 = vst [vmem:[%s2596_s23 + $0x150] sm:$0xff] %v197_v42  ;;  %1222 = vst [vmem:[%s2596_s23 + $0x158] sm:$0xff] %v198_v43  ;;  %v200_v45 = vld [vmem:[%s2587_s3 + $0x168] sm:$0xff] }
  0x5c   : > { %1223 = vst [vmem:[%s2596_s23 + $0x160] sm:$0xff] %v199_v44  ;;  %v201_v46 = vld [vmem:[%s2587_s3 + $0x170] sm:$0xff]  ;;  %v202_v47 = vld [vmem:[%s2587_s3 + $0x178] sm:$0xff]  ;;  %1224 = vst [vmem:[%s2596_s23 + $0x168] sm:$0xff] %v200_v45 }
  0x5d   : > { %1225 = vst [vmem:[%s2596_s23 + $0x170] sm:$0xff] %v201_v46  ;;  %1226 = vst [vmem:[%s2596_s23 + $0x178] sm:$0xff] %v202_v47  ;;  %v203_v48 = vld [vmem:[%s2587_s3 + $0x180] sm:$0xff]  ;;  %v204_v49 = vld [vmem:[%s2587_s3 + $0x188] sm:$0xff] }
  0x5e   : > { %v205_v50 = vld [vmem:[%s2587_s3 + $0x190] sm:$0xff]  ;;  %1227 = vst [vmem:[%s2596_s23 + $0x180] sm:$0xff] %v203_v48  ;;  %1228 = vst [vmem:[%s2596_s23 + $0x188] sm:$0xff] %v204_v49  ;;  %v206_v51 = vld [vmem:[%s2587_s3 + $0x198] sm:$0xff] }
  0x5f   : > { %1229 = vst [vmem:[%s2596_s23 + $0x190] sm:$0xff] %v205_v50  ;;  %v207_v52 = vld [vmem:[%s2587_s3 + $0x1a0] sm:$0xff]  ;;  %v208_v53 = vld [vmem:[%s2587_s3 + $0x1a8] sm:$0xff]  ;;  %1230 = vst [vmem:[%s2596_s23 + $0x198] sm:$0xff] %v206_v51 }
  0x60   : > { %1231 = vst [vmem:[%s2596_s23 + $0x1a0] sm:$0xff] %v207_v52  ;;  %1232 = vst [vmem:[%s2596_s23 + $0x1a8] sm:$0xff] %v208_v53  ;;  %v209_v54 = vld [vmem:[%s2587_s3 + $0x1b0] sm:$0xff]  ;;  %v210_v55 = vld [vmem:[%s2587_s3 + $0x1b8] sm:$0xff] }
  0x61   : > { %v211_v56 = vld [vmem:[%s2587_s3 + $0x1c0] sm:$0xff]  ;;  %1233 = vst [vmem:[%s2596_s23 + $0x1b0] sm:$0xff] %v209_v54  ;;  %1234 = vst [vmem:[%s2596_s23 + $0x1b8] sm:$0xff] %v210_v55  ;;  %v212_v57 = vld [vmem:[%s2587_s3 + $0x1c8] sm:$0xff] }
  0x62   : > { %1235 = vst [vmem:[%s2596_s23 + $0x1c0] sm:$0xff] %v211_v56  ;;  %v213_v58 = vld [vmem:[%s2587_s3 + $0x1d0] sm:$0xff]  ;;  %v214_v59 = vld [vmem:[%s2587_s3 + $0x1d8] sm:$0xff]  ;;  %1236 = vst [vmem:[%s2596_s23 + $0x1c8] sm:$0xff] %v212_v57 }
  0x63   : > { %1237 = vst [vmem:[%s2596_s23 + $0x1d0] sm:$0xff] %v213_v58  ;;  %1238 = vst [vmem:[%s2596_s23 + $0x1d8] sm:$0xff] %v214_v59  ;;  %v215_v60 = vld [vmem:[%s2587_s3 + $0x1e0] sm:$0xff]  ;;  %v216_v61 = vld [vmem:[%s2587_s3 + $0x1e8] sm:$0xff] }
  0x64   : > { %v217_v62 = vld [vmem:[%s2587_s3 + $0x1f0] sm:$0xff]  ;;  %1239 = vst [vmem:[%s2596_s23 + $0x1e0] sm:$0xff] %v215_v60  ;;  %1240 = vst [vmem:[%s2596_s23 + $0x1e8] sm:$0xff] %v216_v61  ;;  %v218_v63 = vld [vmem:[%s2587_s3 + $0x1f8] sm:$0xff] }
  0x65   : > { %1241 = vst [vmem:[%s2596_s23 + $0x1f0] sm:$0xff] %v217_v62  ;;  %v219_v0 = vld [vmem:[%s2587_s3 + $0x200] sm:$0xff]  ;;  %v220_v1 = vld [vmem:[%s2587_s3 + $0x208] sm:$0xff]  ;;  %1242 = vst [vmem:[%s2596_s23 + $0x1f8] sm:$0xff] %v218_v63 }
  0x66   : > { %1243 = vst [vmem:[%s2596_s23 + $0x200] sm:$0xff] %v219_v0  ;;  %1244 = vst [vmem:[%s2596_s23 + $0x208] sm:$0xff] %v220_v1  ;;  %v221_v2 = vld [vmem:[%s2587_s3 + $0x210] sm:$0xff]  ;;  %v222_v3 = vld [vmem:[%s2587_s3 + $0x218] sm:$0xff] }
  0x67   : > { %v223_v4 = vld [vmem:[%s2587_s3 + $0x220] sm:$0xff]  ;;  %1245 = vst [vmem:[%s2596_s23 + $0x210] sm:$0xff] %v221_v2  ;;  %1246 = vst [vmem:[%s2596_s23 + $0x218] sm:$0xff] %v222_v3  ;;  %v224_v5 = vld [vmem:[%s2587_s3 + $0x228] sm:$0xff] }
  0x68   : > { %1247 = vst [vmem:[%s2596_s23 + $0x220] sm:$0xff] %v223_v4  ;;  %v225_v6 = vld [vmem:[%s2587_s3 + $0x230] sm:$0xff]  ;;  %v226_v7 = vld [vmem:[%s2587_s3 + $0x238] sm:$0xff]  ;;  %1248 = vst [vmem:[%s2596_s23 + $0x228] sm:$0xff] %v224_v5 }
  0x69   : > { %1249 = vst [vmem:[%s2596_s23 + $0x230] sm:$0xff] %v225_v6  ;;  %1250 = vst [vmem:[%s2596_s23 + $0x238] sm:$0xff] %v226_v7  ;;  %v227_v8 = vld [vmem:[%s2587_s3 + $0x240] sm:$0xff]  ;;  %v228_v9 = vld [vmem:[%s2587_s3 + $0x248] sm:$0xff] }
  0x6a   : > { %v229_v10 = vld [vmem:[%s2587_s3 + $0x250] sm:$0xff]  ;;  %1251 = vst [vmem:[%s2596_s23 + $0x240] sm:$0xff] %v227_v8  ;;  %1252 = vst [vmem:[%s2596_s23 + $0x248] sm:$0xff] %v228_v9  ;;  %v230_v11 = vld [vmem:[%s2587_s3 + $0x258] sm:$0xff] }
  0x6b   : > { %1253 = vst [vmem:[%s2596_s23 + $0x250] sm:$0xff] %v229_v10  ;;  %v231_v12 = vld [vmem:[%s2587_s3 + $0x260] sm:$0xff]  ;;  %v232_v13 = vld [vmem:[%s2587_s3 + $0x268] sm:$0xff]  ;;  %1254 = vst [vmem:[%s2596_s23 + $0x258] sm:$0xff] %v230_v11 }
  0x6c   : > { %1255 = vst [vmem:[%s2596_s23 + $0x260] sm:$0xff] %v231_v12  ;;  %1256 = vst [vmem:[%s2596_s23 + $0x268] sm:$0xff] %v232_v13  ;;  %v233_v14 = vld [vmem:[%s2587_s3 + $0x270] sm:$0xff]  ;;  %v234_v15 = vld [vmem:[%s2587_s3 + $0x278] sm:$0xff] }
  0x6d   : > { %v235_v16 = vld [vmem:[%s2587_s3 + $0x280] sm:$0xff]  ;;  %1257 = vst [vmem:[%s2596_s23 + $0x270] sm:$0xff] %v233_v14  ;;  %1258 = vst [vmem:[%s2596_s23 + $0x278] sm:$0xff] %v234_v15  ;;  %v236_v17 = vld [vmem:[%s2587_s3 + $0x288] sm:$0xff] }
  0x6e   : > { %1259 = vst [vmem:[%s2596_s23 + $0x280] sm:$0xff] %v235_v16  ;;  %v237_v18 = vld [vmem:[%s2587_s3 + $0x290] sm:$0xff]  ;;  %v238_v19 = vld [vmem:[%s2587_s3 + $0x298] sm:$0xff]  ;;  %1260 = vst [vmem:[%s2596_s23 + $0x288] sm:$0xff] %v236_v17 }
  0x6f   : > { %1261 = vst [vmem:[%s2596_s23 + $0x290] sm:$0xff] %v237_v18  ;;  %1262 = vst [vmem:[%s2596_s23 + $0x298] sm:$0xff] %v238_v19  ;;  %v239_v20 = vld [vmem:[%s2587_s3 + $0x2a0] sm:$0xff]  ;;  %v240_v21 = vld [vmem:[%s2587_s3 + $0x2a8] sm:$0xff] }
  0x70   : > { %v241_v22 = vld [vmem:[%s2587_s3 + $0x2b0] sm:$0xff]  ;;  %1263 = vst [vmem:[%s2596_s23 + $0x2a0] sm:$0xff] %v239_v20  ;;  %1264 = vst [vmem:[%s2596_s23 + $0x2a8] sm:$0xff] %v240_v21  ;;  %v242_v23 = vld [vmem:[%s2587_s3 + $0x2b8] sm:$0xff] }
  0x71   : > { %1265 = vst [vmem:[%s2596_s23 + $0x2b0] sm:$0xff] %v241_v22  ;;  %v243_v24 = vld [vmem:[%s2587_s3 + $0x2c0] sm:$0xff]  ;;  %v244_v25 = vld [vmem:[%s2587_s3 + $0x2c8] sm:$0xff]  ;;  %1266 = vst [vmem:[%s2596_s23 + $0x2b8] sm:$0xff] %v242_v23 }
  0x72   : > { %1267 = vst [vmem:[%s2596_s23 + $0x2c0] sm:$0xff] %v243_v24  ;;  %1268 = vst [vmem:[%s2596_s23 + $0x2c8] sm:$0xff] %v244_v25  ;;  %v245_v26 = vld [vmem:[%s2587_s3 + $0x2d0] sm:$0xff]  ;;  %v246_v27 = vld [vmem:[%s2587_s3 + $0x2d8] sm:$0xff] }
  0x73   : > { %v247_v28 = vld [vmem:[%s2587_s3 + $0x2e0] sm:$0xff]  ;;  %1269 = vst [vmem:[%s2596_s23 + $0x2d0] sm:$0xff] %v245_v26  ;;  %1270 = vst [vmem:[%s2596_s23 + $0x2d8] sm:$0xff] %v246_v27  ;;  %v248_v29 = vld [vmem:[%s2587_s3 + $0x2e8] sm:$0xff] }
  0x74   : > { %1271 = vst [vmem:[%s2596_s23 + $0x2e0] sm:$0xff] %v247_v28  ;;  %v249_v30 = vld [vmem:[%s2587_s3 + $0x2f0] sm:$0xff]  ;;  %v250_v31 = vld [vmem:[%s2587_s3 + $0x2f8] sm:$0xff]  ;;  %1272 = vst [vmem:[%s2596_s23 + $0x2e8] sm:$0xff] %v248_v29 }
  0x75   : > { %1273 = vst [vmem:[%s2596_s23 + $0x2f0] sm:$0xff] %v249_v30  ;;  %1274 = vst [vmem:[%s2596_s23 + $0x2f8] sm:$0xff] %v250_v31  ;;  %v251_v32 = vld [vmem:[%s2587_s3 + $0x300] sm:$0xff]  ;;  %v252_v33 = vld [vmem:[%s2587_s3 + $0x308] sm:$0xff] }
  0x76   : > { %v253_v34 = vld [vmem:[%s2587_s3 + $0x310] sm:$0xff]  ;;  %1275 = vst [vmem:[%s2596_s23 + $0x300] sm:$0xff] %v251_v32  ;;  %1276 = vst [vmem:[%s2596_s23 + $0x308] sm:$0xff] %v252_v33  ;;  %v254_v35 = vld [vmem:[%s2587_s3 + $0x318] sm:$0xff] }
  0x77   : > { %1277 = vst [vmem:[%s2596_s23 + $0x310] sm:$0xff] %v253_v34  ;;  %v255_v36 = vld [vmem:[%s2587_s3 + $0x320] sm:$0xff]  ;;  %v256_v37 = vld [vmem:[%s2587_s3 + $0x328] sm:$0xff]  ;;  %1278 = vst [vmem:[%s2596_s23 + $0x318] sm:$0xff] %v254_v35 }
  0x78   : > { %1279 = vst [vmem:[%s2596_s23 + $0x320] sm:$0xff] %v255_v36  ;;  %1280 = vst [vmem:[%s2596_s23 + $0x328] sm:$0xff] %v256_v37  ;;  %v257_v38 = vld [vmem:[%s2587_s3 + $0x330] sm:$0xff]  ;;  %v258_v39 = vld [vmem:[%s2587_s3 + $0x338] sm:$0xff] }
  0x79   : > { %v259_v40 = vld [vmem:[%s2587_s3 + $0x340] sm:$0xff]  ;;  %1281 = vst [vmem:[%s2596_s23 + $0x330] sm:$0xff] %v257_v38  ;;  %1282 = vst [vmem:[%s2596_s23 + $0x338] sm:$0xff] %v258_v39  ;;  %v260_v41 = vld [vmem:[%s2587_s3 + $0x348] sm:$0xff] }
  0x7a   : > { %1283 = vst [vmem:[%s2596_s23 + $0x340] sm:$0xff] %v259_v40  ;;  %v261_v42 = vld [vmem:[%s2587_s3 + $0x350] sm:$0xff]  ;;  %v262_v43 = vld [vmem:[%s2587_s3 + $0x358] sm:$0xff]  ;;  %1284 = vst [vmem:[%s2596_s23 + $0x348] sm:$0xff] %v260_v41 }
  0x7b   : > { %1285 = vst [vmem:[%s2596_s23 + $0x350] sm:$0xff] %v261_v42  ;;  %1286 = vst [vmem:[%s2596_s23 + $0x358] sm:$0xff] %v262_v43  ;;  %v263_v44 = vld [vmem:[%s2587_s3 + $0x360] sm:$0xff]  ;;  %v264_v45 = vld [vmem:[%s2587_s3 + $0x368] sm:$0xff] }
  0x7c   : > { %v265_v46 = vld [vmem:[%s2587_s3 + $0x370] sm:$0xff]  ;;  %1287 = vst [vmem:[%s2596_s23 + $0x360] sm:$0xff] %v263_v44  ;;  %1288 = vst [vmem:[%s2596_s23 + $0x368] sm:$0xff] %v264_v45  ;;  %v266_v47 = vld [vmem:[%s2587_s3 + $0x378] sm:$0xff] }
  0x7d   : > { %1289 = vst [vmem:[%s2596_s23 + $0x370] sm:$0xff] %v265_v46  ;;  %v267_v48 = vld [vmem:[%s2587_s3 + $0x380] sm:$0xff]  ;;  %v268_v49 = vld [vmem:[%s2587_s3 + $0x388] sm:$0xff]  ;;  %1290 = vst [vmem:[%s2596_s23 + $0x378] sm:$0xff] %v266_v47 }
  0x7e   : > { %1291 = vst [vmem:[%s2596_s23 + $0x380] sm:$0xff] %v267_v48  ;;  %1292 = vst [vmem:[%s2596_s23 + $0x388] sm:$0xff] %v268_v49  ;;  %v269_v50 = vld [vmem:[%s2587_s3 + $0x390] sm:$0xff]  ;;  %v270_v51 = vld [vmem:[%s2587_s3 + $0x398] sm:$0xff] }
  0x7f   : > { %v271_v52 = vld [vmem:[%s2587_s3 + $0x3a0] sm:$0xff]  ;;  %1293 = vst [vmem:[%s2596_s23 + $0x390] sm:$0xff] %v269_v50  ;;  %1294 = vst [vmem:[%s2596_s23 + $0x398] sm:$0xff] %v270_v51  ;;  %v272_v53 = vld [vmem:[%s2587_s3 + $0x3a8] sm:$0xff] }
  0x80   : > { %1295 = vst [vmem:[%s2596_s23 + $0x3a0] sm:$0xff] %v271_v52  ;;  %v273_v54 = vld [vmem:[%s2587_s3 + $0x3b0] sm:$0xff]  ;;  %v274_v55 = vld [vmem:[%s2587_s3 + $0x3b8] sm:$0xff]  ;;  %1296 = vst [vmem:[%s2596_s23 + $0x3a8] sm:$0xff] %v272_v53 }
  0x81   : > { %1297 = vst [vmem:[%s2596_s23 + $0x3b0] sm:$0xff] %v273_v54  ;;  %1298 = vst [vmem:[%s2596_s23 + $0x3b8] sm:$0xff] %v274_v55  ;;  %v275_v56 = vld [vmem:[%s2587_s3 + $0x3c0] sm:$0xff]  ;;  %v276_v57 = vld [vmem:[%s2587_s3 + $0x3c8] sm:$0xff] }
  0x82   : > { %v277_v58 = vld [vmem:[%s2587_s3 + $0x3d0] sm:$0xff]  ;;  %1299 = vst [vmem:[%s2596_s23 + $0x3c0] sm:$0xff] %v275_v56  ;;  %1300 = vst [vmem:[%s2596_s23 + $0x3c8] sm:$0xff] %v276_v57  ;;  %v278_v59 = vld [vmem:[%s2587_s3 + $0x3d8] sm:$0xff] }
  0x83   : > { %1301 = vst [vmem:[%s2596_s23 + $0x3d0] sm:$0xff] %v277_v58  ;;  %v279_v60 = vld [vmem:[%s2587_s3 + $0x3e0] sm:$0xff]  ;;  %v280_v61 = vld [vmem:[%s2587_s3 + $0x3e8] sm:$0xff]  ;;  %1302 = vst [vmem:[%s2596_s23 + $0x3d8] sm:$0xff] %v278_v59 }
  0x84   : > { %1303 = vst [vmem:[%s2596_s23 + $0x3e0] sm:$0xff] %v279_v60  ;;  %1304 = vst [vmem:[%s2596_s23 + $0x3e8] sm:$0xff] %v280_v61  ;;  %v281_v62 = vld [vmem:[%s2587_s3 + $0x3f0] sm:$0xff]  ;;  %v282_v63 = vld [vmem:[%s2587_s3 + $0x3f8] sm:$0xff] }
  0x85   : > { %v283_v0 = vld [vmem:[%s2587_s3 + $0x400] sm:$0xff]  ;;  %1305 = vst [vmem:[%s2596_s23 + $0x3f0] sm:$0xff] %v281_v62  ;;  %1306 = vst [vmem:[%s2596_s23 + $0x3f8] sm:$0xff] %v282_v63  ;;  %v284_v1 = vld [vmem:[%s2587_s3 + $0x408] sm:$0xff] }
  0x86   : > { %1307 = vst [vmem:[%s2596_s23 + $0x400] sm:$0xff] %v283_v0  ;;  %v285_v2 = vld [vmem:[%s2587_s3 + $0x410] sm:$0xff]  ;;  %v286_v3 = vld [vmem:[%s2587_s3 + $0x418] sm:$0xff]  ;;  %1308 = vst [vmem:[%s2596_s23 + $0x408] sm:$0xff] %v284_v1 }
  0x87   : > { %1309 = vst [vmem:[%s2596_s23 + $0x410] sm:$0xff] %v285_v2  ;;  %1310 = vst [vmem:[%s2596_s23 + $0x418] sm:$0xff] %v286_v3  ;;  %v287_v4 = vld [vmem:[%s2587_s3 + $0x420] sm:$0xff]  ;;  %v288_v5 = vld [vmem:[%s2587_s3 + $0x428] sm:$0xff] }
  0x88   : > { %v289_v6 = vld [vmem:[%s2587_s3 + $0x430] sm:$0xff]  ;;  %1311 = vst [vmem:[%s2596_s23 + $0x420] sm:$0xff] %v287_v4  ;;  %1312 = vst [vmem:[%s2596_s23 + $0x428] sm:$0xff] %v288_v5  ;;  %v290_v7 = vld [vmem:[%s2587_s3 + $0x438] sm:$0xff] }
  0x89   : > { %1313 = vst [vmem:[%s2596_s23 + $0x430] sm:$0xff] %v289_v6  ;;  %v291_v8 = vld [vmem:[%s2587_s3 + $0x440] sm:$0xff]  ;;  %v292_v9 = vld [vmem:[%s2587_s3 + $0x448] sm:$0xff]  ;;  %1314 = vst [vmem:[%s2596_s23 + $0x438] sm:$0xff] %v290_v7 }
  0x8a   : > { %1315 = vst [vmem:[%s2596_s23 + $0x440] sm:$0xff] %v291_v8  ;;  %1316 = vst [vmem:[%s2596_s23 + $0x448] sm:$0xff] %v292_v9  ;;  %v293_v10 = vld [vmem:[%s2587_s3 + $0x450] sm:$0xff]  ;;  %v294_v11 = vld [vmem:[%s2587_s3 + $0x458] sm:$0xff] }
  0x8b   : > { %v295_v12 = vld [vmem:[%s2587_s3 + $0x460] sm:$0xff]  ;;  %1317 = vst [vmem:[%s2596_s23 + $0x450] sm:$0xff] %v293_v10  ;;  %1318 = vst [vmem:[%s2596_s23 + $0x458] sm:$0xff] %v294_v11  ;;  %v296_v13 = vld [vmem:[%s2587_s3 + $0x468] sm:$0xff] }
  0x8c   : > { %1319 = vst [vmem:[%s2596_s23 + $0x460] sm:$0xff] %v295_v12  ;;  %v297_v14 = vld [vmem:[%s2587_s3 + $0x470] sm:$0xff]  ;;  %v298_v15 = vld [vmem:[%s2587_s3 + $0x478] sm:$0xff]  ;;  %1320 = vst [vmem:[%s2596_s23 + $0x468] sm:$0xff] %v296_v13 }
  0x8d   : > { %1321 = vst [vmem:[%s2596_s23 + $0x470] sm:$0xff] %v297_v14  ;;  %1322 = vst [vmem:[%s2596_s23 + $0x478] sm:$0xff] %v298_v15  ;;  %v299_v16 = vld [vmem:[%s2587_s3 + $0x480] sm:$0xff]  ;;  %v300_v17 = vld [vmem:[%s2587_s3 + $0x488] sm:$0xff] }
  0x8e   : > { %v301_v18 = vld [vmem:[%s2587_s3 + $0x490] sm:$0xff]  ;;  %1323 = vst [vmem:[%s2596_s23 + $0x480] sm:$0xff] %v299_v16  ;;  %1324 = vst [vmem:[%s2596_s23 + $0x488] sm:$0xff] %v300_v17  ;;  %v302_v19 = vld [vmem:[%s2587_s3 + $0x498] sm:$0xff] }
  0x8f   : > { %1325 = vst [vmem:[%s2596_s23 + $0x490] sm:$0xff] %v301_v18  ;;  %v303_v20 = vld [vmem:[%s2587_s3 + $0x4a0] sm:$0xff]  ;;  %v304_v21 = vld [vmem:[%s2587_s3 + $0x4a8] sm:$0xff]  ;;  %1326 = vst [vmem:[%s2596_s23 + $0x498] sm:$0xff] %v302_v19 }
  0x90   : > { %1327 = vst [vmem:[%s2596_s23 + $0x4a0] sm:$0xff] %v303_v20  ;;  %1328 = vst [vmem:[%s2596_s23 + $0x4a8] sm:$0xff] %v304_v21  ;;  %v305_v22 = vld [vmem:[%s2587_s3 + $0x4b0] sm:$0xff]  ;;  %v306_v23 = vld [vmem:[%s2587_s3 + $0x4b8] sm:$0xff] }
  0x91   : > { %v307_v24 = vld [vmem:[%s2587_s3 + $0x4c0] sm:$0xff]  ;;  %1329 = vst [vmem:[%s2596_s23 + $0x4b0] sm:$0xff] %v305_v22  ;;  %1330 = vst [vmem:[%s2596_s23 + $0x4b8] sm:$0xff] %v306_v23  ;;  %v308_v25 = vld [vmem:[%s2587_s3 + $0x4c8] sm:$0xff] }
  0x92   : > { %1331 = vst [vmem:[%s2596_s23 + $0x4c0] sm:$0xff] %v307_v24  ;;  %v309_v26 = vld [vmem:[%s2587_s3 + $0x4d0] sm:$0xff]  ;;  %v310_v27 = vld [vmem:[%s2587_s3 + $0x4d8] sm:$0xff]  ;;  %1332 = vst [vmem:[%s2596_s23 + $0x4c8] sm:$0xff] %v308_v25 }
  0x93   : > { %1333 = vst [vmem:[%s2596_s23 + $0x4d0] sm:$0xff] %v309_v26  ;;  %1334 = vst [vmem:[%s2596_s23 + $0x4d8] sm:$0xff] %v310_v27  ;;  %v311_v28 = vld [vmem:[%s2587_s3 + $0x4e0] sm:$0xff]  ;;  %v312_v29 = vld [vmem:[%s2587_s3 + $0x4e8] sm:$0xff] }
  0x94   : > { %v313_v30 = vld [vmem:[%s2587_s3 + $0x4f0] sm:$0xff]  ;;  %1335 = vst [vmem:[%s2596_s23 + $0x4e0] sm:$0xff] %v311_v28  ;;  %1336 = vst [vmem:[%s2596_s23 + $0x4e8] sm:$0xff] %v312_v29  ;;  %v314_v31 = vld [vmem:[%s2587_s3 + $0x4f8] sm:$0xff] }
  0x95   : > { %1337 = vst [vmem:[%s2596_s23 + $0x4f0] sm:$0xff] %v313_v30  ;;  %v315_v32 = vld [vmem:[%s2587_s3 + $0x500] sm:$0xff]  ;;  %v316_v33 = vld [vmem:[%s2587_s3 + $0x508] sm:$0xff]  ;;  %1338 = vst [vmem:[%s2596_s23 + $0x4f8] sm:$0xff] %v314_v31 }
  0x96   : > { %1339 = vst [vmem:[%s2596_s23 + $0x500] sm:$0xff] %v315_v32  ;;  %1340 = vst [vmem:[%s2596_s23 + $0x508] sm:$0xff] %v316_v33  ;;  %v317_v34 = vld [vmem:[%s2587_s3 + $0x510] sm:$0xff]  ;;  %v318_v35 = vld [vmem:[%s2587_s3 + $0x518] sm:$0xff] }
  0x97   : > { %v319_v36 = vld [vmem:[%s2587_s3 + $0x520] sm:$0xff]  ;;  %1341 = vst [vmem:[%s2596_s23 + $0x510] sm:$0xff] %v317_v34  ;;  %1342 = vst [vmem:[%s2596_s23 + $0x518] sm:$0xff] %v318_v35  ;;  %v320_v37 = vld [vmem:[%s2587_s3 + $0x528] sm:$0xff] }
  0x98   : > { %1343 = vst [vmem:[%s2596_s23 + $0x520] sm:$0xff] %v319_v36  ;;  %v321_v38 = vld [vmem:[%s2587_s3 + $0x530] sm:$0xff]  ;;  %v322_v39 = vld [vmem:[%s2587_s3 + $0x538] sm:$0xff]  ;;  %1344 = vst [vmem:[%s2596_s23 + $0x528] sm:$0xff] %v320_v37 }
  0x99   : > { %1345 = vst [vmem:[%s2596_s23 + $0x530] sm:$0xff] %v321_v38  ;;  %1346 = vst [vmem:[%s2596_s23 + $0x538] sm:$0xff] %v322_v39  ;;  %v323_v40 = vld [vmem:[%s2587_s3 + $0x540] sm:$0xff]  ;;  %v324_v41 = vld [vmem:[%s2587_s3 + $0x548] sm:$0xff] }
  0x9a   : > { %v325_v42 = vld [vmem:[%s2587_s3 + $0x550] sm:$0xff]  ;;  %1347 = vst [vmem:[%s2596_s23 + $0x540] sm:$0xff] %v323_v40  ;;  %1348 = vst [vmem:[%s2596_s23 + $0x548] sm:$0xff] %v324_v41  ;;  %v326_v43 = vld [vmem:[%s2587_s3 + $0x558] sm:$0xff] }
  0x9b   : > { %1349 = vst [vmem:[%s2596_s23 + $0x550] sm:$0xff] %v325_v42  ;;  %v327_v44 = vld [vmem:[%s2587_s3 + $0x560] sm:$0xff]  ;;  %v328_v45 = vld [vmem:[%s2587_s3 + $0x568] sm:$0xff]  ;;  %1350 = vst [vmem:[%s2596_s23 + $0x558] sm:$0xff] %v326_v43 }
  0x9c   : > { %1351 = vst [vmem:[%s2596_s23 + $0x560] sm:$0xff] %v327_v44  ;;  %1352 = vst [vmem:[%s2596_s23 + $0x568] sm:$0xff] %v328_v45  ;;  %v329_v46 = vld [vmem:[%s2587_s3 + $0x570] sm:$0xff]  ;;  %v330_v47 = vld [vmem:[%s2587_s3 + $0x578] sm:$0xff] }
  0x9d   : > { %v331_v48 = vld [vmem:[%s2587_s3 + $0x580] sm:$0xff]  ;;  %1353 = vst [vmem:[%s2596_s23 + $0x570] sm:$0xff] %v329_v46  ;;  %1354 = vst [vmem:[%s2596_s23 + $0x578] sm:$0xff] %v330_v47  ;;  %v332_v49 = vld [vmem:[%s2587_s3 + $0x588] sm:$0xff] }
  0x9e   : > { %1355 = vst [vmem:[%s2596_s23 + $0x580] sm:$0xff] %v331_v48  ;;  %v333_v50 = vld [vmem:[%s2587_s3 + $0x590] sm:$0xff]  ;;  %v334_v51 = vld [vmem:[%s2587_s3 + $0x598] sm:$0xff]  ;;  %1356 = vst [vmem:[%s2596_s23 + $0x588] sm:$0xff] %v332_v49 }
  0x9f   : > { %1357 = vst [vmem:[%s2596_s23 + $0x590] sm:$0xff] %v333_v50  ;;  %1358 = vst [vmem:[%s2596_s23 + $0x598] sm:$0xff] %v334_v51  ;;  %v335_v52 = vld [vmem:[%s2587_s3 + $0x5a0] sm:$0xff]  ;;  %v336_v53 = vld [vmem:[%s2587_s3 + $0x5a8] sm:$0xff] }
  0xa0   : > { %v337_v54 = vld [vmem:[%s2587_s3 + $0x5b0] sm:$0xff]  ;;  %1359 = vst [vmem:[%s2596_s23 + $0x5a0] sm:$0xff] %v335_v52  ;;  %1360 = vst [vmem:[%s2596_s23 + $0x5a8] sm:$0xff] %v336_v53  ;;  %v338_v55 = vld [vmem:[%s2587_s3 + $0x5b8] sm:$0xff] }
  0xa1   : > { %1361 = vst [vmem:[%s2596_s23 + $0x5b0] sm:$0xff] %v337_v54  ;;  %v339_v56 = vld [vmem:[%s2587_s3 + $0x5c0] sm:$0xff]  ;;  %v340_v57 = vld [vmem:[%s2587_s3 + $0x5c8] sm:$0xff]  ;;  %1362 = vst [vmem:[%s2596_s23 + $0x5b8] sm:$0xff] %v338_v55 }
  0xa2   : > { %1363 = vst [vmem:[%s2596_s23 + $0x5c0] sm:$0xff] %v339_v56  ;;  %1364 = vst [vmem:[%s2596_s23 + $0x5c8] sm:$0xff] %v340_v57  ;;  %v341_v58 = vld [vmem:[%s2587_s3 + $0x5d0] sm:$0xff]  ;;  %v342_v59 = vld [vmem:[%s2587_s3 + $0x5d8] sm:$0xff] }
  0xa3   : > { %v343_v60 = vld [vmem:[%s2587_s3 + $0x5e0] sm:$0xff]  ;;  %1365 = vst [vmem:[%s2596_s23 + $0x5d0] sm:$0xff] %v341_v58  ;;  %1366 = vst [vmem:[%s2596_s23 + $0x5d8] sm:$0xff] %v342_v59  ;;  %v344_v61 = vld [vmem:[%s2587_s3 + $0x5e8] sm:$0xff] }
  0xa4   : > { %1367 = vst [vmem:[%s2596_s23 + $0x5e0] sm:$0xff] %v343_v60  ;;  %v345_v62 = vld [vmem:[%s2587_s3 + $0x5f0] sm:$0xff]  ;;  %v346_v63 = vld [vmem:[%s2587_s3 + $0x5f8] sm:$0xff]  ;;  %1368 = vst [vmem:[%s2596_s23 + $0x5e8] sm:$0xff] %v344_v61 }
  0xa5   : > { %1369 = vst [vmem:[%s2596_s23 + $0x5f0] sm:$0xff] %v345_v62  ;;  %1370 = vst [vmem:[%s2596_s23 + $0x5f8] sm:$0xff] %v346_v63  ;;  %v347_v0 = vld [vmem:[%s2587_s3 + $0x600] sm:$0xff]  ;;  %v348_v1 = vld [vmem:[%s2587_s3 + $0x608] sm:$0xff] }
  0xa6   : > { %v349_v2 = vld [vmem:[%s2587_s3 + $0x610] sm:$0xff]  ;;  %1371 = vst [vmem:[%s2596_s23 + $0x600] sm:$0xff] %v347_v0  ;;  %1372 = vst [vmem:[%s2596_s23 + $0x608] sm:$0xff] %v348_v1  ;;  %v350_v3 = vld [vmem:[%s2587_s3 + $0x618] sm:$0xff] }
  0xa7   : > { %1373 = vst [vmem:[%s2596_s23 + $0x610] sm:$0xff] %v349_v2  ;;  %v351_v4 = vld [vmem:[%s2587_s3 + $0x620] sm:$0xff]  ;;  %v352_v5 = vld [vmem:[%s2587_s3 + $0x628] sm:$0xff]  ;;  %1374 = vst [vmem:[%s2596_s23 + $0x618] sm:$0xff] %v350_v3 }
  0xa8   : > { %1375 = vst [vmem:[%s2596_s23 + $0x620] sm:$0xff] %v351_v4  ;;  %1376 = vst [vmem:[%s2596_s23 + $0x628] sm:$0xff] %v352_v5  ;;  %v353_v6 = vld [vmem:[%s2587_s3 + $0x630] sm:$0xff]  ;;  %v354_v7 = vld [vmem:[%s2587_s3 + $0x638] sm:$0xff] }
  0xa9   : > { %v355_v8 = vld [vmem:[%s2587_s3 + $0x640] sm:$0xff]  ;;  %1377 = vst [vmem:[%s2596_s23 + $0x630] sm:$0xff] %v353_v6  ;;  %1378 = vst [vmem:[%s2596_s23 + $0x638] sm:$0xff] %v354_v7  ;;  %v356_v9 = vld [vmem:[%s2587_s3 + $0x648] sm:$0xff] }
  0xaa   : > { %1379 = vst [vmem:[%s2596_s23 + $0x640] sm:$0xff] %v355_v8  ;;  %v357_v10 = vld [vmem:[%s2587_s3 + $0x650] sm:$0xff]  ;;  %v358_v11 = vld [vmem:[%s2587_s3 + $0x658] sm:$0xff]  ;;  %1380 = vst [vmem:[%s2596_s23 + $0x648] sm:$0xff] %v356_v9 }
  0xab   : > { %1381 = vst [vmem:[%s2596_s23 + $0x650] sm:$0xff] %v357_v10  ;;  %1382 = vst [vmem:[%s2596_s23 + $0x658] sm:$0xff] %v358_v11  ;;  %v359_v12 = vld [vmem:[%s2587_s3 + $0x660] sm:$0xff]  ;;  %v360_v13 = vld [vmem:[%s2587_s3 + $0x668] sm:$0xff] }
  0xac   : > { %v361_v14 = vld [vmem:[%s2587_s3 + $0x670] sm:$0xff]  ;;  %1383 = vst [vmem:[%s2596_s23 + $0x660] sm:$0xff] %v359_v12  ;;  %1384 = vst [vmem:[%s2596_s23 + $0x668] sm:$0xff] %v360_v13  ;;  %v362_v15 = vld [vmem:[%s2587_s3 + $0x678] sm:$0xff] }
  0xad   : > { %1385 = vst [vmem:[%s2596_s23 + $0x670] sm:$0xff] %v361_v14  ;;  %v363_v16 = vld [vmem:[%s2587_s3 + $0x680] sm:$0xff]  ;;  %v364_v17 = vld [vmem:[%s2587_s3 + $0x688] sm:$0xff]  ;;  %1386 = vst [vmem:[%s2596_s23 + $0x678] sm:$0xff] %v362_v15 }
  0xae   : > { %1387 = vst [vmem:[%s2596_s23 + $0x680] sm:$0xff] %v363_v16  ;;  %1388 = vst [vmem:[%s2596_s23 + $0x688] sm:$0xff] %v364_v17  ;;  %v365_v18 = vld [vmem:[%s2587_s3 + $0x690] sm:$0xff]  ;;  %v366_v19 = vld [vmem:[%s2587_s3 + $0x698] sm:$0xff] }
  0xaf   : > { %v367_v20 = vld [vmem:[%s2587_s3 + $0x6a0] sm:$0xff]  ;;  %1389 = vst [vmem:[%s2596_s23 + $0x690] sm:$0xff] %v365_v18  ;;  %1390 = vst [vmem:[%s2596_s23 + $0x698] sm:$0xff] %v366_v19  ;;  %v368_v21 = vld [vmem:[%s2587_s3 + $0x6a8] sm:$0xff] }
  0xb0   : > { %1391 = vst [vmem:[%s2596_s23 + $0x6a0] sm:$0xff] %v367_v20  ;;  %v369_v22 = vld [vmem:[%s2587_s3 + $0x6b0] sm:$0xff]  ;;  %v370_v23 = vld [vmem:[%s2587_s3 + $0x6b8] sm:$0xff]  ;;  %1392 = vst [vmem:[%s2596_s23 + $0x6a8] sm:$0xff] %v368_v21 }
  0xb1   : > { %1393 = vst [vmem:[%s2596_s23 + $0x6b0] sm:$0xff] %v369_v22  ;;  %1394 = vst [vmem:[%s2596_s23 + $0x6b8] sm:$0xff] %v370_v23  ;;  %v371_v24 = vld [vmem:[%s2587_s3 + $0x6c0] sm:$0xff]  ;;  %v372_v25 = vld [vmem:[%s2587_s3 + $0x6c8] sm:$0xff] }
  0xb2   : > { %v373_v26 = vld [vmem:[%s2587_s3 + $0x6d0] sm:$0xff]  ;;  %1395 = vst [vmem:[%s2596_s23 + $0x6c0] sm:$0xff] %v371_v24  ;;  %1396 = vst [vmem:[%s2596_s23 + $0x6c8] sm:$0xff] %v372_v25  ;;  %v374_v27 = vld [vmem:[%s2587_s3 + $0x6d8] sm:$0xff] }
  0xb3   : > { %1397 = vst [vmem:[%s2596_s23 + $0x6d0] sm:$0xff] %v373_v26  ;;  %v375_v28 = vld [vmem:[%s2587_s3 + $0x6e0] sm:$0xff]  ;;  %v376_v29 = vld [vmem:[%s2587_s3 + $0x6e8] sm:$0xff]  ;;  %1398 = vst [vmem:[%s2596_s23 + $0x6d8] sm:$0xff] %v374_v27 }
  0xb4   : > { %1399 = vst [vmem:[%s2596_s23 + $0x6e0] sm:$0xff] %v375_v28  ;;  %1400 = vst [vmem:[%s2596_s23 + $0x6e8] sm:$0xff] %v376_v29  ;;  %v377_v30 = vld [vmem:[%s2587_s3 + $0x6f0] sm:$0xff]  ;;  %v378_v31 = vld [vmem:[%s2587_s3 + $0x6f8] sm:$0xff] }
  0xb5   : > { %v379_v32 = vld [vmem:[%s2587_s3 + $0x700] sm:$0xff]  ;;  %1401 = vst [vmem:[%s2596_s23 + $0x6f0] sm:$0xff] %v377_v30  ;;  %1402 = vst [vmem:[%s2596_s23 + $0x6f8] sm:$0xff] %v378_v31  ;;  %v380_v33 = vld [vmem:[%s2587_s3 + $0x708] sm:$0xff] }
  0xb6   : > { %1403 = vst [vmem:[%s2596_s23 + $0x700] sm:$0xff] %v379_v32  ;;  %v381_v34 = vld [vmem:[%s2587_s3 + $0x710] sm:$0xff]  ;;  %v382_v35 = vld [vmem:[%s2587_s3 + $0x718] sm:$0xff]  ;;  %1404 = vst [vmem:[%s2596_s23 + $0x708] sm:$0xff] %v380_v33 }
  0xb7   : > { %1405 = vst [vmem:[%s2596_s23 + $0x710] sm:$0xff] %v381_v34  ;;  %1406 = vst [vmem:[%s2596_s23 + $0x718] sm:$0xff] %v382_v35  ;;  %v383_v36 = vld [vmem:[%s2587_s3 + $0x720] sm:$0xff]  ;;  %v384_v37 = vld [vmem:[%s2587_s3 + $0x728] sm:$0xff] }
  0xb8   : > { %v385_v38 = vld [vmem:[%s2587_s3 + $0x730] sm:$0xff]  ;;  %1407 = vst [vmem:[%s2596_s23 + $0x720] sm:$0xff] %v383_v36  ;;  %1408 = vst [vmem:[%s2596_s23 + $0x728] sm:$0xff] %v384_v37  ;;  %v386_v39 = vld [vmem:[%s2587_s3 + $0x738] sm:$0xff] }
  0xb9   : > { %1409 = vst [vmem:[%s2596_s23 + $0x730] sm:$0xff] %v385_v38  ;;  %v387_v40 = vld [vmem:[%s2587_s3 + $0x740] sm:$0xff]  ;;  %v388_v41 = vld [vmem:[%s2587_s3 + $0x748] sm:$0xff]  ;;  %1410 = vst [vmem:[%s2596_s23 + $0x738] sm:$0xff] %v386_v39 }
  0xba   : > { %1411 = vst [vmem:[%s2596_s23 + $0x740] sm:$0xff] %v387_v40  ;;  %1412 = vst [vmem:[%s2596_s23 + $0x748] sm:$0xff] %v388_v41  ;;  %v389_v42 = vld [vmem:[%s2587_s3 + $0x750] sm:$0xff]  ;;  %v390_v43 = vld [vmem:[%s2587_s3 + $0x758] sm:$0xff] }
  0xbb   : > { %v391_v44 = vld [vmem:[%s2587_s3 + $0x760] sm:$0xff]  ;;  %1413 = vst [vmem:[%s2596_s23 + $0x750] sm:$0xff] %v389_v42  ;;  %1414 = vst [vmem:[%s2596_s23 + $0x758] sm:$0xff] %v390_v43  ;;  %v392_v45 = vld [vmem:[%s2587_s3 + $0x768] sm:$0xff] }
  0xbc   : > { %1415 = vst [vmem:[%s2596_s23 + $0x760] sm:$0xff] %v391_v44  ;;  %v393_v46 = vld [vmem:[%s2587_s3 + $0x770] sm:$0xff]  ;;  %v394_v47 = vld [vmem:[%s2587_s3 + $0x778] sm:$0xff]  ;;  %1416 = vst [vmem:[%s2596_s23 + $0x768] sm:$0xff] %v392_v45 }
  0xbd   : > { %1417 = vst [vmem:[%s2596_s23 + $0x770] sm:$0xff] %v393_v46  ;;  %1418 = vst [vmem:[%s2596_s23 + $0x778] sm:$0xff] %v394_v47  ;;  %v395_v48 = vld [vmem:[%s2587_s3 + $0x780] sm:$0xff]  ;;  %v396_v49 = vld [vmem:[%s2587_s3 + $0x788] sm:$0xff] }
  0xbe   : > { %v397_v50 = vld [vmem:[%s2587_s3 + $0x790] sm:$0xff]  ;;  %1419 = vst [vmem:[%s2596_s23 + $0x780] sm:$0xff] %v395_v48  ;;  %1420 = vst [vmem:[%s2596_s23 + $0x788] sm:$0xff] %v396_v49  ;;  %v398_v51 = vld [vmem:[%s2587_s3 + $0x798] sm:$0xff] }
  0xbf   : > { %1421 = vst [vmem:[%s2596_s23 + $0x790] sm:$0xff] %v397_v50  ;;  %v399_v52 = vld [vmem:[%s2587_s3 + $0x7a0] sm:$0xff]  ;;  %v400_v53 = vld [vmem:[%s2587_s3 + $0x7a8] sm:$0xff]  ;;  %1422 = vst [vmem:[%s2596_s23 + $0x798] sm:$0xff] %v398_v51 }
  0xc0   : > { %1423 = vst [vmem:[%s2596_s23 + $0x7a0] sm:$0xff] %v399_v52  ;;  %1424 = vst [vmem:[%s2596_s23 + $0x7a8] sm:$0xff] %v400_v53  ;;  %v401_v54 = vld [vmem:[%s2587_s3 + $0x7b0] sm:$0xff]  ;;  %v402_v55 = vld [vmem:[%s2587_s3 + $0x7b8] sm:$0xff] }
  0xc1   : > { %v403_v56 = vld [vmem:[%s2587_s3 + $0x7c0] sm:$0xff]  ;;  %1425 = vst [vmem:[%s2596_s23 + $0x7b0] sm:$0xff] %v401_v54  ;;  %1426 = vst [vmem:[%s2596_s23 + $0x7b8] sm:$0xff] %v402_v55  ;;  %v404_v57 = vld [vmem:[%s2587_s3 + $0x7c8] sm:$0xff] }
  0xc2   : > { %1427 = vst [vmem:[%s2596_s23 + $0x7c0] sm:$0xff] %v403_v56  ;;  %v405_v58 = vld [vmem:[%s2587_s3 + $0x7d0] sm:$0xff]  ;;  %v406_v59 = vld [vmem:[%s2587_s3 + $0x7d8] sm:$0xff]  ;;  %1428 = vst [vmem:[%s2596_s23 + $0x7c8] sm:$0xff] %v404_v57 }
  0xc3   : > { %1429 = vst [vmem:[%s2596_s23 + $0x7d0] sm:$0xff] %v405_v58  ;;  %1430 = vst [vmem:[%s2596_s23 + $0x7d8] sm:$0xff] %v406_v59  ;;  %v407_v60 = vld [vmem:[%s2587_s3 + $0x7e0] sm:$0xff]  ;;  %v408_v61 = vld [vmem:[%s2587_s3 + $0x7e8] sm:$0xff] }
  0xc4   : > { %v409_v62 = vld [vmem:[%s2587_s3 + $0x7f0] sm:$0xff]  ;;  %1431 = vst [vmem:[%s2596_s23 + $0x7e0] sm:$0xff] %v407_v60  ;;  %1432 = vst [vmem:[%s2596_s23 + $0x7e8] sm:$0xff] %v408_v61  ;;  %v410_v63 = vld [vmem:[%s2587_s3 + $0x7f8] sm:$0xff] }
  0xc5   : > { %1433 = vst [vmem:[%s2596_s23 + $0x7f0] sm:$0xff] %v409_v62  ;;  %v411_v0 = vld [vmem:[%s2587_s3 + $0x800] sm:$0xff]  ;;  %v412_v1 = vld [vmem:[%s2587_s3 + $0x808] sm:$0xff]  ;;  %1434 = vst [vmem:[%s2596_s23 + $0x7f8] sm:$0xff] %v410_v63 }
  0xc6   : > { %1435 = vst [vmem:[%s2596_s23 + $0x800] sm:$0xff] %v411_v0  ;;  %1436 = vst [vmem:[%s2596_s23 + $0x808] sm:$0xff] %v412_v1  ;;  %v413_v2 = vld [vmem:[%s2587_s3 + $0x810] sm:$0xff]  ;;  %v414_v3 = vld [vmem:[%s2587_s3 + $0x818] sm:$0xff] }
  0xc7   : > { %v415_v4 = vld [vmem:[%s2587_s3 + $0x820] sm:$0xff]  ;;  %1437 = vst [vmem:[%s2596_s23 + $0x810] sm:$0xff] %v413_v2  ;;  %1438 = vst [vmem:[%s2596_s23 + $0x818] sm:$0xff] %v414_v3  ;;  %v416_v5 = vld [vmem:[%s2587_s3 + $0x828] sm:$0xff] }
  0xc8   : > { %1439 = vst [vmem:[%s2596_s23 + $0x820] sm:$0xff] %v415_v4  ;;  %v417_v6 = vld [vmem:[%s2587_s3 + $0x830] sm:$0xff]  ;;  %v418_v7 = vld [vmem:[%s2587_s3 + $0x838] sm:$0xff]  ;;  %1440 = vst [vmem:[%s2596_s23 + $0x828] sm:$0xff] %v416_v5 }
  0xc9   : > { %1441 = vst [vmem:[%s2596_s23 + $0x830] sm:$0xff] %v417_v6  ;;  %1442 = vst [vmem:[%s2596_s23 + $0x838] sm:$0xff] %v418_v7  ;;  %v419_v8 = vld [vmem:[%s2587_s3 + $0x840] sm:$0xff]  ;;  %v420_v9 = vld [vmem:[%s2587_s3 + $0x848] sm:$0xff] }
  0xca   : > { %v421_v10 = vld [vmem:[%s2587_s3 + $0x850] sm:$0xff]  ;;  %1443 = vst [vmem:[%s2596_s23 + $0x840] sm:$0xff] %v419_v8  ;;  %1444 = vst [vmem:[%s2596_s23 + $0x848] sm:$0xff] %v420_v9  ;;  %v422_v11 = vld [vmem:[%s2587_s3 + $0x858] sm:$0xff] }
  0xcb   : > { %1445 = vst [vmem:[%s2596_s23 + $0x850] sm:$0xff] %v421_v10  ;;  %v423_v12 = vld [vmem:[%s2587_s3 + $0x860] sm:$0xff]  ;;  %v424_v13 = vld [vmem:[%s2587_s3 + $0x868] sm:$0xff]  ;;  %1446 = vst [vmem:[%s2596_s23 + $0x858] sm:$0xff] %v422_v11 }
  0xcc   : > { %1447 = vst [vmem:[%s2596_s23 + $0x860] sm:$0xff] %v423_v12  ;;  %1448 = vst [vmem:[%s2596_s23 + $0x868] sm:$0xff] %v424_v13  ;;  %v425_v14 = vld [vmem:[%s2587_s3 + $0x870] sm:$0xff]  ;;  %v426_v15 = vld [vmem:[%s2587_s3 + $0x878] sm:$0xff] }
  0xcd   : > { %v427_v16 = vld [vmem:[%s2587_s3 + $0x880] sm:$0xff]  ;;  %1449 = vst [vmem:[%s2596_s23 + $0x870] sm:$0xff] %v425_v14  ;;  %1450 = vst [vmem:[%s2596_s23 + $0x878] sm:$0xff] %v426_v15  ;;  %v428_v17 = vld [vmem:[%s2587_s3 + $0x888] sm:$0xff] }
  0xce   : > { %1451 = vst [vmem:[%s2596_s23 + $0x880] sm:$0xff] %v427_v16  ;;  %v429_v18 = vld [vmem:[%s2587_s3 + $0x890] sm:$0xff]  ;;  %v430_v19 = vld [vmem:[%s2587_s3 + $0x898] sm:$0xff]  ;;  %1452 = vst [vmem:[%s2596_s23 + $0x888] sm:$0xff] %v428_v17 }
  0xcf   : > { %1453 = vst [vmem:[%s2596_s23 + $0x890] sm:$0xff] %v429_v18  ;;  %1454 = vst [vmem:[%s2596_s23 + $0x898] sm:$0xff] %v430_v19  ;;  %v431_v20 = vld [vmem:[%s2587_s3 + $0x8a0] sm:$0xff]  ;;  %v432_v21 = vld [vmem:[%s2587_s3 + $0x8a8] sm:$0xff] }
  0xd0   : > { %v433_v22 = vld [vmem:[%s2587_s3 + $0x8b0] sm:$0xff]  ;;  %1455 = vst [vmem:[%s2596_s23 + $0x8a0] sm:$0xff] %v431_v20  ;;  %1456 = vst [vmem:[%s2596_s23 + $0x8a8] sm:$0xff] %v432_v21  ;;  %v434_v23 = vld [vmem:[%s2587_s3 + $0x8b8] sm:$0xff] }
  0xd1   : > { %1457 = vst [vmem:[%s2596_s23 + $0x8b0] sm:$0xff] %v433_v22  ;;  %v435_v24 = vld [vmem:[%s2587_s3 + $0x8c0] sm:$0xff]  ;;  %v436_v25 = vld [vmem:[%s2587_s3 + $0x8c8] sm:$0xff]  ;;  %1458 = vst [vmem:[%s2596_s23 + $0x8b8] sm:$0xff] %v434_v23 }
  0xd2   : > { %1459 = vst [vmem:[%s2596_s23 + $0x8c0] sm:$0xff] %v435_v24  ;;  %1460 = vst [vmem:[%s2596_s23 + $0x8c8] sm:$0xff] %v436_v25  ;;  %v437_v26 = vld [vmem:[%s2587_s3 + $0x8d0] sm:$0xff]  ;;  %v438_v27 = vld [vmem:[%s2587_s3 + $0x8d8] sm:$0xff] }
  0xd3   : > { %v439_v28 = vld [vmem:[%s2587_s3 + $0x8e0] sm:$0xff]  ;;  %1461 = vst [vmem:[%s2596_s23 + $0x8d0] sm:$0xff] %v437_v26  ;;  %1462 = vst [vmem:[%s2596_s23 + $0x8d8] sm:$0xff] %v438_v27  ;;  %v440_v29 = vld [vmem:[%s2587_s3 + $0x8e8] sm:$0xff] }
  0xd4   : > { %1463 = vst [vmem:[%s2596_s23 + $0x8e0] sm:$0xff] %v439_v28  ;;  %v441_v30 = vld [vmem:[%s2587_s3 + $0x8f0] sm:$0xff]  ;;  %v442_v31 = vld [vmem:[%s2587_s3 + $0x8f8] sm:$0xff]  ;;  %1464 = vst [vmem:[%s2596_s23 + $0x8e8] sm:$0xff] %v440_v29 }
  0xd5   : > { %1465 = vst [vmem:[%s2596_s23 + $0x8f0] sm:$0xff] %v441_v30  ;;  %1466 = vst [vmem:[%s2596_s23 + $0x8f8] sm:$0xff] %v442_v31  ;;  %v443_v32 = vld [vmem:[%s2587_s3 + $0x900] sm:$0xff]  ;;  %v444_v33 = vld [vmem:[%s2587_s3 + $0x908] sm:$0xff] }
  0xd6   : > { %v445_v34 = vld [vmem:[%s2587_s3 + $0x910] sm:$0xff]  ;;  %1467 = vst [vmem:[%s2596_s23 + $0x900] sm:$0xff] %v443_v32  ;;  %1468 = vst [vmem:[%s2596_s23 + $0x908] sm:$0xff] %v444_v33  ;;  %v446_v35 = vld [vmem:[%s2587_s3 + $0x918] sm:$0xff] }
  0xd7   : > { %1469 = vst [vmem:[%s2596_s23 + $0x910] sm:$0xff] %v445_v34  ;;  %v447_v36 = vld [vmem:[%s2587_s3 + $0x920] sm:$0xff]  ;;  %v448_v37 = vld [vmem:[%s2587_s3 + $0x928] sm:$0xff]  ;;  %1470 = vst [vmem:[%s2596_s23 + $0x918] sm:$0xff] %v446_v35 }
  0xd8   : > { %1471 = vst [vmem:[%s2596_s23 + $0x920] sm:$0xff] %v447_v36  ;;  %1472 = vst [vmem:[%s2596_s23 + $0x928] sm:$0xff] %v448_v37  ;;  %v449_v38 = vld [vmem:[%s2587_s3 + $0x930] sm:$0xff]  ;;  %v450_v39 = vld [vmem:[%s2587_s3 + $0x938] sm:$0xff] }
  0xd9   : > { %v451_v40 = vld [vmem:[%s2587_s3 + $0x940] sm:$0xff]  ;;  %1473 = vst [vmem:[%s2596_s23 + $0x930] sm:$0xff] %v449_v38  ;;  %1474 = vst [vmem:[%s2596_s23 + $0x938] sm:$0xff] %v450_v39  ;;  %v452_v41 = vld [vmem:[%s2587_s3 + $0x948] sm:$0xff] }
  0xda   : > { %1475 = vst [vmem:[%s2596_s23 + $0x940] sm:$0xff] %v451_v40  ;;  %v453_v42 = vld [vmem:[%s2587_s3 + $0x950] sm:$0xff]  ;;  %v454_v43 = vld [vmem:[%s2587_s3 + $0x958] sm:$0xff]  ;;  %1476 = vst [vmem:[%s2596_s23 + $0x948] sm:$0xff] %v452_v41 }
  0xdb   : > { %1477 = vst [vmem:[%s2596_s23 + $0x950] sm:$0xff] %v453_v42  ;;  %1478 = vst [vmem:[%s2596_s23 + $0x958] sm:$0xff] %v454_v43  ;;  %v455_v44 = vld [vmem:[%s2587_s3 + $0x960] sm:$0xff]  ;;  %v456_v45 = vld [vmem:[%s2587_s3 + $0x968] sm:$0xff] }
  0xdc   : > { %v457_v46 = vld [vmem:[%s2587_s3 + $0x970] sm:$0xff]  ;;  %1479 = vst [vmem:[%s2596_s23 + $0x960] sm:$0xff] %v455_v44  ;;  %1480 = vst [vmem:[%s2596_s23 + $0x968] sm:$0xff] %v456_v45  ;;  %v458_v47 = vld [vmem:[%s2587_s3 + $0x978] sm:$0xff] }
  0xdd   : > { %1481 = vst [vmem:[%s2596_s23 + $0x970] sm:$0xff] %v457_v46  ;;  %v459_v48 = vld [vmem:[%s2587_s3 + $0x980] sm:$0xff]  ;;  %v460_v49 = vld [vmem:[%s2587_s3 + $0x988] sm:$0xff]  ;;  %1482 = vst [vmem:[%s2596_s23 + $0x978] sm:$0xff] %v458_v47 }
  0xde   : > { %1483 = vst [vmem:[%s2596_s23 + $0x980] sm:$0xff] %v459_v48  ;;  %1484 = vst [vmem:[%s2596_s23 + $0x988] sm:$0xff] %v460_v49  ;;  %v461_v50 = vld [vmem:[%s2587_s3 + $0x990] sm:$0xff]  ;;  %v462_v51 = vld [vmem:[%s2587_s3 + $0x998] sm:$0xff] }
  0xdf   : > { %v463_v52 = vld [vmem:[%s2587_s3 + $0x9a0] sm:$0xff]  ;;  %1485 = vst [vmem:[%s2596_s23 + $0x990] sm:$0xff] %v461_v50  ;;  %1486 = vst [vmem:[%s2596_s23 + $0x998] sm:$0xff] %v462_v51  ;;  %v464_v53 = vld [vmem:[%s2587_s3 + $0x9a8] sm:$0xff] }
  0xe0   : > { %1487 = vst [vmem:[%s2596_s23 + $0x9a0] sm:$0xff] %v463_v52  ;;  %v465_v54 = vld [vmem:[%s2587_s3 + $0x9b0] sm:$0xff]  ;;  %v466_v55 = vld [vmem:[%s2587_s3 + $0x9b8] sm:$0xff]  ;;  %1488 = vst [vmem:[%s2596_s23 + $0x9a8] sm:$0xff] %v464_v53 }
  0xe1   : > { %1489 = vst [vmem:[%s2596_s23 + $0x9b0] sm:$0xff] %v465_v54  ;;  %1490 = vst [vmem:[%s2596_s23 + $0x9b8] sm:$0xff] %v466_v55  ;;  %v467_v56 = vld [vmem:[%s2587_s3 + $0x9c0] sm:$0xff]  ;;  %v468_v57 = vld [vmem:[%s2587_s3 + $0x9c8] sm:$0xff] }
  0xe2   : > { %v469_v58 = vld [vmem:[%s2587_s3 + $0x9d0] sm:$0xff]  ;;  %1491 = vst [vmem:[%s2596_s23 + $0x9c0] sm:$0xff] %v467_v56  ;;  %1492 = vst [vmem:[%s2596_s23 + $0x9c8] sm:$0xff] %v468_v57  ;;  %v470_v59 = vld [vmem:[%s2587_s3 + $0x9d8] sm:$0xff] }
  0xe3   : > { %1493 = vst [vmem:[%s2596_s23 + $0x9d0] sm:$0xff] %v469_v58  ;;  %v471_v60 = vld [vmem:[%s2587_s3 + $0x9e0] sm:$0xff]  ;;  %v472_v61 = vld [vmem:[%s2587_s3 + $0x9e8] sm:$0xff]  ;;  %1494 = vst [vmem:[%s2596_s23 + $0x9d8] sm:$0xff] %v470_v59 }
  0xe4   : > { %1495 = vst [vmem:[%s2596_s23 + $0x9e0] sm:$0xff] %v471_v60  ;;  %1496 = vst [vmem:[%s2596_s23 + $0x9e8] sm:$0xff] %v472_v61  ;;  %v473_v62 = vld [vmem:[%s2587_s3 + $0x9f0] sm:$0xff]  ;;  %v474_v63 = vld [vmem:[%s2587_s3 + $0x9f8] sm:$0xff] }
  0xe5   : > { %v475_v0 = vld [vmem:[%s2587_s3 + $0xa00] sm:$0xff]  ;;  %1497 = vst [vmem:[%s2596_s23 + $0x9f0] sm:$0xff] %v473_v62  ;;  %1498 = vst [vmem:[%s2596_s23 + $0x9f8] sm:$0xff] %v474_v63  ;;  %v476_v1 = vld [vmem:[%s2587_s3 + $0xa08] sm:$0xff] }
  0xe6   : > { %1499 = vst [vmem:[%s2596_s23 + $0xa00] sm:$0xff] %v475_v0  ;;  %v477_v2 = vld [vmem:[%s2587_s3 + $0xa10] sm:$0xff]  ;;  %v478_v3 = vld [vmem:[%s2587_s3 + $0xa18] sm:$0xff]  ;;  %1500 = vst [vmem:[%s2596_s23 + $0xa08] sm:$0xff] %v476_v1 }
  0xe7   : > { %1501 = vst [vmem:[%s2596_s23 + $0xa10] sm:$0xff] %v477_v2  ;;  %1502 = vst [vmem:[%s2596_s23 + $0xa18] sm:$0xff] %v478_v3  ;;  %v479_v4 = vld [vmem:[%s2587_s3 + $0xa20] sm:$0xff]  ;;  %v480_v5 = vld [vmem:[%s2587_s3 + $0xa28] sm:$0xff] }
  0xe8   : > { %v481_v6 = vld [vmem:[%s2587_s3 + $0xa30] sm:$0xff]  ;;  %1503 = vst [vmem:[%s2596_s23 + $0xa20] sm:$0xff] %v479_v4  ;;  %1504 = vst [vmem:[%s2596_s23 + $0xa28] sm:$0xff] %v480_v5  ;;  %v482_v7 = vld [vmem:[%s2587_s3 + $0xa38] sm:$0xff] }
  0xe9   : > { %1505 = vst [vmem:[%s2596_s23 + $0xa30] sm:$0xff] %v481_v6  ;;  %v483_v8 = vld [vmem:[%s2587_s3 + $0xa40] sm:$0xff]  ;;  %v484_v9 = vld [vmem:[%s2587_s3 + $0xa48] sm:$0xff]  ;;  %1506 = vst [vmem:[%s2596_s23 + $0xa38] sm:$0xff] %v482_v7 }
  0xea   : > { %1507 = vst [vmem:[%s2596_s23 + $0xa40] sm:$0xff] %v483_v8  ;;  %1508 = vst [vmem:[%s2596_s23 + $0xa48] sm:$0xff] %v484_v9  ;;  %v485_v10 = vld [vmem:[%s2587_s3 + $0xa50] sm:$0xff]  ;;  %v486_v11 = vld [vmem:[%s2587_s3 + $0xa58] sm:$0xff] }
  0xeb   : > { %v487_v12 = vld [vmem:[%s2587_s3 + $0xa60] sm:$0xff]  ;;  %1509 = vst [vmem:[%s2596_s23 + $0xa50] sm:$0xff] %v485_v10  ;;  %1510 = vst [vmem:[%s2596_s23 + $0xa58] sm:$0xff] %v486_v11  ;;  %v488_v13 = vld [vmem:[%s2587_s3 + $0xa68] sm:$0xff] }
  0xec   : > { %1511 = vst [vmem:[%s2596_s23 + $0xa60] sm:$0xff] %v487_v12  ;;  %v489_v14 = vld [vmem:[%s2587_s3 + $0xa70] sm:$0xff]  ;;  %v490_v15 = vld [vmem:[%s2587_s3 + $0xa78] sm:$0xff]  ;;  %1512 = vst [vmem:[%s2596_s23 + $0xa68] sm:$0xff] %v488_v13 }
  0xed   : > { %1513 = vst [vmem:[%s2596_s23 + $0xa70] sm:$0xff] %v489_v14  ;;  %1514 = vst [vmem:[%s2596_s23 + $0xa78] sm:$0xff] %v490_v15  ;;  %v491_v16 = vld [vmem:[%s2587_s3 + $0xa80] sm:$0xff]  ;;  %v492_v17 = vld [vmem:[%s2587_s3 + $0xa88] sm:$0xff] }
  0xee   : > { %v493_v18 = vld [vmem:[%s2587_s3 + $0xa90] sm:$0xff]  ;;  %1515 = vst [vmem:[%s2596_s23 + $0xa80] sm:$0xff] %v491_v16  ;;  %1516 = vst [vmem:[%s2596_s23 + $0xa88] sm:$0xff] %v492_v17  ;;  %v494_v19 = vld [vmem:[%s2587_s3 + $0xa98] sm:$0xff] }
  0xef   : > { %1517 = vst [vmem:[%s2596_s23 + $0xa90] sm:$0xff] %v493_v18  ;;  %v495_v20 = vld [vmem:[%s2587_s3 + $0xaa0] sm:$0xff]  ;;  %v496_v21 = vld [vmem:[%s2587_s3 + $0xaa8] sm:$0xff]  ;;  %1518 = vst [vmem:[%s2596_s23 + $0xa98] sm:$0xff] %v494_v19 }
  0xf0   : > { %1519 = vst [vmem:[%s2596_s23 + $0xaa0] sm:$0xff] %v495_v20  ;;  %1520 = vst [vmem:[%s2596_s23 + $0xaa8] sm:$0xff] %v496_v21  ;;  %v497_v22 = vld [vmem:[%s2587_s3 + $0xab0] sm:$0xff]  ;;  %v498_v23 = vld [vmem:[%s2587_s3 + $0xab8] sm:$0xff] }
  0xf1   : > { %v499_v24 = vld [vmem:[%s2587_s3 + $0xac0] sm:$0xff]  ;;  %1521 = vst [vmem:[%s2596_s23 + $0xab0] sm:$0xff] %v497_v22  ;;  %1522 = vst [vmem:[%s2596_s23 + $0xab8] sm:$0xff] %v498_v23  ;;  %v500_v25 = vld [vmem:[%s2587_s3 + $0xac8] sm:$0xff] }
  0xf2   : > { %1523 = vst [vmem:[%s2596_s23 + $0xac0] sm:$0xff] %v499_v24  ;;  %v501_v26 = vld [vmem:[%s2587_s3 + $0xad0] sm:$0xff]  ;;  %v502_v27 = vld [vmem:[%s2587_s3 + $0xad8] sm:$0xff]  ;;  %1524 = vst [vmem:[%s2596_s23 + $0xac8] sm:$0xff] %v500_v25 }
  0xf3   : > { %1525 = vst [vmem:[%s2596_s23 + $0xad0] sm:$0xff] %v501_v26  ;;  %1526 = vst [vmem:[%s2596_s23 + $0xad8] sm:$0xff] %v502_v27  ;;  %v503_v28 = vld [vmem:[%s2587_s3 + $0xae0] sm:$0xff]  ;;  %v504_v29 = vld [vmem:[%s2587_s3 + $0xae8] sm:$0xff] }
  0xf4   : > { %v505_v30 = vld [vmem:[%s2587_s3 + $0xaf0] sm:$0xff]  ;;  %1527 = vst [vmem:[%s2596_s23 + $0xae0] sm:$0xff] %v503_v28  ;;  %1528 = vst [vmem:[%s2596_s23 + $0xae8] sm:$0xff] %v504_v29  ;;  %v506_v31 = vld [vmem:[%s2587_s3 + $0xaf8] sm:$0xff] }
  0xf5   : > { %1529 = vst [vmem:[%s2596_s23 + $0xaf0] sm:$0xff] %v505_v30  ;;  %v507_v32 = vld [vmem:[%s2587_s3 + $0xb00] sm:$0xff]  ;;  %v508_v33 = vld [vmem:[%s2587_s3 + $0xb08] sm:$0xff]  ;;  %1530 = vst [vmem:[%s2596_s23 + $0xaf8] sm:$0xff] %v506_v31 }
  0xf6   : > { %1531 = vst [vmem:[%s2596_s23 + $0xb00] sm:$0xff] %v507_v32  ;;  %1532 = vst [vmem:[%s2596_s23 + $0xb08] sm:$0xff] %v508_v33  ;;  %v509_v34 = vld [vmem:[%s2587_s3 + $0xb10] sm:$0xff]  ;;  %v510_v35 = vld [vmem:[%s2587_s3 + $0xb18] sm:$0xff] }
  0xf7   : > { %v511_v36 = vld [vmem:[%s2587_s3 + $0xb20] sm:$0xff]  ;;  %1533 = vst [vmem:[%s2596_s23 + $0xb10] sm:$0xff] %v509_v34  ;;  %1534 = vst [vmem:[%s2596_s23 + $0xb18] sm:$0xff] %v510_v35  ;;  %v512_v37 = vld [vmem:[%s2587_s3 + $0xb28] sm:$0xff] }
  0xf8   : > { %1535 = vst [vmem:[%s2596_s23 + $0xb20] sm:$0xff] %v511_v36  ;;  %v513_v38 = vld [vmem:[%s2587_s3 + $0xb30] sm:$0xff]  ;;  %v514_v39 = vld [vmem:[%s2587_s3 + $0xb38] sm:$0xff]  ;;  %1536 = vst [vmem:[%s2596_s23 + $0xb28] sm:$0xff] %v512_v37 }
  0xf9   : > { %1537 = vst [vmem:[%s2596_s23 + $0xb30] sm:$0xff] %v513_v38  ;;  %1538 = vst [vmem:[%s2596_s23 + $0xb38] sm:$0xff] %v514_v39  ;;  %v515_v40 = vld [vmem:[%s2587_s3 + $0xb40] sm:$0xff]  ;;  %v516_v41 = vld [vmem:[%s2587_s3 + $0xb48] sm:$0xff] }
  0xfa   : > { %v517_v42 = vld [vmem:[%s2587_s3 + $0xb50] sm:$0xff]  ;;  %1539 = vst [vmem:[%s2596_s23 + $0xb40] sm:$0xff] %v515_v40  ;;  %1540 = vst [vmem:[%s2596_s23 + $0xb48] sm:$0xff] %v516_v41  ;;  %v518_v43 = vld [vmem:[%s2587_s3 + $0xb58] sm:$0xff] }
  0xfb   : > { %1541 = vst [vmem:[%s2596_s23 + $0xb50] sm:$0xff] %v517_v42  ;;  %v519_v44 = vld [vmem:[%s2587_s3 + $0xb60] sm:$0xff]  ;;  %v520_v45 = vld [vmem:[%s2587_s3 + $0xb68] sm:$0xff]  ;;  %1542 = vst [vmem:[%s2596_s23 + $0xb58] sm:$0xff] %v518_v43 }
  0xfc   : > { %1543 = vst [vmem:[%s2596_s23 + $0xb60] sm:$0xff] %v519_v44  ;;  %1544 = vst [vmem:[%s2596_s23 + $0xb68] sm:$0xff] %v520_v45  ;;  %v521_v46 = vld [vmem:[%s2587_s3 + $0xb70] sm:$0xff]  ;;  %v522_v47 = vld [vmem:[%s2587_s3 + $0xb78] sm:$0xff] }
  0xfd   : > { %v523_v48 = vld [vmem:[%s2587_s3 + $0xb80] sm:$0xff]  ;;  %1545 = vst [vmem:[%s2596_s23 + $0xb70] sm:$0xff] %v521_v46  ;;  %1546 = vst [vmem:[%s2596_s23 + $0xb78] sm:$0xff] %v522_v47  ;;  %v524_v49 = vld [vmem:[%s2587_s3 + $0xb88] sm:$0xff] }
  0xfe   : > { %1547 = vst [vmem:[%s2596_s23 + $0xb80] sm:$0xff] %v523_v48  ;;  %v525_v50 = vld [vmem:[%s2587_s3 + $0xb90] sm:$0xff]  ;;  %v526_v51 = vld [vmem:[%s2587_s3 + $0xb98] sm:$0xff]  ;;  %1548 = vst [vmem:[%s2596_s23 + $0xb88] sm:$0xff] %v524_v49 }
  0xff   : > { %1549 = vst [vmem:[%s2596_s23 + $0xb90] sm:$0xff] %v525_v50  ;;  %1550 = vst [vmem:[%s2596_s23 + $0xb98] sm:$0xff] %v526_v51  ;;  %v527_v52 = vld [vmem:[%s2587_s3 + $0xba0] sm:$0xff]  ;;  %v528_v53 = vld [vmem:[%s2587_s3 + $0xba8] sm:$0xff] }
 0x100   : > { %v529_v54 = vld [vmem:[%s2587_s3 + $0xbb0] sm:$0xff]  ;;  %1551 = vst [vmem:[%s2596_s23 + $0xba0] sm:$0xff] %v527_v52  ;;  %1552 = vst [vmem:[%s2596_s23 + $0xba8] sm:$0xff] %v528_v53  ;;  %v530_v55 = vld [vmem:[%s2587_s3 + $0xbb8] sm:$0xff] }
 0x101   : > { %1553 = vst [vmem:[%s2596_s23 + $0xbb0] sm:$0xff] %v529_v54  ;;  %v531_v56 = vld [vmem:[%s2587_s3 + $0xbc0] sm:$0xff]  ;;  %v532_v57 = vld [vmem:[%s2587_s3 + $0xbc8] sm:$0xff]  ;;  %1554 = vst [vmem:[%s2596_s23 + $0xbb8] sm:$0xff] %v530_v55 }
 0x102   : > { %1555 = vst [vmem:[%s2596_s23 + $0xbc0] sm:$0xff] %v531_v56  ;;  %1556 = vst [vmem:[%s2596_s23 + $0xbc8] sm:$0xff] %v532_v57  ;;  %v533_v58 = vld [vmem:[%s2587_s3 + $0xbd0] sm:$0xff]  ;;  %v534_v59 = vld [vmem:[%s2587_s3 + $0xbd8] sm:$0xff] }
 0x103   : > { %v535_v60 = vld [vmem:[%s2587_s3 + $0xbe0] sm:$0xff]  ;;  %1557 = vst [vmem:[%s2596_s23 + $0xbd0] sm:$0xff] %v533_v58  ;;  %1558 = vst [vmem:[%s2596_s23 + $0xbd8] sm:$0xff] %v534_v59  ;;  %v536_v61 = vld [vmem:[%s2587_s3 + $0xbe8] sm:$0xff] }
 0x104   : > { %1559 = vst [vmem:[%s2596_s23 + $0xbe0] sm:$0xff] %v535_v60  ;;  %v537_v62 = vld [vmem:[%s2587_s3 + $0xbf0] sm:$0xff]  ;;  %v538_v63 = vld [vmem:[%s2587_s3 + $0xbf8] sm:$0xff]  ;;  %1560 = vst [vmem:[%s2596_s23 + $0xbe8] sm:$0xff] %v536_v61 }
 0x105   : > { %1561 = vst [vmem:[%s2596_s23 + $0xbf0] sm:$0xff] %v537_v62  ;;  %1562 = vst [vmem:[%s2596_s23 + $0xbf8] sm:$0xff] %v538_v63  ;;  %v539_v0 = vld [vmem:[%s2587_s3 + $0xc00] sm:$0xff]  ;;  %v540_v1 = vld [vmem:[%s2587_s3 + $0xc08] sm:$0xff] }
 0x106   : > { %v541_v2 = vld [vmem:[%s2587_s3 + $0xc10] sm:$0xff]  ;;  %1563 = vst [vmem:[%s2596_s23 + $0xc00] sm:$0xff] %v539_v0  ;;  %1564 = vst [vmem:[%s2596_s23 + $0xc08] sm:$0xff] %v540_v1  ;;  %v542_v3 = vld [vmem:[%s2587_s3 + $0xc18] sm:$0xff] }
 0x107   : > { %1565 = vst [vmem:[%s2596_s23 + $0xc10] sm:$0xff] %v541_v2  ;;  %v543_v4 = vld [vmem:[%s2587_s3 + $0xc20] sm:$0xff]  ;;  %v544_v5 = vld [vmem:[%s2587_s3 + $0xc28] sm:$0xff]  ;;  %1566 = vst [vmem:[%s2596_s23 + $0xc18] sm:$0xff] %v542_v3 }
 0x108   : > { %1567 = vst [vmem:[%s2596_s23 + $0xc20] sm:$0xff] %v543_v4  ;;  %1568 = vst [vmem:[%s2596_s23 + $0xc28] sm:$0xff] %v544_v5  ;;  %v545_v6 = vld [vmem:[%s2587_s3 + $0xc30] sm:$0xff]  ;;  %v546_v7 = vld [vmem:[%s2587_s3 + $0xc38] sm:$0xff] }
 0x109   : > { %v547_v8 = vld [vmem:[%s2587_s3 + $0xc40] sm:$0xff]  ;;  %1569 = vst [vmem:[%s2596_s23 + $0xc30] sm:$0xff] %v545_v6  ;;  %1570 = vst [vmem:[%s2596_s23 + $0xc38] sm:$0xff] %v546_v7  ;;  %v548_v9 = vld [vmem:[%s2587_s3 + $0xc48] sm:$0xff] }
 0x10a   : > { %1571 = vst [vmem:[%s2596_s23 + $0xc40] sm:$0xff] %v547_v8  ;;  %v549_v10 = vld [vmem:[%s2587_s3 + $0xc50] sm:$0xff]  ;;  %v550_v11 = vld [vmem:[%s2587_s3 + $0xc58] sm:$0xff]  ;;  %1572 = vst [vmem:[%s2596_s23 + $0xc48] sm:$0xff] %v548_v9 }
 0x10b   : > { %1573 = vst [vmem:[%s2596_s23 + $0xc50] sm:$0xff] %v549_v10  ;;  %1574 = vst [vmem:[%s2596_s23 + $0xc58] sm:$0xff] %v550_v11  ;;  %v551_v12 = vld [vmem:[%s2587_s3 + $0xc60] sm:$0xff]  ;;  %v552_v13 = vld [vmem:[%s2587_s3 + $0xc68] sm:$0xff] }
 0x10c   : > { %v553_v14 = vld [vmem:[%s2587_s3 + $0xc70] sm:$0xff]  ;;  %1575 = vst [vmem:[%s2596_s23 + $0xc60] sm:$0xff] %v551_v12  ;;  %1576 = vst [vmem:[%s2596_s23 + $0xc68] sm:$0xff] %v552_v13  ;;  %v554_v15 = vld [vmem:[%s2587_s3 + $0xc78] sm:$0xff] }
 0x10d   : > { %1577 = vst [vmem:[%s2596_s23 + $0xc70] sm:$0xff] %v553_v14  ;;  %v555_v16 = vld [vmem:[%s2587_s3 + $0xc80] sm:$0xff]  ;;  %v556_v17 = vld [vmem:[%s2587_s3 + $0xc88] sm:$0xff]  ;;  %1578 = vst [vmem:[%s2596_s23 + $0xc78] sm:$0xff] %v554_v15 }
 0x10e   : > { %1579 = vst [vmem:[%s2596_s23 + $0xc80] sm:$0xff] %v555_v16  ;;  %1580 = vst [vmem:[%s2596_s23 + $0xc88] sm:$0xff] %v556_v17  ;;  %v557_v18 = vld [vmem:[%s2587_s3 + $0xc90] sm:$0xff]  ;;  %v558_v19 = vld [vmem:[%s2587_s3 + $0xc98] sm:$0xff] }
 0x10f   : > { %v559_v20 = vld [vmem:[%s2587_s3 + $0xca0] sm:$0xff]  ;;  %1581 = vst [vmem:[%s2596_s23 + $0xc90] sm:$0xff] %v557_v18  ;;  %1582 = vst [vmem:[%s2596_s23 + $0xc98] sm:$0xff] %v558_v19  ;;  %v560_v21 = vld [vmem:[%s2587_s3 + $0xca8] sm:$0xff] }
 0x110   : > { %1583 = vst [vmem:[%s2596_s23 + $0xca0] sm:$0xff] %v559_v20  ;;  %v561_v22 = vld [vmem:[%s2587_s3 + $0xcb0] sm:$0xff]  ;;  %v562_v23 = vld [vmem:[%s2587_s3 + $0xcb8] sm:$0xff]  ;;  %1584 = vst [vmem:[%s2596_s23 + $0xca8] sm:$0xff] %v560_v21 }
 0x111   : > { %1585 = vst [vmem:[%s2596_s23 + $0xcb0] sm:$0xff] %v561_v22  ;;  %1586 = vst [vmem:[%s2596_s23 + $0xcb8] sm:$0xff] %v562_v23  ;;  %v563_v24 = vld [vmem:[%s2587_s3 + $0xcc0] sm:$0xff]  ;;  %v564_v25 = vld [vmem:[%s2587_s3 + $0xcc8] sm:$0xff] }
 0x112   : > { %v565_v26 = vld [vmem:[%s2587_s3 + $0xcd0] sm:$0xff]  ;;  %1587 = vst [vmem:[%s2596_s23 + $0xcc0] sm:$0xff] %v563_v24  ;;  %1588 = vst [vmem:[%s2596_s23 + $0xcc8] sm:$0xff] %v564_v25  ;;  %v566_v27 = vld [vmem:[%s2587_s3 + $0xcd8] sm:$0xff] }
 0x113   : > { %1589 = vst [vmem:[%s2596_s23 + $0xcd0] sm:$0xff] %v565_v26  ;;  %v567_v28 = vld [vmem:[%s2587_s3 + $0xce0] sm:$0xff]  ;;  %v568_v29 = vld [vmem:[%s2587_s3 + $0xce8] sm:$0xff]  ;;  %1590 = vst [vmem:[%s2596_s23 + $0xcd8] sm:$0xff] %v566_v27 }
 0x114   : > { %1591 = vst [vmem:[%s2596_s23 + $0xce0] sm:$0xff] %v567_v28  ;;  %1592 = vst [vmem:[%s2596_s23 + $0xce8] sm:$0xff] %v568_v29  ;;  %v569_v30 = vld [vmem:[%s2587_s3 + $0xcf0] sm:$0xff]  ;;  %v570_v31 = vld [vmem:[%s2587_s3 + $0xcf8] sm:$0xff] }
 0x115   : > { %v571_v32 = vld [vmem:[%s2587_s3 + $0xd00] sm:$0xff]  ;;  %1593 = vst [vmem:[%s2596_s23 + $0xcf0] sm:$0xff] %v569_v30  ;;  %1594 = vst [vmem:[%s2596_s23 + $0xcf8] sm:$0xff] %v570_v31  ;;  %v572_v33 = vld [vmem:[%s2587_s3 + $0xd08] sm:$0xff] }
 0x116   : > { %1595 = vst [vmem:[%s2596_s23 + $0xd00] sm:$0xff] %v571_v32  ;;  %v573_v34 = vld [vmem:[%s2587_s3 + $0xd10] sm:$0xff]  ;;  %v574_v35 = vld [vmem:[%s2587_s3 + $0xd18] sm:$0xff]  ;;  %1596 = vst [vmem:[%s2596_s23 + $0xd08] sm:$0xff] %v572_v33 }
 0x117   : > { %1597 = vst [vmem:[%s2596_s23 + $0xd10] sm:$0xff] %v573_v34  ;;  %1598 = vst [vmem:[%s2596_s23 + $0xd18] sm:$0xff] %v574_v35  ;;  %v575_v36 = vld [vmem:[%s2587_s3 + $0xd20] sm:$0xff]  ;;  %v576_v37 = vld [vmem:[%s2587_s3 + $0xd28] sm:$0xff] }
 0x118   : > { %v577_v38 = vld [vmem:[%s2587_s3 + $0xd30] sm:$0xff]  ;;  %1599 = vst [vmem:[%s2596_s23 + $0xd20] sm:$0xff] %v575_v36  ;;  %1600 = vst [vmem:[%s2596_s23 + $0xd28] sm:$0xff] %v576_v37  ;;  %v578_v39 = vld [vmem:[%s2587_s3 + $0xd38] sm:$0xff] }
 0x119   : > { %1601 = vst [vmem:[%s2596_s23 + $0xd30] sm:$0xff] %v577_v38  ;;  %v579_v40 = vld [vmem:[%s2587_s3 + $0xd40] sm:$0xff]  ;;  %v580_v41 = vld [vmem:[%s2587_s3 + $0xd48] sm:$0xff]  ;;  %1602 = vst [vmem:[%s2596_s23 + $0xd38] sm:$0xff] %v578_v39 }
 0x11a   : > { %1603 = vst [vmem:[%s2596_s23 + $0xd40] sm:$0xff] %v579_v40  ;;  %1604 = vst [vmem:[%s2596_s23 + $0xd48] sm:$0xff] %v580_v41  ;;  %v581_v42 = vld [vmem:[%s2587_s3 + $0xd50] sm:$0xff]  ;;  %v582_v43 = vld [vmem:[%s2587_s3 + $0xd58] sm:$0xff] }
 0x11b   : > { %v583_v44 = vld [vmem:[%s2587_s3 + $0xd60] sm:$0xff]  ;;  %1605 = vst [vmem:[%s2596_s23 + $0xd50] sm:$0xff] %v581_v42  ;;  %1606 = vst [vmem:[%s2596_s23 + $0xd58] sm:$0xff] %v582_v43  ;;  %v584_v45 = vld [vmem:[%s2587_s3 + $0xd68] sm:$0xff] }
 0x11c   : > { %1607 = vst [vmem:[%s2596_s23 + $0xd60] sm:$0xff] %v583_v44  ;;  %v585_v46 = vld [vmem:[%s2587_s3 + $0xd70] sm:$0xff]  ;;  %v586_v47 = vld [vmem:[%s2587_s3 + $0xd78] sm:$0xff]  ;;  %1608 = vst [vmem:[%s2596_s23 + $0xd68] sm:$0xff] %v584_v45 }
 0x11d   : > { %1609 = vst [vmem:[%s2596_s23 + $0xd70] sm:$0xff] %v585_v46  ;;  %1610 = vst [vmem:[%s2596_s23 + $0xd78] sm:$0xff] %v586_v47  ;;  %v587_v48 = vld [vmem:[%s2587_s3 + $0xd80] sm:$0xff]  ;;  %v588_v49 = vld [vmem:[%s2587_s3 + $0xd88] sm:$0xff] }
 0x11e   : > { %v589_v50 = vld [vmem:[%s2587_s3 + $0xd90] sm:$0xff]  ;;  %1611 = vst [vmem:[%s2596_s23 + $0xd80] sm:$0xff] %v587_v48  ;;  %1612 = vst [vmem:[%s2596_s23 + $0xd88] sm:$0xff] %v588_v49  ;;  %v590_v51 = vld [vmem:[%s2587_s3 + $0xd98] sm:$0xff] }
 0x11f   : > { %1613 = vst [vmem:[%s2596_s23 + $0xd90] sm:$0xff] %v589_v50  ;;  %v591_v52 = vld [vmem:[%s2587_s3 + $0xda0] sm:$0xff]  ;;  %v592_v53 = vld [vmem:[%s2587_s3 + $0xda8] sm:$0xff]  ;;  %1614 = vst [vmem:[%s2596_s23 + $0xd98] sm:$0xff] %v590_v51 }
 0x120   : > { %1615 = vst [vmem:[%s2596_s23 + $0xda0] sm:$0xff] %v591_v52  ;;  %1616 = vst [vmem:[%s2596_s23 + $0xda8] sm:$0xff] %v592_v53  ;;  %v593_v54 = vld [vmem:[%s2587_s3 + $0xdb0] sm:$0xff]  ;;  %v594_v55 = vld [vmem:[%s2587_s3 + $0xdb8] sm:$0xff] }
 0x121   : > { %v595_v56 = vld [vmem:[%s2587_s3 + $0xdc0] sm:$0xff]  ;;  %1617 = vst [vmem:[%s2596_s23 + $0xdb0] sm:$0xff] %v593_v54  ;;  %1618 = vst [vmem:[%s2596_s23 + $0xdb8] sm:$0xff] %v594_v55  ;;  %v596_v57 = vld [vmem:[%s2587_s3 + $0xdc8] sm:$0xff] }
 0x122   : > { %1619 = vst [vmem:[%s2596_s23 + $0xdc0] sm:$0xff] %v595_v56  ;;  %v597_v58 = vld [vmem:[%s2587_s3 + $0xdd0] sm:$0xff]  ;;  %v598_v59 = vld [vmem:[%s2587_s3 + $0xdd8] sm:$0xff]  ;;  %1620 = vst [vmem:[%s2596_s23 + $0xdc8] sm:$0xff] %v596_v57 }
 0x123   : > { %1621 = vst [vmem:[%s2596_s23 + $0xdd0] sm:$0xff] %v597_v58  ;;  %1622 = vst [vmem:[%s2596_s23 + $0xdd8] sm:$0xff] %v598_v59  ;;  %v599_v60 = vld [vmem:[%s2587_s3 + $0xde0] sm:$0xff]  ;;  %v600_v61 = vld [vmem:[%s2587_s3 + $0xde8] sm:$0xff] }
 0x124   : > { %v601_v62 = vld [vmem:[%s2587_s3 + $0xdf0] sm:$0xff]  ;;  %1623 = vst [vmem:[%s2596_s23 + $0xde0] sm:$0xff] %v599_v60  ;;  %1624 = vst [vmem:[%s2596_s23 + $0xde8] sm:$0xff] %v600_v61  ;;  %v602_v63 = vld [vmem:[%s2587_s3 + $0xdf8] sm:$0xff] }
 0x125   : > { %1625 = vst [vmem:[%s2596_s23 + $0xdf0] sm:$0xff] %v601_v62  ;;  %v603_v0 = vld [vmem:[%s2587_s3 + $0xe00] sm:$0xff]  ;;  %v604_v1 = vld [vmem:[%s2587_s3 + $0xe08] sm:$0xff]  ;;  %1626 = vst [vmem:[%s2596_s23 + $0xdf8] sm:$0xff] %v602_v63 }
 0x126   : > { %1627 = vst [vmem:[%s2596_s23 + $0xe00] sm:$0xff] %v603_v0  ;;  %1628 = vst [vmem:[%s2596_s23 + $0xe08] sm:$0xff] %v604_v1  ;;  %v605_v2 = vld [vmem:[%s2587_s3 + $0xe10] sm:$0xff]  ;;  %v606_v3 = vld [vmem:[%s2587_s3 + $0xe18] sm:$0xff] }
 0x127   : > { %v607_v4 = vld [vmem:[%s2587_s3 + $0xe20] sm:$0xff]  ;;  %1629 = vst [vmem:[%s2596_s23 + $0xe10] sm:$0xff] %v605_v2  ;;  %1630 = vst [vmem:[%s2596_s23 + $0xe18] sm:$0xff] %v606_v3  ;;  %v608_v5 = vld [vmem:[%s2587_s3 + $0xe28] sm:$0xff] }
 0x128   : > { %1631 = vst [vmem:[%s2596_s23 + $0xe20] sm:$0xff] %v607_v4  ;;  %v609_v6 = vld [vmem:[%s2587_s3 + $0xe30] sm:$0xff]  ;;  %v610_v7 = vld [vmem:[%s2587_s3 + $0xe38] sm:$0xff]  ;;  %1632 = vst [vmem:[%s2596_s23 + $0xe28] sm:$0xff] %v608_v5 }
 0x129   : > { %1633 = vst [vmem:[%s2596_s23 + $0xe30] sm:$0xff] %v609_v6  ;;  %1634 = vst [vmem:[%s2596_s23 + $0xe38] sm:$0xff] %v610_v7  ;;  %v611_v8 = vld [vmem:[%s2587_s3 + $0xe40] sm:$0xff]  ;;  %v612_v9 = vld [vmem:[%s2587_s3 + $0xe48] sm:$0xff] }
 0x12a   : > { %v613_v10 = vld [vmem:[%s2587_s3 + $0xe50] sm:$0xff]  ;;  %1635 = vst [vmem:[%s2596_s23 + $0xe40] sm:$0xff] %v611_v8  ;;  %1636 = vst [vmem:[%s2596_s23 + $0xe48] sm:$0xff] %v612_v9  ;;  %v614_v11 = vld [vmem:[%s2587_s3 + $0xe58] sm:$0xff] }
 0x12b   : > { %1637 = vst [vmem:[%s2596_s23 + $0xe50] sm:$0xff] %v613_v10  ;;  %v615_v12 = vld [vmem:[%s2587_s3 + $0xe60] sm:$0xff]  ;;  %v616_v13 = vld [vmem:[%s2587_s3 + $0xe68] sm:$0xff]  ;;  %1638 = vst [vmem:[%s2596_s23 + $0xe58] sm:$0xff] %v614_v11 }
 0x12c   : > { %1639 = vst [vmem:[%s2596_s23 + $0xe60] sm:$0xff] %v615_v12  ;;  %1640 = vst [vmem:[%s2596_s23 + $0xe68] sm:$0xff] %v616_v13  ;;  %v617_v14 = vld [vmem:[%s2587_s3 + $0xe70] sm:$0xff]  ;;  %v618_v15 = vld [vmem:[%s2587_s3 + $0xe78] sm:$0xff] }
 0x12d   : > { %v619_v16 = vld [vmem:[%s2587_s3 + $0xe80] sm:$0xff]  ;;  %1641 = vst [vmem:[%s2596_s23 + $0xe70] sm:$0xff] %v617_v14  ;;  %1642 = vst [vmem:[%s2596_s23 + $0xe78] sm:$0xff] %v618_v15  ;;  %v620_v17 = vld [vmem:[%s2587_s3 + $0xe88] sm:$0xff] }
 0x12e   : > { %1643 = vst [vmem:[%s2596_s23 + $0xe80] sm:$0xff] %v619_v16  ;;  %v621_v18 = vld [vmem:[%s2587_s3 + $0xe90] sm:$0xff]  ;;  %v622_v19 = vld [vmem:[%s2587_s3 + $0xe98] sm:$0xff]  ;;  %1644 = vst [vmem:[%s2596_s23 + $0xe88] sm:$0xff] %v620_v17 }
 0x12f   : > { %1645 = vst [vmem:[%s2596_s23 + $0xe90] sm:$0xff] %v621_v18  ;;  %1646 = vst [vmem:[%s2596_s23 + $0xe98] sm:$0xff] %v622_v19  ;;  %v623_v20 = vld [vmem:[%s2587_s3 + $0xea0] sm:$0xff]  ;;  %v624_v21 = vld [vmem:[%s2587_s3 + $0xea8] sm:$0xff] }
 0x130   : > { %v625_v22 = vld [vmem:[%s2587_s3 + $0xeb0] sm:$0xff]  ;;  %1647 = vst [vmem:[%s2596_s23 + $0xea0] sm:$0xff] %v623_v20  ;;  %1648 = vst [vmem:[%s2596_s23 + $0xea8] sm:$0xff] %v624_v21  ;;  %v626_v23 = vld [vmem:[%s2587_s3 + $0xeb8] sm:$0xff] }
 0x131   : > { %1649 = vst [vmem:[%s2596_s23 + $0xeb0] sm:$0xff] %v625_v22  ;;  %v627_v24 = vld [vmem:[%s2587_s3 + $0xec0] sm:$0xff]  ;;  %v628_v25 = vld [vmem:[%s2587_s3 + $0xec8] sm:$0xff]  ;;  %1650 = vst [vmem:[%s2596_s23 + $0xeb8] sm:$0xff] %v626_v23 }
 0x132   : > { %1651 = vst [vmem:[%s2596_s23 + $0xec0] sm:$0xff] %v627_v24  ;;  %1652 = vst [vmem:[%s2596_s23 + $0xec8] sm:$0xff] %v628_v25  ;;  %v629_v26 = vld [vmem:[%s2587_s3 + $0xed0] sm:$0xff]  ;;  %v630_v27 = vld [vmem:[%s2587_s3 + $0xed8] sm:$0xff] }
 0x133   : > { %v631_v28 = vld [vmem:[%s2587_s3 + $0xee0] sm:$0xff]  ;;  %1653 = vst [vmem:[%s2596_s23 + $0xed0] sm:$0xff] %v629_v26  ;;  %1654 = vst [vmem:[%s2596_s23 + $0xed8] sm:$0xff] %v630_v27  ;;  %v632_v29 = vld [vmem:[%s2587_s3 + $0xee8] sm:$0xff] }
 0x134   : > { %1655 = vst [vmem:[%s2596_s23 + $0xee0] sm:$0xff] %v631_v28  ;;  %v633_v30 = vld [vmem:[%s2587_s3 + $0xef0] sm:$0xff]  ;;  %v634_v31 = vld [vmem:[%s2587_s3 + $0xef8] sm:$0xff]  ;;  %1656 = vst [vmem:[%s2596_s23 + $0xee8] sm:$0xff] %v632_v29 }
 0x135   : > { %1657 = vst [vmem:[%s2596_s23 + $0xef0] sm:$0xff] %v633_v30  ;;  %1658 = vst [vmem:[%s2596_s23 + $0xef8] sm:$0xff] %v634_v31  ;;  %v635_v32 = vld [vmem:[%s2587_s3 + $0xf00] sm:$0xff]  ;;  %v636_v33 = vld [vmem:[%s2587_s3 + $0xf08] sm:$0xff] }
 0x136   : > { %v637_v34 = vld [vmem:[%s2587_s3 + $0xf10] sm:$0xff]  ;;  %1659 = vst [vmem:[%s2596_s23 + $0xf00] sm:$0xff] %v635_v32  ;;  %1660 = vst [vmem:[%s2596_s23 + $0xf08] sm:$0xff] %v636_v33  ;;  %v638_v35 = vld [vmem:[%s2587_s3 + $0xf18] sm:$0xff] }
 0x137   : > { %1661 = vst [vmem:[%s2596_s23 + $0xf10] sm:$0xff] %v637_v34  ;;  %v639_v36 = vld [vmem:[%s2587_s3 + $0xf20] sm:$0xff]  ;;  %v640_v37 = vld [vmem:[%s2587_s3 + $0xf28] sm:$0xff]  ;;  %1662 = vst [vmem:[%s2596_s23 + $0xf18] sm:$0xff] %v638_v35 }
 0x138   : > { %1663 = vst [vmem:[%s2596_s23 + $0xf20] sm:$0xff] %v639_v36  ;;  %1664 = vst [vmem:[%s2596_s23 + $0xf28] sm:$0xff] %v640_v37  ;;  %v641_v38 = vld [vmem:[%s2587_s3 + $0xf30] sm:$0xff]  ;;  %v642_v39 = vld [vmem:[%s2587_s3 + $0xf38] sm:$0xff] }
 0x139   : > { %v643_v40 = vld [vmem:[%s2587_s3 + $0xf40] sm:$0xff]  ;;  %1665 = vst [vmem:[%s2596_s23 + $0xf30] sm:$0xff] %v641_v38  ;;  %1666 = vst [vmem:[%s2596_s23 + $0xf38] sm:$0xff] %v642_v39  ;;  %v644_v41 = vld [vmem:[%s2587_s3 + $0xf48] sm:$0xff] }
 0x13a   : > { %1667 = vst [vmem:[%s2596_s23 + $0xf40] sm:$0xff] %v643_v40  ;;  %v645_v42 = vld [vmem:[%s2587_s3 + $0xf50] sm:$0xff]  ;;  %v646_v43 = vld [vmem:[%s2587_s3 + $0xf58] sm:$0xff]  ;;  %1668 = vst [vmem:[%s2596_s23 + $0xf48] sm:$0xff] %v644_v41 }
 0x13b   : > { %1669 = vst [vmem:[%s2596_s23 + $0xf50] sm:$0xff] %v645_v42  ;;  %1670 = vst [vmem:[%s2596_s23 + $0xf58] sm:$0xff] %v646_v43  ;;  %v647_v44 = vld [vmem:[%s2587_s3 + $0xf60] sm:$0xff]  ;;  %v648_v45 = vld [vmem:[%s2587_s3 + $0xf68] sm:$0xff] }
 0x13c   : > { %v649_v46 = vld [vmem:[%s2587_s3 + $0xf70] sm:$0xff]  ;;  %1671 = vst [vmem:[%s2596_s23 + $0xf60] sm:$0xff] %v647_v44  ;;  %1672 = vst [vmem:[%s2596_s23 + $0xf68] sm:$0xff] %v648_v45  ;;  %v650_v47 = vld [vmem:[%s2587_s3 + $0xf78] sm:$0xff] }
 0x13d   : > { %1673 = vst [vmem:[%s2596_s23 + $0xf70] sm:$0xff] %v649_v46  ;;  %v651_v48 = vld [vmem:[%s2587_s3 + $0xf80] sm:$0xff]  ;;  %v652_v49 = vld [vmem:[%s2587_s3 + $0xf88] sm:$0xff]  ;;  %1674 = vst [vmem:[%s2596_s23 + $0xf78] sm:$0xff] %v650_v47 }
 0x13e   : > { %1675 = vst [vmem:[%s2596_s23 + $0xf80] sm:$0xff] %v651_v48  ;;  %1676 = vst [vmem:[%s2596_s23 + $0xf88] sm:$0xff] %v652_v49  ;;  %v653_v50 = vld [vmem:[%s2587_s3 + $0xf90] sm:$0xff]  ;;  %v654_v51 = vld [vmem:[%s2587_s3 + $0xf98] sm:$0xff] }
 0x13f   : > { %v655_v52 = vld [vmem:[%s2587_s3 + $0xfa0] sm:$0xff]  ;;  %1677 = vst [vmem:[%s2596_s23 + $0xf90] sm:$0xff] %v653_v50  ;;  %1678 = vst [vmem:[%s2596_s23 + $0xf98] sm:$0xff] %v654_v51  ;;  %v656_v53 = vld [vmem:[%s2587_s3 + $0xfa8] sm:$0xff] }
 0x140   : > { %1679 = vst [vmem:[%s2596_s23 + $0xfa0] sm:$0xff] %v655_v52  ;;  %v657_v54 = vld [vmem:[%s2587_s3 + $0xfb0] sm:$0xff]  ;;  %v658_v55 = vld [vmem:[%s2587_s3 + $0xfb8] sm:$0xff]  ;;  %1680 = vst [vmem:[%s2596_s23 + $0xfa8] sm:$0xff] %v656_v53 }
 0x141   : > { %1681 = vst [vmem:[%s2596_s23 + $0xfb0] sm:$0xff] %v657_v54  ;;  %1682 = vst [vmem:[%s2596_s23 + $0xfb8] sm:$0xff] %v658_v55  ;;  %v659_v56 = vld [vmem:[%s2587_s3 + $0xfc0] sm:$0xff]  ;;  %v660_v57 = vld [vmem:[%s2587_s3 + $0xfc8] sm:$0xff] }
 0x142   : > { %v661_v58 = vld [vmem:[%s2587_s3 + $0xfd0] sm:$0xff]  ;;  %1683 = vst [vmem:[%s2596_s23 + $0xfc0] sm:$0xff] %v659_v56  ;;  %1684 = vst [vmem:[%s2596_s23 + $0xfc8] sm:$0xff] %v660_v57  ;;  %v662_v59 = vld [vmem:[%s2587_s3 + $0xfd8] sm:$0xff] }
 0x143   : > { %1685 = vst [vmem:[%s2596_s23 + $0xfd0] sm:$0xff] %v661_v58  ;;  %v663_v60 = vld [vmem:[%s2587_s3 + $0xfe0] sm:$0xff]  ;;  %v664_v61 = vld [vmem:[%s2587_s3 + $0xfe8] sm:$0xff]  ;;  %1686 = vst [vmem:[%s2596_s23 + $0xfd8] sm:$0xff] %v662_v59 }
 0x144   : > { %1687 = vst [vmem:[%s2596_s23 + $0xfe0] sm:$0xff] %v663_v60  ;;  %1688 = vst [vmem:[%s2596_s23 + $0xfe8] sm:$0xff] %v664_v61  ;;  %v665_v62 = vld [vmem:[%s2587_s3 + $0xff0] sm:$0xff]  ;;  %v666_v63 = vld [vmem:[%s2587_s3 + $0xff8] sm:$0xff] }
 0x145   : > { %v667_v0 = vld [vmem:[%s2587_s3 + $0x1000] sm:$0xff]  ;;  %1689 = vst [vmem:[%s2596_s23 + $0xff0] sm:$0xff] %v665_v62  ;;  %1690 = vst [vmem:[%s2596_s23 + $0xff8] sm:$0xff] %v666_v63  ;;  %v668_v1 = vld [vmem:[%s2587_s3 + $0x1008] sm:$0xff] }
 0x146   : > { %1691 = vst [vmem:[%s2596_s23 + $0x1000] sm:$0xff] %v667_v0  ;;  %v669_v2 = vld [vmem:[%s2587_s3 + $0x1010] sm:$0xff]  ;;  %v670_v3 = vld [vmem:[%s2587_s3 + $0x1018] sm:$0xff]  ;;  %1692 = vst [vmem:[%s2596_s23 + $0x1008] sm:$0xff] %v668_v1 }
 0x147   : > { %1693 = vst [vmem:[%s2596_s23 + $0x1010] sm:$0xff] %v669_v2  ;;  %1694 = vst [vmem:[%s2596_s23 + $0x1018] sm:$0xff] %v670_v3  ;;  %v671_v4 = vld [vmem:[%s2587_s3 + $0x1020] sm:$0xff]  ;;  %v672_v5 = vld [vmem:[%s2587_s3 + $0x1028] sm:$0xff] }
 0x148   : > { %v673_v6 = vld [vmem:[%s2587_s3 + $0x1030] sm:$0xff]  ;;  %1695 = vst [vmem:[%s2596_s23 + $0x1020] sm:$0xff] %v671_v4  ;;  %1696 = vst [vmem:[%s2596_s23 + $0x1028] sm:$0xff] %v672_v5  ;;  %v674_v7 = vld [vmem:[%s2587_s3 + $0x1038] sm:$0xff] }
 0x149   : > { %1697 = vst [vmem:[%s2596_s23 + $0x1030] sm:$0xff] %v673_v6  ;;  %v675_v8 = vld [vmem:[%s2587_s3 + $0x1040] sm:$0xff]  ;;  %v676_v9 = vld [vmem:[%s2587_s3 + $0x1048] sm:$0xff]  ;;  %1698 = vst [vmem:[%s2596_s23 + $0x1038] sm:$0xff] %v674_v7 }
 0x14a   : > { %1699 = vst [vmem:[%s2596_s23 + $0x1040] sm:$0xff] %v675_v8  ;;  %1700 = vst [vmem:[%s2596_s23 + $0x1048] sm:$0xff] %v676_v9  ;;  %v677_v10 = vld [vmem:[%s2587_s3 + $0x1050] sm:$0xff]  ;;  %v678_v11 = vld [vmem:[%s2587_s3 + $0x1058] sm:$0xff] }
 0x14b   : > { %v679_v12 = vld [vmem:[%s2587_s3 + $0x1060] sm:$0xff]  ;;  %1701 = vst [vmem:[%s2596_s23 + $0x1050] sm:$0xff] %v677_v10  ;;  %1702 = vst [vmem:[%s2596_s23 + $0x1058] sm:$0xff] %v678_v11  ;;  %v680_v13 = vld [vmem:[%s2587_s3 + $0x1068] sm:$0xff] }
 0x14c   : > { %1703 = vst [vmem:[%s2596_s23 + $0x1060] sm:$0xff] %v679_v12  ;;  %v681_v14 = vld [vmem:[%s2587_s3 + $0x1070] sm:$0xff]  ;;  %v682_v15 = vld [vmem:[%s2587_s3 + $0x1078] sm:$0xff]  ;;  %1704 = vst [vmem:[%s2596_s23 + $0x1068] sm:$0xff] %v680_v13 }
 0x14d   : > { %1705 = vst [vmem:[%s2596_s23 + $0x1070] sm:$0xff] %v681_v14  ;;  %1706 = vst [vmem:[%s2596_s23 + $0x1078] sm:$0xff] %v682_v15  ;;  %v683_v16 = vld [vmem:[%s2587_s3 + $0x1080] sm:$0xff]  ;;  %v684_v17 = vld [vmem:[%s2587_s3 + $0x1088] sm:$0xff] }
 0x14e   : > { %v685_v18 = vld [vmem:[%s2587_s3 + $0x1090] sm:$0xff]  ;;  %1707 = vst [vmem:[%s2596_s23 + $0x1080] sm:$0xff] %v683_v16  ;;  %1708 = vst [vmem:[%s2596_s23 + $0x1088] sm:$0xff] %v684_v17  ;;  %v686_v19 = vld [vmem:[%s2587_s3 + $0x1098] sm:$0xff] }
 0x14f   : > { %1709 = vst [vmem:[%s2596_s23 + $0x1090] sm:$0xff] %v685_v18  ;;  %v687_v20 = vld [vmem:[%s2587_s3 + $0x10a0] sm:$0xff]  ;;  %v688_v21 = vld [vmem:[%s2587_s3 + $0x10a8] sm:$0xff]  ;;  %1710 = vst [vmem:[%s2596_s23 + $0x1098] sm:$0xff] %v686_v19 }
 0x150   : > { %1711 = vst [vmem:[%s2596_s23 + $0x10a0] sm:$0xff] %v687_v20  ;;  %1712 = vst [vmem:[%s2596_s23 + $0x10a8] sm:$0xff] %v688_v21  ;;  %v689_v22 = vld [vmem:[%s2587_s3 + $0x10b0] sm:$0xff]  ;;  %v690_v23 = vld [vmem:[%s2587_s3 + $0x10b8] sm:$0xff] }
 0x151   : > { %v691_v24 = vld [vmem:[%s2587_s3 + $0x10c0] sm:$0xff]  ;;  %1713 = vst [vmem:[%s2596_s23 + $0x10b0] sm:$0xff] %v689_v22  ;;  %1714 = vst [vmem:[%s2596_s23 + $0x10b8] sm:$0xff] %v690_v23  ;;  %v692_v25 = vld [vmem:[%s2587_s3 + $0x10c8] sm:$0xff] }
 0x152   : > { %1715 = vst [vmem:[%s2596_s23 + $0x10c0] sm:$0xff] %v691_v24  ;;  %v693_v26 = vld [vmem:[%s2587_s3 + $0x10d0] sm:$0xff]  ;;  %v694_v27 = vld [vmem:[%s2587_s3 + $0x10d8] sm:$0xff]  ;;  %1716 = vst [vmem:[%s2596_s23 + $0x10c8] sm:$0xff] %v692_v25 }
 0x153   : > { %1717 = vst [vmem:[%s2596_s23 + $0x10d0] sm:$0xff] %v693_v26  ;;  %1718 = vst [vmem:[%s2596_s23 + $0x10d8] sm:$0xff] %v694_v27  ;;  %v695_v28 = vld [vmem:[%s2587_s3 + $0x10e0] sm:$0xff]  ;;  %v696_v29 = vld [vmem:[%s2587_s3 + $0x10e8] sm:$0xff] }
 0x154   : > { %v697_v30 = vld [vmem:[%s2587_s3 + $0x10f0] sm:$0xff]  ;;  %1719 = vst [vmem:[%s2596_s23 + $0x10e0] sm:$0xff] %v695_v28  ;;  %1720 = vst [vmem:[%s2596_s23 + $0x10e8] sm:$0xff] %v696_v29  ;;  %v698_v31 = vld [vmem:[%s2587_s3 + $0x10f8] sm:$0xff] }
 0x155   : > { %1721 = vst [vmem:[%s2596_s23 + $0x10f0] sm:$0xff] %v697_v30  ;;  %v699_v32 = vld [vmem:[%s2587_s3 + $0x1100] sm:$0xff]  ;;  %v700_v33 = vld [vmem:[%s2587_s3 + $0x1108] sm:$0xff]  ;;  %1722 = vst [vmem:[%s2596_s23 + $0x10f8] sm:$0xff] %v698_v31 }
 0x156   : > { %1723 = vst [vmem:[%s2596_s23 + $0x1100] sm:$0xff] %v699_v32  ;;  %1724 = vst [vmem:[%s2596_s23 + $0x1108] sm:$0xff] %v700_v33  ;;  %v701_v34 = vld [vmem:[%s2587_s3 + $0x1110] sm:$0xff]  ;;  %v702_v35 = vld [vmem:[%s2587_s3 + $0x1118] sm:$0xff] }
 0x157   : > { %v703_v36 = vld [vmem:[%s2587_s3 + $0x1120] sm:$0xff]  ;;  %1725 = vst [vmem:[%s2596_s23 + $0x1110] sm:$0xff] %v701_v34  ;;  %1726 = vst [vmem:[%s2596_s23 + $0x1118] sm:$0xff] %v702_v35  ;;  %v704_v37 = vld [vmem:[%s2587_s3 + $0x1128] sm:$0xff] }
 0x158   : > { %1727 = vst [vmem:[%s2596_s23 + $0x1120] sm:$0xff] %v703_v36  ;;  %v705_v38 = vld [vmem:[%s2587_s3 + $0x1130] sm:$0xff]  ;;  %v706_v39 = vld [vmem:[%s2587_s3 + $0x1138] sm:$0xff]  ;;  %1728 = vst [vmem:[%s2596_s23 + $0x1128] sm:$0xff] %v704_v37 }
 0x159   : > { %1729 = vst [vmem:[%s2596_s23 + $0x1130] sm:$0xff] %v705_v38  ;;  %1730 = vst [vmem:[%s2596_s23 + $0x1138] sm:$0xff] %v706_v39  ;;  %v707_v40 = vld [vmem:[%s2587_s3 + $0x1140] sm:$0xff]  ;;  %v708_v41 = vld [vmem:[%s2587_s3 + $0x1148] sm:$0xff] }
 0x15a   : > { %v709_v42 = vld [vmem:[%s2587_s3 + $0x1150] sm:$0xff]  ;;  %1731 = vst [vmem:[%s2596_s23 + $0x1140] sm:$0xff] %v707_v40  ;;  %1732 = vst [vmem:[%s2596_s23 + $0x1148] sm:$0xff] %v708_v41  ;;  %v710_v43 = vld [vmem:[%s2587_s3 + $0x1158] sm:$0xff] }
 0x15b   : > { %1733 = vst [vmem:[%s2596_s23 + $0x1150] sm:$0xff] %v709_v42  ;;  %v711_v44 = vld [vmem:[%s2587_s3 + $0x1160] sm:$0xff]  ;;  %v712_v45 = vld [vmem:[%s2587_s3 + $0x1168] sm:$0xff]  ;;  %1734 = vst [vmem:[%s2596_s23 + $0x1158] sm:$0xff] %v710_v43 }
 0x15c   : > { %1735 = vst [vmem:[%s2596_s23 + $0x1160] sm:$0xff] %v711_v44  ;;  %1736 = vst [vmem:[%s2596_s23 + $0x1168] sm:$0xff] %v712_v45  ;;  %v713_v46 = vld [vmem:[%s2587_s3 + $0x1170] sm:$0xff]  ;;  %v714_v47 = vld [vmem:[%s2587_s3 + $0x1178] sm:$0xff] }
 0x15d   : > { %v715_v48 = vld [vmem:[%s2587_s3 + $0x1180] sm:$0xff]  ;;  %1737 = vst [vmem:[%s2596_s23 + $0x1170] sm:$0xff] %v713_v46  ;;  %1738 = vst [vmem:[%s2596_s23 + $0x1178] sm:$0xff] %v714_v47  ;;  %v716_v49 = vld [vmem:[%s2587_s3 + $0x1188] sm:$0xff] }
 0x15e   : > { %1739 = vst [vmem:[%s2596_s23 + $0x1180] sm:$0xff] %v715_v48  ;;  %v717_v50 = vld [vmem:[%s2587_s3 + $0x1190] sm:$0xff]  ;;  %v718_v51 = vld [vmem:[%s2587_s3 + $0x1198] sm:$0xff]  ;;  %1740 = vst [vmem:[%s2596_s23 + $0x1188] sm:$0xff] %v716_v49 }
 0x15f   : > { %1741 = vst [vmem:[%s2596_s23 + $0x1190] sm:$0xff] %v717_v50  ;;  %1742 = vst [vmem:[%s2596_s23 + $0x1198] sm:$0xff] %v718_v51  ;;  %v719_v52 = vld [vmem:[%s2587_s3 + $0x11a0] sm:$0xff]  ;;  %v720_v53 = vld [vmem:[%s2587_s3 + $0x11a8] sm:$0xff] }
 0x160   : > { %v721_v54 = vld [vmem:[%s2587_s3 + $0x11b0] sm:$0xff]  ;;  %1743 = vst [vmem:[%s2596_s23 + $0x11a0] sm:$0xff] %v719_v52  ;;  %1744 = vst [vmem:[%s2596_s23 + $0x11a8] sm:$0xff] %v720_v53  ;;  %v722_v55 = vld [vmem:[%s2587_s3 + $0x11b8] sm:$0xff] }
 0x161   : > { %1745 = vst [vmem:[%s2596_s23 + $0x11b0] sm:$0xff] %v721_v54  ;;  %v723_v56 = vld [vmem:[%s2587_s3 + $0x11c0] sm:$0xff]  ;;  %v724_v57 = vld [vmem:[%s2587_s3 + $0x11c8] sm:$0xff]  ;;  %1746 = vst [vmem:[%s2596_s23 + $0x11b8] sm:$0xff] %v722_v55 }
 0x162   : > { %1747 = vst [vmem:[%s2596_s23 + $0x11c0] sm:$0xff] %v723_v56  ;;  %1748 = vst [vmem:[%s2596_s23 + $0x11c8] sm:$0xff] %v724_v57  ;;  %v725_v58 = vld [vmem:[%s2587_s3 + $0x11d0] sm:$0xff]  ;;  %v726_v59 = vld [vmem:[%s2587_s3 + $0x11d8] sm:$0xff] }
 0x163   : > { %v727_v60 = vld [vmem:[%s2587_s3 + $0x11e0] sm:$0xff]  ;;  %1749 = vst [vmem:[%s2596_s23 + $0x11d0] sm:$0xff] %v725_v58  ;;  %1750 = vst [vmem:[%s2596_s23 + $0x11d8] sm:$0xff] %v726_v59  ;;  %v728_v61 = vld [vmem:[%s2587_s3 + $0x11e8] sm:$0xff] }
 0x164   : > { %1751 = vst [vmem:[%s2596_s23 + $0x11e0] sm:$0xff] %v727_v60  ;;  %v729_v62 = vld [vmem:[%s2587_s3 + $0x11f0] sm:$0xff]  ;;  %v730_v63 = vld [vmem:[%s2587_s3 + $0x11f8] sm:$0xff]  ;;  %1752 = vst [vmem:[%s2596_s23 + $0x11e8] sm:$0xff] %v728_v61 }
 0x165   : > { %1753 = vst [vmem:[%s2596_s23 + $0x11f0] sm:$0xff] %v729_v62  ;;  %1754 = vst [vmem:[%s2596_s23 + $0x11f8] sm:$0xff] %v730_v63  ;;  %v731_v0 = vld [vmem:[%s2587_s3 + $0x1200] sm:$0xff]  ;;  %v732_v1 = vld [vmem:[%s2587_s3 + $0x1208] sm:$0xff] }
 0x166   : > { %v733_v2 = vld [vmem:[%s2587_s3 + $0x1210] sm:$0xff]  ;;  %1755 = vst [vmem:[%s2596_s23 + $0x1200] sm:$0xff] %v731_v0  ;;  %1756 = vst [vmem:[%s2596_s23 + $0x1208] sm:$0xff] %v732_v1  ;;  %v734_v3 = vld [vmem:[%s2587_s3 + $0x1218] sm:$0xff] }
 0x167   : > { %1757 = vst [vmem:[%s2596_s23 + $0x1210] sm:$0xff] %v733_v2  ;;  %v735_v4 = vld [vmem:[%s2587_s3 + $0x1220] sm:$0xff]  ;;  %v736_v5 = vld [vmem:[%s2587_s3 + $0x1228] sm:$0xff]  ;;  %1758 = vst [vmem:[%s2596_s23 + $0x1218] sm:$0xff] %v734_v3 }
 0x168   : > { %1759 = vst [vmem:[%s2596_s23 + $0x1220] sm:$0xff] %v735_v4  ;;  %1760 = vst [vmem:[%s2596_s23 + $0x1228] sm:$0xff] %v736_v5  ;;  %v737_v6 = vld [vmem:[%s2587_s3 + $0x1230] sm:$0xff]  ;;  %v738_v7 = vld [vmem:[%s2587_s3 + $0x1238] sm:$0xff] }
 0x169   : > { %v739_v8 = vld [vmem:[%s2587_s3 + $0x1240] sm:$0xff]  ;;  %1761 = vst [vmem:[%s2596_s23 + $0x1230] sm:$0xff] %v737_v6  ;;  %1762 = vst [vmem:[%s2596_s23 + $0x1238] sm:$0xff] %v738_v7  ;;  %v740_v9 = vld [vmem:[%s2587_s3 + $0x1248] sm:$0xff] }
 0x16a   : > { %1763 = vst [vmem:[%s2596_s23 + $0x1240] sm:$0xff] %v739_v8  ;;  %v741_v10 = vld [vmem:[%s2587_s3 + $0x1250] sm:$0xff]  ;;  %v742_v11 = vld [vmem:[%s2587_s3 + $0x1258] sm:$0xff]  ;;  %1764 = vst [vmem:[%s2596_s23 + $0x1248] sm:$0xff] %v740_v9 }
 0x16b   : > { %1765 = vst [vmem:[%s2596_s23 + $0x1250] sm:$0xff] %v741_v10  ;;  %1766 = vst [vmem:[%s2596_s23 + $0x1258] sm:$0xff] %v742_v11  ;;  %v743_v12 = vld [vmem:[%s2587_s3 + $0x1260] sm:$0xff]  ;;  %v744_v13 = vld [vmem:[%s2587_s3 + $0x1268] sm:$0xff] }
 0x16c   : > { %v745_v14 = vld [vmem:[%s2587_s3 + $0x1270] sm:$0xff]  ;;  %1767 = vst [vmem:[%s2596_s23 + $0x1260] sm:$0xff] %v743_v12  ;;  %1768 = vst [vmem:[%s2596_s23 + $0x1268] sm:$0xff] %v744_v13  ;;  %v746_v15 = vld [vmem:[%s2587_s3 + $0x1278] sm:$0xff] }
 0x16d   : > { %1769 = vst [vmem:[%s2596_s23 + $0x1270] sm:$0xff] %v745_v14  ;;  %v747_v16 = vld [vmem:[%s2587_s3 + $0x1280] sm:$0xff]  ;;  %v748_v17 = vld [vmem:[%s2587_s3 + $0x1288] sm:$0xff]  ;;  %1770 = vst [vmem:[%s2596_s23 + $0x1278] sm:$0xff] %v746_v15 }
 0x16e   : > { %1771 = vst [vmem:[%s2596_s23 + $0x1280] sm:$0xff] %v747_v16  ;;  %1772 = vst [vmem:[%s2596_s23 + $0x1288] sm:$0xff] %v748_v17  ;;  %v749_v18 = vld [vmem:[%s2587_s3 + $0x1290] sm:$0xff]  ;;  %v750_v19 = vld [vmem:[%s2587_s3 + $0x1298] sm:$0xff] }
 0x16f   : > { %v751_v20 = vld [vmem:[%s2587_s3 + $0x12a0] sm:$0xff]  ;;  %1773 = vst [vmem:[%s2596_s23 + $0x1290] sm:$0xff] %v749_v18  ;;  %1774 = vst [vmem:[%s2596_s23 + $0x1298] sm:$0xff] %v750_v19  ;;  %v752_v21 = vld [vmem:[%s2587_s3 + $0x12a8] sm:$0xff] }
 0x170   : > { %1775 = vst [vmem:[%s2596_s23 + $0x12a0] sm:$0xff] %v751_v20  ;;  %v753_v22 = vld [vmem:[%s2587_s3 + $0x12b0] sm:$0xff]  ;;  %v754_v23 = vld [vmem:[%s2587_s3 + $0x12b8] sm:$0xff]  ;;  %1776 = vst [vmem:[%s2596_s23 + $0x12a8] sm:$0xff] %v752_v21 }
 0x171   : > { %1777 = vst [vmem:[%s2596_s23 + $0x12b0] sm:$0xff] %v753_v22  ;;  %1778 = vst [vmem:[%s2596_s23 + $0x12b8] sm:$0xff] %v754_v23  ;;  %v755_v24 = vld [vmem:[%s2587_s3 + $0x12c0] sm:$0xff]  ;;  %v756_v25 = vld [vmem:[%s2587_s3 + $0x12c8] sm:$0xff] }
 0x172   : > { %v757_v26 = vld [vmem:[%s2587_s3 + $0x12d0] sm:$0xff]  ;;  %1779 = vst [vmem:[%s2596_s23 + $0x12c0] sm:$0xff] %v755_v24  ;;  %1780 = vst [vmem:[%s2596_s23 + $0x12c8] sm:$0xff] %v756_v25  ;;  %v758_v27 = vld [vmem:[%s2587_s3 + $0x12d8] sm:$0xff] }
 0x173   : > { %1781 = vst [vmem:[%s2596_s23 + $0x12d0] sm:$0xff] %v757_v26  ;;  %v759_v28 = vld [vmem:[%s2587_s3 + $0x12e0] sm:$0xff]  ;;  %v760_v29 = vld [vmem:[%s2587_s3 + $0x12e8] sm:$0xff]  ;;  %1782 = vst [vmem:[%s2596_s23 + $0x12d8] sm:$0xff] %v758_v27 }
 0x174   : > { %1783 = vst [vmem:[%s2596_s23 + $0x12e0] sm:$0xff] %v759_v28  ;;  %1784 = vst [vmem:[%s2596_s23 + $0x12e8] sm:$0xff] %v760_v29  ;;  %v761_v30 = vld [vmem:[%s2587_s3 + $0x12f0] sm:$0xff]  ;;  %v762_v31 = vld [vmem:[%s2587_s3 + $0x12f8] sm:$0xff] }
 0x175   : > { %v763_v32 = vld [vmem:[%s2587_s3 + $0x1300] sm:$0xff]  ;;  %1785 = vst [vmem:[%s2596_s23 + $0x12f0] sm:$0xff] %v761_v30  ;;  %1786 = vst [vmem:[%s2596_s23 + $0x12f8] sm:$0xff] %v762_v31  ;;  %v764_v33 = vld [vmem:[%s2587_s3 + $0x1308] sm:$0xff] }
 0x176   : > { %1787 = vst [vmem:[%s2596_s23 + $0x1300] sm:$0xff] %v763_v32  ;;  %v765_v34 = vld [vmem:[%s2587_s3 + $0x1310] sm:$0xff]  ;;  %v766_v35 = vld [vmem:[%s2587_s3 + $0x1318] sm:$0xff]  ;;  %1788 = vst [vmem:[%s2596_s23 + $0x1308] sm:$0xff] %v764_v33 }
 0x177   : > { %1789 = vst [vmem:[%s2596_s23 + $0x1310] sm:$0xff] %v765_v34  ;;  %1790 = vst [vmem:[%s2596_s23 + $0x1318] sm:$0xff] %v766_v35  ;;  %v767_v36 = vld [vmem:[%s2587_s3 + $0x1320] sm:$0xff]  ;;  %v768_v37 = vld [vmem:[%s2587_s3 + $0x1328] sm:$0xff] }
 0x178   : > { %v769_v38 = vld [vmem:[%s2587_s3 + $0x1330] sm:$0xff]  ;;  %1791 = vst [vmem:[%s2596_s23 + $0x1320] sm:$0xff] %v767_v36  ;;  %1792 = vst [vmem:[%s2596_s23 + $0x1328] sm:$0xff] %v768_v37  ;;  %v770_v39 = vld [vmem:[%s2587_s3 + $0x1338] sm:$0xff] }
 0x179   : > { %1793 = vst [vmem:[%s2596_s23 + $0x1330] sm:$0xff] %v769_v38  ;;  %v771_v40 = vld [vmem:[%s2587_s3 + $0x1340] sm:$0xff]  ;;  %v772_v41 = vld [vmem:[%s2587_s3 + $0x1348] sm:$0xff]  ;;  %1794 = vst [vmem:[%s2596_s23 + $0x1338] sm:$0xff] %v770_v39 }
 0x17a   : > { %1795 = vst [vmem:[%s2596_s23 + $0x1340] sm:$0xff] %v771_v40  ;;  %1796 = vst [vmem:[%s2596_s23 + $0x1348] sm:$0xff] %v772_v41  ;;  %v773_v42 = vld [vmem:[%s2587_s3 + $0x1350] sm:$0xff]  ;;  %v774_v43 = vld [vmem:[%s2587_s3 + $0x1358] sm:$0xff] }
 0x17b   : > { %v775_v44 = vld [vmem:[%s2587_s3 + $0x1360] sm:$0xff]  ;;  %1797 = vst [vmem:[%s2596_s23 + $0x1350] sm:$0xff] %v773_v42  ;;  %1798 = vst [vmem:[%s2596_s23 + $0x1358] sm:$0xff] %v774_v43  ;;  %v776_v45 = vld [vmem:[%s2587_s3 + $0x1368] sm:$0xff] }
 0x17c   : > { %1799 = vst [vmem:[%s2596_s23 + $0x1360] sm:$0xff] %v775_v44  ;;  %v777_v46 = vld [vmem:[%s2587_s3 + $0x1370] sm:$0xff]  ;;  %v778_v47 = vld [vmem:[%s2587_s3 + $0x1378] sm:$0xff]  ;;  %1800 = vst [vmem:[%s2596_s23 + $0x1368] sm:$0xff] %v776_v45 }
 0x17d   : > { %1801 = vst [vmem:[%s2596_s23 + $0x1370] sm:$0xff] %v777_v46  ;;  %1802 = vst [vmem:[%s2596_s23 + $0x1378] sm:$0xff] %v778_v47  ;;  %v779_v48 = vld [vmem:[%s2587_s3 + $0x1380] sm:$0xff]  ;;  %v780_v49 = vld [vmem:[%s2587_s3 + $0x1388] sm:$0xff] }
 0x17e   : > { %v781_v50 = vld [vmem:[%s2587_s3 + $0x1390] sm:$0xff]  ;;  %1803 = vst [vmem:[%s2596_s23 + $0x1380] sm:$0xff] %v779_v48  ;;  %1804 = vst [vmem:[%s2596_s23 + $0x1388] sm:$0xff] %v780_v49  ;;  %v782_v51 = vld [vmem:[%s2587_s3 + $0x1398] sm:$0xff] }
 0x17f   : > { %1805 = vst [vmem:[%s2596_s23 + $0x1390] sm:$0xff] %v781_v50  ;;  %v783_v52 = vld [vmem:[%s2587_s3 + $0x13a0] sm:$0xff]  ;;  %v784_v53 = vld [vmem:[%s2587_s3 + $0x13a8] sm:$0xff]  ;;  %1806 = vst [vmem:[%s2596_s23 + $0x1398] sm:$0xff] %v782_v51 }
 0x180   : > { %1807 = vst [vmem:[%s2596_s23 + $0x13a0] sm:$0xff] %v783_v52  ;;  %1808 = vst [vmem:[%s2596_s23 + $0x13a8] sm:$0xff] %v784_v53  ;;  %v785_v54 = vld [vmem:[%s2587_s3 + $0x13b0] sm:$0xff]  ;;  %v786_v55 = vld [vmem:[%s2587_s3 + $0x13b8] sm:$0xff] }
 0x181   : > { %v787_v56 = vld [vmem:[%s2587_s3 + $0x13c0] sm:$0xff]  ;;  %1809 = vst [vmem:[%s2596_s23 + $0x13b0] sm:$0xff] %v785_v54  ;;  %1810 = vst [vmem:[%s2596_s23 + $0x13b8] sm:$0xff] %v786_v55  ;;  %v788_v57 = vld [vmem:[%s2587_s3 + $0x13c8] sm:$0xff] }
 0x182   : > { %1811 = vst [vmem:[%s2596_s23 + $0x13c0] sm:$0xff] %v787_v56  ;;  %v789_v58 = vld [vmem:[%s2587_s3 + $0x13d0] sm:$0xff]  ;;  %v790_v59 = vld [vmem:[%s2587_s3 + $0x13d8] sm:$0xff]  ;;  %1812 = vst [vmem:[%s2596_s23 + $0x13c8] sm:$0xff] %v788_v57 }
 0x183   : > { %1813 = vst [vmem:[%s2596_s23 + $0x13d0] sm:$0xff] %v789_v58  ;;  %1814 = vst [vmem:[%s2596_s23 + $0x13d8] sm:$0xff] %v790_v59  ;;  %v791_v60 = vld [vmem:[%s2587_s3 + $0x13e0] sm:$0xff]  ;;  %v792_v61 = vld [vmem:[%s2587_s3 + $0x13e8] sm:$0xff] }
 0x184   : > { %v793_v62 = vld [vmem:[%s2587_s3 + $0x13f0] sm:$0xff]  ;;  %1815 = vst [vmem:[%s2596_s23 + $0x13e0] sm:$0xff] %v791_v60  ;;  %1816 = vst [vmem:[%s2596_s23 + $0x13e8] sm:$0xff] %v792_v61  ;;  %v794_v63 = vld [vmem:[%s2587_s3 + $0x13f8] sm:$0xff] }
 0x185   : > { %1817 = vst [vmem:[%s2596_s23 + $0x13f0] sm:$0xff] %v793_v62  ;;  %v795_v0 = vld [vmem:[%s2587_s3 + $0x1400] sm:$0xff]  ;;  %v796_v1 = vld [vmem:[%s2587_s3 + $0x1408] sm:$0xff]  ;;  %1818 = vst [vmem:[%s2596_s23 + $0x13f8] sm:$0xff] %v794_v63 }
 0x186   : > { %1819 = vst [vmem:[%s2596_s23 + $0x1400] sm:$0xff] %v795_v0  ;;  %1820 = vst [vmem:[%s2596_s23 + $0x1408] sm:$0xff] %v796_v1  ;;  %v797_v2 = vld [vmem:[%s2587_s3 + $0x1410] sm:$0xff]  ;;  %v798_v3 = vld [vmem:[%s2587_s3 + $0x1418] sm:$0xff] }
 0x187   : > { %v799_v4 = vld [vmem:[%s2587_s3 + $0x1420] sm:$0xff]  ;;  %1821 = vst [vmem:[%s2596_s23 + $0x1410] sm:$0xff] %v797_v2  ;;  %1822 = vst [vmem:[%s2596_s23 + $0x1418] sm:$0xff] %v798_v3  ;;  %v800_v5 = vld [vmem:[%s2587_s3 + $0x1428] sm:$0xff] }
 0x188   : > { %1823 = vst [vmem:[%s2596_s23 + $0x1420] sm:$0xff] %v799_v4  ;;  %v801_v6 = vld [vmem:[%s2587_s3 + $0x1430] sm:$0xff]  ;;  %v802_v7 = vld [vmem:[%s2587_s3 + $0x1438] sm:$0xff]  ;;  %1824 = vst [vmem:[%s2596_s23 + $0x1428] sm:$0xff] %v800_v5 }
 0x189   : > { %1825 = vst [vmem:[%s2596_s23 + $0x1430] sm:$0xff] %v801_v6  ;;  %1826 = vst [vmem:[%s2596_s23 + $0x1438] sm:$0xff] %v802_v7  ;;  %v803_v8 = vld [vmem:[%s2587_s3 + $0x1440] sm:$0xff]  ;;  %v804_v9 = vld [vmem:[%s2587_s3 + $0x1448] sm:$0xff] }
 0x18a   : > { %v805_v10 = vld [vmem:[%s2587_s3 + $0x1450] sm:$0xff]  ;;  %1827 = vst [vmem:[%s2596_s23 + $0x1440] sm:$0xff] %v803_v8  ;;  %1828 = vst [vmem:[%s2596_s23 + $0x1448] sm:$0xff] %v804_v9  ;;  %v806_v11 = vld [vmem:[%s2587_s3 + $0x1458] sm:$0xff] }
 0x18b   : > { %1829 = vst [vmem:[%s2596_s23 + $0x1450] sm:$0xff] %v805_v10  ;;  %v807_v12 = vld [vmem:[%s2587_s3 + $0x1460] sm:$0xff]  ;;  %v808_v13 = vld [vmem:[%s2587_s3 + $0x1468] sm:$0xff]  ;;  %1830 = vst [vmem:[%s2596_s23 + $0x1458] sm:$0xff] %v806_v11 }
 0x18c   : > { %1831 = vst [vmem:[%s2596_s23 + $0x1460] sm:$0xff] %v807_v12  ;;  %1832 = vst [vmem:[%s2596_s23 + $0x1468] sm:$0xff] %v808_v13  ;;  %v809_v14 = vld [vmem:[%s2587_s3 + $0x1470] sm:$0xff]  ;;  %v810_v15 = vld [vmem:[%s2587_s3 + $0x1478] sm:$0xff] }
 0x18d   : > { %v811_v16 = vld [vmem:[%s2587_s3 + $0x1480] sm:$0xff]  ;;  %1833 = vst [vmem:[%s2596_s23 + $0x1470] sm:$0xff] %v809_v14  ;;  %1834 = vst [vmem:[%s2596_s23 + $0x1478] sm:$0xff] %v810_v15  ;;  %v812_v17 = vld [vmem:[%s2587_s3 + $0x1488] sm:$0xff] }
 0x18e   : > { %1835 = vst [vmem:[%s2596_s23 + $0x1480] sm:$0xff] %v811_v16  ;;  %v813_v18 = vld [vmem:[%s2587_s3 + $0x1490] sm:$0xff]  ;;  %v814_v19 = vld [vmem:[%s2587_s3 + $0x1498] sm:$0xff]  ;;  %1836 = vst [vmem:[%s2596_s23 + $0x1488] sm:$0xff] %v812_v17 }
 0x18f   : > { %1837 = vst [vmem:[%s2596_s23 + $0x1490] sm:$0xff] %v813_v18  ;;  %1838 = vst [vmem:[%s2596_s23 + $0x1498] sm:$0xff] %v814_v19  ;;  %v815_v20 = vld [vmem:[%s2587_s3 + $0x14a0] sm:$0xff]  ;;  %v816_v21 = vld [vmem:[%s2587_s3 + $0x14a8] sm:$0xff] }
 0x190   : > { %v817_v22 = vld [vmem:[%s2587_s3 + $0x14b0] sm:$0xff]  ;;  %1839 = vst [vmem:[%s2596_s23 + $0x14a0] sm:$0xff] %v815_v20  ;;  %1840 = vst [vmem:[%s2596_s23 + $0x14a8] sm:$0xff] %v816_v21  ;;  %v818_v23 = vld [vmem:[%s2587_s3 + $0x14b8] sm:$0xff] }
 0x191   : > { %1841 = vst [vmem:[%s2596_s23 + $0x14b0] sm:$0xff] %v817_v22  ;;  %v819_v24 = vld [vmem:[%s2587_s3 + $0x14c0] sm:$0xff]  ;;  %v820_v25 = vld [vmem:[%s2587_s3 + $0x14c8] sm:$0xff]  ;;  %1842 = vst [vmem:[%s2596_s23 + $0x14b8] sm:$0xff] %v818_v23 }
 0x192   : > { %1843 = vst [vmem:[%s2596_s23 + $0x14c0] sm:$0xff] %v819_v24  ;;  %1844 = vst [vmem:[%s2596_s23 + $0x14c8] sm:$0xff] %v820_v25  ;;  %v821_v26 = vld [vmem:[%s2587_s3 + $0x14d0] sm:$0xff]  ;;  %v822_v27 = vld [vmem:[%s2587_s3 + $0x14d8] sm:$0xff] }
 0x193   : > { %v823_v28 = vld [vmem:[%s2587_s3 + $0x14e0] sm:$0xff]  ;;  %1845 = vst [vmem:[%s2596_s23 + $0x14d0] sm:$0xff] %v821_v26  ;;  %1846 = vst [vmem:[%s2596_s23 + $0x14d8] sm:$0xff] %v822_v27  ;;  %v824_v29 = vld [vmem:[%s2587_s3 + $0x14e8] sm:$0xff] }
 0x194   : > { %1847 = vst [vmem:[%s2596_s23 + $0x14e0] sm:$0xff] %v823_v28  ;;  %v825_v30 = vld [vmem:[%s2587_s3 + $0x14f0] sm:$0xff]  ;;  %v826_v31 = vld [vmem:[%s2587_s3 + $0x14f8] sm:$0xff]  ;;  %1848 = vst [vmem:[%s2596_s23 + $0x14e8] sm:$0xff] %v824_v29 }
 0x195   : > { %1849 = vst [vmem:[%s2596_s23 + $0x14f0] sm:$0xff] %v825_v30  ;;  %1850 = vst [vmem:[%s2596_s23 + $0x14f8] sm:$0xff] %v826_v31  ;;  %v827_v32 = vld [vmem:[%s2587_s3 + $0x1500] sm:$0xff]  ;;  %v828_v33 = vld [vmem:[%s2587_s3 + $0x1508] sm:$0xff] }
 0x196   : > { %v829_v34 = vld [vmem:[%s2587_s3 + $0x1510] sm:$0xff]  ;;  %1851 = vst [vmem:[%s2596_s23 + $0x1500] sm:$0xff] %v827_v32  ;;  %1852 = vst [vmem:[%s2596_s23 + $0x1508] sm:$0xff] %v828_v33  ;;  %v830_v35 = vld [vmem:[%s2587_s3 + $0x1518] sm:$0xff] }
 0x197   : > { %1853 = vst [vmem:[%s2596_s23 + $0x1510] sm:$0xff] %v829_v34  ;;  %v831_v36 = vld [vmem:[%s2587_s3 + $0x1520] sm:$0xff]  ;;  %v832_v37 = vld [vmem:[%s2587_s3 + $0x1528] sm:$0xff]  ;;  %1854 = vst [vmem:[%s2596_s23 + $0x1518] sm:$0xff] %v830_v35 }
 0x198   : > { %1855 = vst [vmem:[%s2596_s23 + $0x1520] sm:$0xff] %v831_v36  ;;  %1856 = vst [vmem:[%s2596_s23 + $0x1528] sm:$0xff] %v832_v37  ;;  %v833_v38 = vld [vmem:[%s2587_s3 + $0x1530] sm:$0xff]  ;;  %v834_v39 = vld [vmem:[%s2587_s3 + $0x1538] sm:$0xff] }
 0x199   : > { %v835_v40 = vld [vmem:[%s2587_s3 + $0x1540] sm:$0xff]  ;;  %1857 = vst [vmem:[%s2596_s23 + $0x1530] sm:$0xff] %v833_v38  ;;  %1858 = vst [vmem:[%s2596_s23 + $0x1538] sm:$0xff] %v834_v39  ;;  %v836_v41 = vld [vmem:[%s2587_s3 + $0x1548] sm:$0xff] }
 0x19a   : > { %1859 = vst [vmem:[%s2596_s23 + $0x1540] sm:$0xff] %v835_v40  ;;  %v837_v42 = vld [vmem:[%s2587_s3 + $0x1550] sm:$0xff]  ;;  %v838_v43 = vld [vmem:[%s2587_s3 + $0x1558] sm:$0xff]  ;;  %1860 = vst [vmem:[%s2596_s23 + $0x1548] sm:$0xff] %v836_v41 }
 0x19b   : > { %1861 = vst [vmem:[%s2596_s23 + $0x1550] sm:$0xff] %v837_v42  ;;  %1862 = vst [vmem:[%s2596_s23 + $0x1558] sm:$0xff] %v838_v43  ;;  %v839_v44 = vld [vmem:[%s2587_s3 + $0x1560] sm:$0xff]  ;;  %v840_v45 = vld [vmem:[%s2587_s3 + $0x1568] sm:$0xff] }
 0x19c   : > { %v841_v46 = vld [vmem:[%s2587_s3 + $0x1570] sm:$0xff]  ;;  %1863 = vst [vmem:[%s2596_s23 + $0x1560] sm:$0xff] %v839_v44  ;;  %1864 = vst [vmem:[%s2596_s23 + $0x1568] sm:$0xff] %v840_v45  ;;  %v842_v47 = vld [vmem:[%s2587_s3 + $0x1578] sm:$0xff] }
 0x19d   : > { %1865 = vst [vmem:[%s2596_s23 + $0x1570] sm:$0xff] %v841_v46  ;;  %v843_v48 = vld [vmem:[%s2587_s3 + $0x1580] sm:$0xff]  ;;  %v844_v49 = vld [vmem:[%s2587_s3 + $0x1588] sm:$0xff]  ;;  %1866 = vst [vmem:[%s2596_s23 + $0x1578] sm:$0xff] %v842_v47 }
 0x19e   : > { %1867 = vst [vmem:[%s2596_s23 + $0x1580] sm:$0xff] %v843_v48  ;;  %1868 = vst [vmem:[%s2596_s23 + $0x1588] sm:$0xff] %v844_v49  ;;  %v845_v50 = vld [vmem:[%s2587_s3 + $0x1590] sm:$0xff]  ;;  %v846_v51 = vld [vmem:[%s2587_s3 + $0x1598] sm:$0xff] }
 0x19f   : > { %v847_v52 = vld [vmem:[%s2587_s3 + $0x15a0] sm:$0xff]  ;;  %1869 = vst [vmem:[%s2596_s23 + $0x1590] sm:$0xff] %v845_v50  ;;  %1870 = vst [vmem:[%s2596_s23 + $0x1598] sm:$0xff] %v846_v51  ;;  %v848_v53 = vld [vmem:[%s2587_s3 + $0x15a8] sm:$0xff] }
 0x1a0   : > { %1871 = vst [vmem:[%s2596_s23 + $0x15a0] sm:$0xff] %v847_v52  ;;  %v849_v54 = vld [vmem:[%s2587_s3 + $0x15b0] sm:$0xff]  ;;  %v850_v55 = vld [vmem:[%s2587_s3 + $0x15b8] sm:$0xff]  ;;  %1872 = vst [vmem:[%s2596_s23 + $0x15a8] sm:$0xff] %v848_v53 }
 0x1a1   : > { %1873 = vst [vmem:[%s2596_s23 + $0x15b0] sm:$0xff] %v849_v54  ;;  %1874 = vst [vmem:[%s2596_s23 + $0x15b8] sm:$0xff] %v850_v55  ;;  %v851_v56 = vld [vmem:[%s2587_s3 + $0x15c0] sm:$0xff]  ;;  %v852_v57 = vld [vmem:[%s2587_s3 + $0x15c8] sm:$0xff] }
 0x1a2   : > { %v853_v58 = vld [vmem:[%s2587_s3 + $0x15d0] sm:$0xff]  ;;  %1875 = vst [vmem:[%s2596_s23 + $0x15c0] sm:$0xff] %v851_v56  ;;  %1876 = vst [vmem:[%s2596_s23 + $0x15c8] sm:$0xff] %v852_v57  ;;  %v854_v59 = vld [vmem:[%s2587_s3 + $0x15d8] sm:$0xff] }
 0x1a3   : > { %1877 = vst [vmem:[%s2596_s23 + $0x15d0] sm:$0xff] %v853_v58  ;;  %v855_v60 = vld [vmem:[%s2587_s3 + $0x15e0] sm:$0xff]  ;;  %v856_v61 = vld [vmem:[%s2587_s3 + $0x15e8] sm:$0xff]  ;;  %1878 = vst [vmem:[%s2596_s23 + $0x15d8] sm:$0xff] %v854_v59 }
 0x1a4   : > { %1879 = vst [vmem:[%s2596_s23 + $0x15e0] sm:$0xff] %v855_v60  ;;  %1880 = vst [vmem:[%s2596_s23 + $0x15e8] sm:$0xff] %v856_v61  ;;  %v857_v62 = vld [vmem:[%s2587_s3 + $0x15f0] sm:$0xff]  ;;  %v858_v63 = vld [vmem:[%s2587_s3 + $0x15f8] sm:$0xff] }
 0x1a5   : > { %v859_v0 = vld [vmem:[%s2587_s3 + $0x1600] sm:$0xff]  ;;  %1881 = vst [vmem:[%s2596_s23 + $0x15f0] sm:$0xff] %v857_v62  ;;  %1882 = vst [vmem:[%s2596_s23 + $0x15f8] sm:$0xff] %v858_v63  ;;  %v860_v1 = vld [vmem:[%s2587_s3 + $0x1608] sm:$0xff] }
 0x1a6   : > { %1883 = vst [vmem:[%s2596_s23 + $0x1600] sm:$0xff] %v859_v0  ;;  %v861_v2 = vld [vmem:[%s2587_s3 + $0x1610] sm:$0xff]  ;;  %v862_v3 = vld [vmem:[%s2587_s3 + $0x1618] sm:$0xff]  ;;  %1884 = vst [vmem:[%s2596_s23 + $0x1608] sm:$0xff] %v860_v1 }
 0x1a7   : > { %1885 = vst [vmem:[%s2596_s23 + $0x1610] sm:$0xff] %v861_v2  ;;  %1886 = vst [vmem:[%s2596_s23 + $0x1618] sm:$0xff] %v862_v3  ;;  %v863_v4 = vld [vmem:[%s2587_s3 + $0x1620] sm:$0xff]  ;;  %v864_v5 = vld [vmem:[%s2587_s3 + $0x1628] sm:$0xff] }
 0x1a8   : > { %v865_v6 = vld [vmem:[%s2587_s3 + $0x1630] sm:$0xff]  ;;  %1887 = vst [vmem:[%s2596_s23 + $0x1620] sm:$0xff] %v863_v4  ;;  %1888 = vst [vmem:[%s2596_s23 + $0x1628] sm:$0xff] %v864_v5  ;;  %v866_v7 = vld [vmem:[%s2587_s3 + $0x1638] sm:$0xff] }
 0x1a9   : > { %1889 = vst [vmem:[%s2596_s23 + $0x1630] sm:$0xff] %v865_v6  ;;  %v867_v8 = vld [vmem:[%s2587_s3 + $0x1640] sm:$0xff]  ;;  %v868_v9 = vld [vmem:[%s2587_s3 + $0x1648] sm:$0xff]  ;;  %1890 = vst [vmem:[%s2596_s23 + $0x1638] sm:$0xff] %v866_v7 }
 0x1aa   : > { %1891 = vst [vmem:[%s2596_s23 + $0x1640] sm:$0xff] %v867_v8  ;;  %1892 = vst [vmem:[%s2596_s23 + $0x1648] sm:$0xff] %v868_v9  ;;  %v869_v10 = vld [vmem:[%s2587_s3 + $0x1650] sm:$0xff]  ;;  %v870_v11 = vld [vmem:[%s2587_s3 + $0x1658] sm:$0xff] }
 0x1ab   : > { %v871_v12 = vld [vmem:[%s2587_s3 + $0x1660] sm:$0xff]  ;;  %1893 = vst [vmem:[%s2596_s23 + $0x1650] sm:$0xff] %v869_v10  ;;  %1894 = vst [vmem:[%s2596_s23 + $0x1658] sm:$0xff] %v870_v11  ;;  %v872_v13 = vld [vmem:[%s2587_s3 + $0x1668] sm:$0xff] }
 0x1ac   : > { %1895 = vst [vmem:[%s2596_s23 + $0x1660] sm:$0xff] %v871_v12  ;;  %v873_v14 = vld [vmem:[%s2587_s3 + $0x1670] sm:$0xff]  ;;  %v874_v15 = vld [vmem:[%s2587_s3 + $0x1678] sm:$0xff]  ;;  %1896 = vst [vmem:[%s2596_s23 + $0x1668] sm:$0xff] %v872_v13 }
 0x1ad   : > { %1897 = vst [vmem:[%s2596_s23 + $0x1670] sm:$0xff] %v873_v14  ;;  %1898 = vst [vmem:[%s2596_s23 + $0x1678] sm:$0xff] %v874_v15  ;;  %v875_v16 = vld [vmem:[%s2587_s3 + $0x1680] sm:$0xff]  ;;  %v876_v17 = vld [vmem:[%s2587_s3 + $0x1688] sm:$0xff] }
 0x1ae   : > { %v877_v18 = vld [vmem:[%s2587_s3 + $0x1690] sm:$0xff]  ;;  %1899 = vst [vmem:[%s2596_s23 + $0x1680] sm:$0xff] %v875_v16  ;;  %1900 = vst [vmem:[%s2596_s23 + $0x1688] sm:$0xff] %v876_v17  ;;  %v878_v19 = vld [vmem:[%s2587_s3 + $0x1698] sm:$0xff] }
 0x1af   : > { %1901 = vst [vmem:[%s2596_s23 + $0x1690] sm:$0xff] %v877_v18  ;;  %v879_v20 = vld [vmem:[%s2587_s3 + $0x16a0] sm:$0xff]  ;;  %v880_v21 = vld [vmem:[%s2587_s3 + $0x16a8] sm:$0xff]  ;;  %1902 = vst [vmem:[%s2596_s23 + $0x1698] sm:$0xff] %v878_v19 }
 0x1b0   : > { %1903 = vst [vmem:[%s2596_s23 + $0x16a0] sm:$0xff] %v879_v20  ;;  %1904 = vst [vmem:[%s2596_s23 + $0x16a8] sm:$0xff] %v880_v21  ;;  %v881_v22 = vld [vmem:[%s2587_s3 + $0x16b0] sm:$0xff]  ;;  %v882_v23 = vld [vmem:[%s2587_s3 + $0x16b8] sm:$0xff] }
 0x1b1   : > { %v883_v24 = vld [vmem:[%s2587_s3 + $0x16c0] sm:$0xff]  ;;  %1905 = vst [vmem:[%s2596_s23 + $0x16b0] sm:$0xff] %v881_v22  ;;  %1906 = vst [vmem:[%s2596_s23 + $0x16b8] sm:$0xff] %v882_v23  ;;  %v884_v25 = vld [vmem:[%s2587_s3 + $0x16c8] sm:$0xff] }
 0x1b2   : > { %1907 = vst [vmem:[%s2596_s23 + $0x16c0] sm:$0xff] %v883_v24  ;;  %v885_v26 = vld [vmem:[%s2587_s3 + $0x16d0] sm:$0xff]  ;;  %v886_v27 = vld [vmem:[%s2587_s3 + $0x16d8] sm:$0xff]  ;;  %1908 = vst [vmem:[%s2596_s23 + $0x16c8] sm:$0xff] %v884_v25 }
 0x1b3   : > { %1909 = vst [vmem:[%s2596_s23 + $0x16d0] sm:$0xff] %v885_v26  ;;  %1910 = vst [vmem:[%s2596_s23 + $0x16d8] sm:$0xff] %v886_v27  ;;  %v887_v28 = vld [vmem:[%s2587_s3 + $0x16e0] sm:$0xff]  ;;  %v888_v29 = vld [vmem:[%s2587_s3 + $0x16e8] sm:$0xff] }
 0x1b4   : > { %v889_v30 = vld [vmem:[%s2587_s3 + $0x16f0] sm:$0xff]  ;;  %1911 = vst [vmem:[%s2596_s23 + $0x16e0] sm:$0xff] %v887_v28  ;;  %1912 = vst [vmem:[%s2596_s23 + $0x16e8] sm:$0xff] %v888_v29  ;;  %v890_v31 = vld [vmem:[%s2587_s3 + $0x16f8] sm:$0xff] }
 0x1b5   : > { %1913 = vst [vmem:[%s2596_s23 + $0x16f0] sm:$0xff] %v889_v30  ;;  %v891_v32 = vld [vmem:[%s2587_s3 + $0x1700] sm:$0xff]  ;;  %v892_v33 = vld [vmem:[%s2587_s3 + $0x1708] sm:$0xff]  ;;  %1914 = vst [vmem:[%s2596_s23 + $0x16f8] sm:$0xff] %v890_v31 }
 0x1b6   : > { %1915 = vst [vmem:[%s2596_s23 + $0x1700] sm:$0xff] %v891_v32  ;;  %1916 = vst [vmem:[%s2596_s23 + $0x1708] sm:$0xff] %v892_v33  ;;  %v893_v34 = vld [vmem:[%s2587_s3 + $0x1710] sm:$0xff]  ;;  %v894_v35 = vld [vmem:[%s2587_s3 + $0x1718] sm:$0xff] }
 0x1b7   : > { %v895_v36 = vld [vmem:[%s2587_s3 + $0x1720] sm:$0xff]  ;;  %1917 = vst [vmem:[%s2596_s23 + $0x1710] sm:$0xff] %v893_v34  ;;  %1918 = vst [vmem:[%s2596_s23 + $0x1718] sm:$0xff] %v894_v35  ;;  %v896_v37 = vld [vmem:[%s2587_s3 + $0x1728] sm:$0xff] }
 0x1b8   : > { %1919 = vst [vmem:[%s2596_s23 + $0x1720] sm:$0xff] %v895_v36  ;;  %v897_v38 = vld [vmem:[%s2587_s3 + $0x1730] sm:$0xff]  ;;  %v898_v39 = vld [vmem:[%s2587_s3 + $0x1738] sm:$0xff]  ;;  %1920 = vst [vmem:[%s2596_s23 + $0x1728] sm:$0xff] %v896_v37 }
 0x1b9   : > { %1921 = vst [vmem:[%s2596_s23 + $0x1730] sm:$0xff] %v897_v38  ;;  %1922 = vst [vmem:[%s2596_s23 + $0x1738] sm:$0xff] %v898_v39  ;;  %v899_v40 = vld [vmem:[%s2587_s3 + $0x1740] sm:$0xff]  ;;  %v900_v41 = vld [vmem:[%s2587_s3 + $0x1748] sm:$0xff] }
 0x1ba   : > { %v901_v42 = vld [vmem:[%s2587_s3 + $0x1750] sm:$0xff]  ;;  %1923 = vst [vmem:[%s2596_s23 + $0x1740] sm:$0xff] %v899_v40  ;;  %1924 = vst [vmem:[%s2596_s23 + $0x1748] sm:$0xff] %v900_v41  ;;  %v902_v43 = vld [vmem:[%s2587_s3 + $0x1758] sm:$0xff] }
 0x1bb   : > { %1925 = vst [vmem:[%s2596_s23 + $0x1750] sm:$0xff] %v901_v42  ;;  %v903_v44 = vld [vmem:[%s2587_s3 + $0x1760] sm:$0xff]  ;;  %v904_v45 = vld [vmem:[%s2587_s3 + $0x1768] sm:$0xff]  ;;  %1926 = vst [vmem:[%s2596_s23 + $0x1758] sm:$0xff] %v902_v43 }
 0x1bc   : > { %1927 = vst [vmem:[%s2596_s23 + $0x1760] sm:$0xff] %v903_v44  ;;  %1928 = vst [vmem:[%s2596_s23 + $0x1768] sm:$0xff] %v904_v45  ;;  %v905_v46 = vld [vmem:[%s2587_s3 + $0x1770] sm:$0xff]  ;;  %v906_v47 = vld [vmem:[%s2587_s3 + $0x1778] sm:$0xff] }
 0x1bd   : > { %v907_v48 = vld [vmem:[%s2587_s3 + $0x1780] sm:$0xff]  ;;  %1929 = vst [vmem:[%s2596_s23 + $0x1770] sm:$0xff] %v905_v46  ;;  %1930 = vst [vmem:[%s2596_s23 + $0x1778] sm:$0xff] %v906_v47  ;;  %v908_v49 = vld [vmem:[%s2587_s3 + $0x1788] sm:$0xff] }
 0x1be   : > { %1931 = vst [vmem:[%s2596_s23 + $0x1780] sm:$0xff] %v907_v48  ;;  %v909_v50 = vld [vmem:[%s2587_s3 + $0x1790] sm:$0xff]  ;;  %v910_v51 = vld [vmem:[%s2587_s3 + $0x1798] sm:$0xff]  ;;  %1932 = vst [vmem:[%s2596_s23 + $0x1788] sm:$0xff] %v908_v49 }
 0x1bf   : > { %1933 = vst [vmem:[%s2596_s23 + $0x1790] sm:$0xff] %v909_v50  ;;  %1934 = vst [vmem:[%s2596_s23 + $0x1798] sm:$0xff] %v910_v51  ;;  %v911_v52 = vld [vmem:[%s2587_s3 + $0x17a0] sm:$0xff]  ;;  %v912_v53 = vld [vmem:[%s2587_s3 + $0x17a8] sm:$0xff] }
 0x1c0   : > { %v913_v54 = vld [vmem:[%s2587_s3 + $0x17b0] sm:$0xff]  ;;  %1935 = vst [vmem:[%s2596_s23 + $0x17a0] sm:$0xff] %v911_v52  ;;  %1936 = vst [vmem:[%s2596_s23 + $0x17a8] sm:$0xff] %v912_v53  ;;  %v914_v55 = vld [vmem:[%s2587_s3 + $0x17b8] sm:$0xff] }
 0x1c1   : > { %1937 = vst [vmem:[%s2596_s23 + $0x17b0] sm:$0xff] %v913_v54  ;;  %v915_v56 = vld [vmem:[%s2587_s3 + $0x17c0] sm:$0xff]  ;;  %v916_v57 = vld [vmem:[%s2587_s3 + $0x17c8] sm:$0xff]  ;;  %1938 = vst [vmem:[%s2596_s23 + $0x17b8] sm:$0xff] %v914_v55 }
 0x1c2   : > { %1939 = vst [vmem:[%s2596_s23 + $0x17c0] sm:$0xff] %v915_v56  ;;  %1940 = vst [vmem:[%s2596_s23 + $0x17c8] sm:$0xff] %v916_v57  ;;  %v917_v58 = vld [vmem:[%s2587_s3 + $0x17d0] sm:$0xff]  ;;  %v918_v59 = vld [vmem:[%s2587_s3 + $0x17d8] sm:$0xff] }
 0x1c3   : > { %v919_v60 = vld [vmem:[%s2587_s3 + $0x17e0] sm:$0xff]  ;;  %1941 = vst [vmem:[%s2596_s23 + $0x17d0] sm:$0xff] %v917_v58  ;;  %1942 = vst [vmem:[%s2596_s23 + $0x17d8] sm:$0xff] %v918_v59  ;;  %v920_v61 = vld [vmem:[%s2587_s3 + $0x17e8] sm:$0xff] }
 0x1c4   : > { %1943 = vst [vmem:[%s2596_s23 + $0x17e0] sm:$0xff] %v919_v60  ;;  %v921_v62 = vld [vmem:[%s2587_s3 + $0x17f0] sm:$0xff]  ;;  %v922_v63 = vld [vmem:[%s2587_s3 + $0x17f8] sm:$0xff]  ;;  %1944 = vst [vmem:[%s2596_s23 + $0x17e8] sm:$0xff] %v920_v61 }
 0x1c5   : > { %1945 = vst [vmem:[%s2596_s23 + $0x17f0] sm:$0xff] %v921_v62  ;;  %1946 = vst [vmem:[%s2596_s23 + $0x17f8] sm:$0xff] %v922_v63  ;;  %v923_v0 = vld [vmem:[%s2587_s3 + $0x1800] sm:$0xff]  ;;  %v924_v1 = vld [vmem:[%s2587_s3 + $0x1808] sm:$0xff] }
 0x1c6   : > { %v925_v2 = vld [vmem:[%s2587_s3 + $0x1810] sm:$0xff]  ;;  %1947 = vst [vmem:[%s2596_s23 + $0x1800] sm:$0xff] %v923_v0  ;;  %1948 = vst [vmem:[%s2596_s23 + $0x1808] sm:$0xff] %v924_v1  ;;  %v926_v3 = vld [vmem:[%s2587_s3 + $0x1818] sm:$0xff] }
 0x1c7   : > { %1949 = vst [vmem:[%s2596_s23 + $0x1810] sm:$0xff] %v925_v2  ;;  %v927_v4 = vld [vmem:[%s2587_s3 + $0x1820] sm:$0xff]  ;;  %v928_v5 = vld [vmem:[%s2587_s3 + $0x1828] sm:$0xff]  ;;  %1950 = vst [vmem:[%s2596_s23 + $0x1818] sm:$0xff] %v926_v3 }
 0x1c8   : > { %1951 = vst [vmem:[%s2596_s23 + $0x1820] sm:$0xff] %v927_v4  ;;  %1952 = vst [vmem:[%s2596_s23 + $0x1828] sm:$0xff] %v928_v5  ;;  %v929_v6 = vld [vmem:[%s2587_s3 + $0x1830] sm:$0xff]  ;;  %v930_v7 = vld [vmem:[%s2587_s3 + $0x1838] sm:$0xff] }
 0x1c9   : > { %v931_v8 = vld [vmem:[%s2587_s3 + $0x1840] sm:$0xff]  ;;  %1953 = vst [vmem:[%s2596_s23 + $0x1830] sm:$0xff] %v929_v6  ;;  %1954 = vst [vmem:[%s2596_s23 + $0x1838] sm:$0xff] %v930_v7  ;;  %v932_v9 = vld [vmem:[%s2587_s3 + $0x1848] sm:$0xff] }
 0x1ca   : > { %1955 = vst [vmem:[%s2596_s23 + $0x1840] sm:$0xff] %v931_v8  ;;  %v933_v10 = vld [vmem:[%s2587_s3 + $0x1850] sm:$0xff]  ;;  %v934_v11 = vld [vmem:[%s2587_s3 + $0x1858] sm:$0xff]  ;;  %1956 = vst [vmem:[%s2596_s23 + $0x1848] sm:$0xff] %v932_v9 }
 0x1cb   : > { %1957 = vst [vmem:[%s2596_s23 + $0x1850] sm:$0xff] %v933_v10  ;;  %1958 = vst [vmem:[%s2596_s23 + $0x1858] sm:$0xff] %v934_v11  ;;  %v935_v12 = vld [vmem:[%s2587_s3 + $0x1860] sm:$0xff]  ;;  %v936_v13 = vld [vmem:[%s2587_s3 + $0x1868] sm:$0xff] }
 0x1cc   : > { %v937_v14 = vld [vmem:[%s2587_s3 + $0x1870] sm:$0xff]  ;;  %1959 = vst [vmem:[%s2596_s23 + $0x1860] sm:$0xff] %v935_v12  ;;  %1960 = vst [vmem:[%s2596_s23 + $0x1868] sm:$0xff] %v936_v13  ;;  %v938_v15 = vld [vmem:[%s2587_s3 + $0x1878] sm:$0xff] }
 0x1cd   : > { %1961 = vst [vmem:[%s2596_s23 + $0x1870] sm:$0xff] %v937_v14  ;;  %v939_v16 = vld [vmem:[%s2587_s3 + $0x1880] sm:$0xff]  ;;  %v940_v17 = vld [vmem:[%s2587_s3 + $0x1888] sm:$0xff]  ;;  %1962 = vst [vmem:[%s2596_s23 + $0x1878] sm:$0xff] %v938_v15 }
 0x1ce   : > { %1963 = vst [vmem:[%s2596_s23 + $0x1880] sm:$0xff] %v939_v16  ;;  %1964 = vst [vmem:[%s2596_s23 + $0x1888] sm:$0xff] %v940_v17  ;;  %v941_v18 = vld [vmem:[%s2587_s3 + $0x1890] sm:$0xff]  ;;  %v942_v19 = vld [vmem:[%s2587_s3 + $0x1898] sm:$0xff] }
 0x1cf   : > { %v943_v20 = vld [vmem:[%s2587_s3 + $0x18a0] sm:$0xff]  ;;  %1965 = vst [vmem:[%s2596_s23 + $0x1890] sm:$0xff] %v941_v18  ;;  %1966 = vst [vmem:[%s2596_s23 + $0x1898] sm:$0xff] %v942_v19  ;;  %v944_v21 = vld [vmem:[%s2587_s3 + $0x18a8] sm:$0xff] }
 0x1d0   : > { %1967 = vst [vmem:[%s2596_s23 + $0x18a0] sm:$0xff] %v943_v20  ;;  %v945_v22 = vld [vmem:[%s2587_s3 + $0x18b0] sm:$0xff]  ;;  %v946_v23 = vld [vmem:[%s2587_s3 + $0x18b8] sm:$0xff]  ;;  %1968 = vst [vmem:[%s2596_s23 + $0x18a8] sm:$0xff] %v944_v21 }
 0x1d1   : > { %1969 = vst [vmem:[%s2596_s23 + $0x18b0] sm:$0xff] %v945_v22  ;;  %1970 = vst [vmem:[%s2596_s23 + $0x18b8] sm:$0xff] %v946_v23  ;;  %v947_v24 = vld [vmem:[%s2587_s3 + $0x18c0] sm:$0xff]  ;;  %v948_v25 = vld [vmem:[%s2587_s3 + $0x18c8] sm:$0xff] }
 0x1d2   : > { %v949_v26 = vld [vmem:[%s2587_s3 + $0x18d0] sm:$0xff]  ;;  %1971 = vst [vmem:[%s2596_s23 + $0x18c0] sm:$0xff] %v947_v24  ;;  %1972 = vst [vmem:[%s2596_s23 + $0x18c8] sm:$0xff] %v948_v25  ;;  %v950_v27 = vld [vmem:[%s2587_s3 + $0x18d8] sm:$0xff] }
 0x1d3   : > { %1973 = vst [vmem:[%s2596_s23 + $0x18d0] sm:$0xff] %v949_v26  ;;  %v951_v28 = vld [vmem:[%s2587_s3 + $0x18e0] sm:$0xff]  ;;  %v952_v29 = vld [vmem:[%s2587_s3 + $0x18e8] sm:$0xff]  ;;  %1974 = vst [vmem:[%s2596_s23 + $0x18d8] sm:$0xff] %v950_v27 }
 0x1d4   : > { %1975 = vst [vmem:[%s2596_s23 + $0x18e0] sm:$0xff] %v951_v28  ;;  %1976 = vst [vmem:[%s2596_s23 + $0x18e8] sm:$0xff] %v952_v29  ;;  %v953_v30 = vld [vmem:[%s2587_s3 + $0x18f0] sm:$0xff]  ;;  %v954_v31 = vld [vmem:[%s2587_s3 + $0x18f8] sm:$0xff] }
 0x1d5   : > { %v955_v32 = vld [vmem:[%s2587_s3 + $0x1900] sm:$0xff]  ;;  %1977 = vst [vmem:[%s2596_s23 + $0x18f0] sm:$0xff] %v953_v30  ;;  %1978 = vst [vmem:[%s2596_s23 + $0x18f8] sm:$0xff] %v954_v31  ;;  %v956_v33 = vld [vmem:[%s2587_s3 + $0x1908] sm:$0xff] }
 0x1d6   : > { %1979 = vst [vmem:[%s2596_s23 + $0x1900] sm:$0xff] %v955_v32  ;;  %v957_v34 = vld [vmem:[%s2587_s3 + $0x1910] sm:$0xff]  ;;  %v958_v35 = vld [vmem:[%s2587_s3 + $0x1918] sm:$0xff]  ;;  %1980 = vst [vmem:[%s2596_s23 + $0x1908] sm:$0xff] %v956_v33 }
 0x1d7   : > { %1981 = vst [vmem:[%s2596_s23 + $0x1910] sm:$0xff] %v957_v34  ;;  %1982 = vst [vmem:[%s2596_s23 + $0x1918] sm:$0xff] %v958_v35  ;;  %v959_v36 = vld [vmem:[%s2587_s3 + $0x1920] sm:$0xff]  ;;  %v960_v37 = vld [vmem:[%s2587_s3 + $0x1928] sm:$0xff] }
 0x1d8   : > { %v961_v38 = vld [vmem:[%s2587_s3 + $0x1930] sm:$0xff]  ;;  %1983 = vst [vmem:[%s2596_s23 + $0x1920] sm:$0xff] %v959_v36  ;;  %1984 = vst [vmem:[%s2596_s23 + $0x1928] sm:$0xff] %v960_v37  ;;  %v962_v39 = vld [vmem:[%s2587_s3 + $0x1938] sm:$0xff] }
 0x1d9   : > { %1985 = vst [vmem:[%s2596_s23 + $0x1930] sm:$0xff] %v961_v38  ;;  %v963_v40 = vld [vmem:[%s2587_s3 + $0x1940] sm:$0xff]  ;;  %v964_v41 = vld [vmem:[%s2587_s3 + $0x1948] sm:$0xff]  ;;  %1986 = vst [vmem:[%s2596_s23 + $0x1938] sm:$0xff] %v962_v39 }
 0x1da   : > { %1987 = vst [vmem:[%s2596_s23 + $0x1940] sm:$0xff] %v963_v40  ;;  %1988 = vst [vmem:[%s2596_s23 + $0x1948] sm:$0xff] %v964_v41  ;;  %v965_v42 = vld [vmem:[%s2587_s3 + $0x1950] sm:$0xff]  ;;  %v966_v43 = vld [vmem:[%s2587_s3 + $0x1958] sm:$0xff] }
 0x1db   : > { %v967_v44 = vld [vmem:[%s2587_s3 + $0x1960] sm:$0xff]  ;;  %1989 = vst [vmem:[%s2596_s23 + $0x1950] sm:$0xff] %v965_v42  ;;  %1990 = vst [vmem:[%s2596_s23 + $0x1958] sm:$0xff] %v966_v43  ;;  %v968_v45 = vld [vmem:[%s2587_s3 + $0x1968] sm:$0xff] }
 0x1dc   : > { %1991 = vst [vmem:[%s2596_s23 + $0x1960] sm:$0xff] %v967_v44  ;;  %v969_v46 = vld [vmem:[%s2587_s3 + $0x1970] sm:$0xff]  ;;  %v970_v47 = vld [vmem:[%s2587_s3 + $0x1978] sm:$0xff]  ;;  %1992 = vst [vmem:[%s2596_s23 + $0x1968] sm:$0xff] %v968_v45 }
 0x1dd   : > { %1993 = vst [vmem:[%s2596_s23 + $0x1970] sm:$0xff] %v969_v46  ;;  %1994 = vst [vmem:[%s2596_s23 + $0x1978] sm:$0xff] %v970_v47  ;;  %v971_v48 = vld [vmem:[%s2587_s3 + $0x1980] sm:$0xff]  ;;  %v972_v49 = vld [vmem:[%s2587_s3 + $0x1988] sm:$0xff] }
 0x1de   : > { %v973_v50 = vld [vmem:[%s2587_s3 + $0x1990] sm:$0xff]  ;;  %1995 = vst [vmem:[%s2596_s23 + $0x1980] sm:$0xff] %v971_v48  ;;  %1996 = vst [vmem:[%s2596_s23 + $0x1988] sm:$0xff] %v972_v49  ;;  %v974_v51 = vld [vmem:[%s2587_s3 + $0x1998] sm:$0xff] }
 0x1df   : > { %1997 = vst [vmem:[%s2596_s23 + $0x1990] sm:$0xff] %v973_v50  ;;  %v975_v52 = vld [vmem:[%s2587_s3 + $0x19a0] sm:$0xff]  ;;  %v976_v53 = vld [vmem:[%s2587_s3 + $0x19a8] sm:$0xff]  ;;  %1998 = vst [vmem:[%s2596_s23 + $0x1998] sm:$0xff] %v974_v51 }
 0x1e0   : > { %1999 = vst [vmem:[%s2596_s23 + $0x19a0] sm:$0xff] %v975_v52  ;;  %2000 = vst [vmem:[%s2596_s23 + $0x19a8] sm:$0xff] %v976_v53  ;;  %v977_v54 = vld [vmem:[%s2587_s3 + $0x19b0] sm:$0xff]  ;;  %v978_v55 = vld [vmem:[%s2587_s3 + $0x19b8] sm:$0xff] }
 0x1e1   : > { %v979_v56 = vld [vmem:[%s2587_s3 + $0x19c0] sm:$0xff]  ;;  %2001 = vst [vmem:[%s2596_s23 + $0x19b0] sm:$0xff] %v977_v54  ;;  %2002 = vst [vmem:[%s2596_s23 + $0x19b8] sm:$0xff] %v978_v55  ;;  %v980_v57 = vld [vmem:[%s2587_s3 + $0x19c8] sm:$0xff] }
 0x1e2   : > { %2003 = vst [vmem:[%s2596_s23 + $0x19c0] sm:$0xff] %v979_v56  ;;  %v981_v58 = vld [vmem:[%s2587_s3 + $0x19d0] sm:$0xff]  ;;  %v982_v59 = vld [vmem:[%s2587_s3 + $0x19d8] sm:$0xff]  ;;  %2004 = vst [vmem:[%s2596_s23 + $0x19c8] sm:$0xff] %v980_v57 }
 0x1e3   : > { %2005 = vst [vmem:[%s2596_s23 + $0x19d0] sm:$0xff] %v981_v58  ;;  %2006 = vst [vmem:[%s2596_s23 + $0x19d8] sm:$0xff] %v982_v59  ;;  %v983_v60 = vld [vmem:[%s2587_s3 + $0x19e0] sm:$0xff]  ;;  %v984_v61 = vld [vmem:[%s2587_s3 + $0x19e8] sm:$0xff] }
 0x1e4   : > { %v985_v62 = vld [vmem:[%s2587_s3 + $0x19f0] sm:$0xff]  ;;  %2007 = vst [vmem:[%s2596_s23 + $0x19e0] sm:$0xff] %v983_v60  ;;  %2008 = vst [vmem:[%s2596_s23 + $0x19e8] sm:$0xff] %v984_v61  ;;  %v986_v63 = vld [vmem:[%s2587_s3 + $0x19f8] sm:$0xff] }
 0x1e5   : > { %2009 = vst [vmem:[%s2596_s23 + $0x19f0] sm:$0xff] %v985_v62  ;;  %v987_v0 = vld [vmem:[%s2587_s3 + $0x1a00] sm:$0xff]  ;;  %v988_v1 = vld [vmem:[%s2587_s3 + $0x1a08] sm:$0xff]  ;;  %2010 = vst [vmem:[%s2596_s23 + $0x19f8] sm:$0xff] %v986_v63 }
 0x1e6   : > { %2011 = vst [vmem:[%s2596_s23 + $0x1a00] sm:$0xff] %v987_v0  ;;  %2012 = vst [vmem:[%s2596_s23 + $0x1a08] sm:$0xff] %v988_v1  ;;  %v989_v2 = vld [vmem:[%s2587_s3 + $0x1a10] sm:$0xff]  ;;  %v990_v3 = vld [vmem:[%s2587_s3 + $0x1a18] sm:$0xff] }
 0x1e7   : > { %v991_v4 = vld [vmem:[%s2587_s3 + $0x1a20] sm:$0xff]  ;;  %2013 = vst [vmem:[%s2596_s23 + $0x1a10] sm:$0xff] %v989_v2  ;;  %2014 = vst [vmem:[%s2596_s23 + $0x1a18] sm:$0xff] %v990_v3  ;;  %v992_v5 = vld [vmem:[%s2587_s3 + $0x1a28] sm:$0xff] }
 0x1e8   : > { %2015 = vst [vmem:[%s2596_s23 + $0x1a20] sm:$0xff] %v991_v4  ;;  %v993_v6 = vld [vmem:[%s2587_s3 + $0x1a30] sm:$0xff]  ;;  %v994_v7 = vld [vmem:[%s2587_s3 + $0x1a38] sm:$0xff]  ;;  %2016 = vst [vmem:[%s2596_s23 + $0x1a28] sm:$0xff] %v992_v5 }
 0x1e9   : > { %2017 = vst [vmem:[%s2596_s23 + $0x1a30] sm:$0xff] %v993_v6  ;;  %2018 = vst [vmem:[%s2596_s23 + $0x1a38] sm:$0xff] %v994_v7  ;;  %v995_v8 = vld [vmem:[%s2587_s3 + $0x1a40] sm:$0xff]  ;;  %v996_v9 = vld [vmem:[%s2587_s3 + $0x1a48] sm:$0xff] }
 0x1ea   : > { %v997_v10 = vld [vmem:[%s2587_s3 + $0x1a50] sm:$0xff]  ;;  %2019 = vst [vmem:[%s2596_s23 + $0x1a40] sm:$0xff] %v995_v8  ;;  %2020 = vst [vmem:[%s2596_s23 + $0x1a48] sm:$0xff] %v996_v9  ;;  %v998_v11 = vld [vmem:[%s2587_s3 + $0x1a58] sm:$0xff] }
 0x1eb   : > { %2021 = vst [vmem:[%s2596_s23 + $0x1a50] sm:$0xff] %v997_v10  ;;  %v999_v12 = vld [vmem:[%s2587_s3 + $0x1a60] sm:$0xff]  ;;  %v1000_v13 = vld [vmem:[%s2587_s3 + $0x1a68] sm:$0xff]  ;;  %2022 = vst [vmem:[%s2596_s23 + $0x1a58] sm:$0xff] %v998_v11 }
 0x1ec   : > { %2023 = vst [vmem:[%s2596_s23 + $0x1a60] sm:$0xff] %v999_v12  ;;  %2024 = vst [vmem:[%s2596_s23 + $0x1a68] sm:$0xff] %v1000_v13  ;;  %v1001_v14 = vld [vmem:[%s2587_s3 + $0x1a70] sm:$0xff]  ;;  %v1002_v15 = vld [vmem:[%s2587_s3 + $0x1a78] sm:$0xff] }
 0x1ed   : > { %v1003_v16 = vld [vmem:[%s2587_s3 + $0x1a80] sm:$0xff]  ;;  %2025 = vst [vmem:[%s2596_s23 + $0x1a70] sm:$0xff] %v1001_v14  ;;  %2026 = vst [vmem:[%s2596_s23 + $0x1a78] sm:$0xff] %v1002_v15  ;;  %v1004_v17 = vld [vmem:[%s2587_s3 + $0x1a88] sm:$0xff] }
 0x1ee   : > { %2027 = vst [vmem:[%s2596_s23 + $0x1a80] sm:$0xff] %v1003_v16  ;;  %v1005_v18 = vld [vmem:[%s2587_s3 + $0x1a90] sm:$0xff]  ;;  %v1006_v19 = vld [vmem:[%s2587_s3 + $0x1a98] sm:$0xff]  ;;  %2028 = vst [vmem:[%s2596_s23 + $0x1a88] sm:$0xff] %v1004_v17 }
 0x1ef   : > { %2029 = vst [vmem:[%s2596_s23 + $0x1a90] sm:$0xff] %v1005_v18  ;;  %2030 = vst [vmem:[%s2596_s23 + $0x1a98] sm:$0xff] %v1006_v19  ;;  %v1007_v20 = vld [vmem:[%s2587_s3 + $0x1aa0] sm:$0xff]  ;;  %v1008_v21 = vld [vmem:[%s2587_s3 + $0x1aa8] sm:$0xff] }
 0x1f0   : > { %v1009_v22 = vld [vmem:[%s2587_s3 + $0x1ab0] sm:$0xff]  ;;  %2031 = vst [vmem:[%s2596_s23 + $0x1aa0] sm:$0xff] %v1007_v20  ;;  %2032 = vst [vmem:[%s2596_s23 + $0x1aa8] sm:$0xff] %v1008_v21  ;;  %v1010_v23 = vld [vmem:[%s2587_s3 + $0x1ab8] sm:$0xff] }
 0x1f1   : > { %2033 = vst [vmem:[%s2596_s23 + $0x1ab0] sm:$0xff] %v1009_v22  ;;  %v1011_v24 = vld [vmem:[%s2587_s3 + $0x1ac0] sm:$0xff]  ;;  %v1012_v25 = vld [vmem:[%s2587_s3 + $0x1ac8] sm:$0xff]  ;;  %2034 = vst [vmem:[%s2596_s23 + $0x1ab8] sm:$0xff] %v1010_v23 }
 0x1f2   : > { %2035 = vst [vmem:[%s2596_s23 + $0x1ac0] sm:$0xff] %v1011_v24  ;;  %2036 = vst [vmem:[%s2596_s23 + $0x1ac8] sm:$0xff] %v1012_v25  ;;  %v1013_v26 = vld [vmem:[%s2587_s3 + $0x1ad0] sm:$0xff]  ;;  %v1014_v27 = vld [vmem:[%s2587_s3 + $0x1ad8] sm:$0xff] }
 0x1f3   : > { %v1015_v28 = vld [vmem:[%s2587_s3 + $0x1ae0] sm:$0xff]  ;;  %2037 = vst [vmem:[%s2596_s23 + $0x1ad0] sm:$0xff] %v1013_v26  ;;  %2038 = vst [vmem:[%s2596_s23 + $0x1ad8] sm:$0xff] %v1014_v27  ;;  %v1016_v29 = vld [vmem:[%s2587_s3 + $0x1ae8] sm:$0xff] }
 0x1f4   : > { %2039 = vst [vmem:[%s2596_s23 + $0x1ae0] sm:$0xff] %v1015_v28  ;;  %v1017_v30 = vld [vmem:[%s2587_s3 + $0x1af0] sm:$0xff]  ;;  %v1018_v31 = vld [vmem:[%s2587_s3 + $0x1af8] sm:$0xff]  ;;  %2040 = vst [vmem:[%s2596_s23 + $0x1ae8] sm:$0xff] %v1016_v29 }
 0x1f5   : > { %2041 = vst [vmem:[%s2596_s23 + $0x1af0] sm:$0xff] %v1017_v30  ;;  %2042 = vst [vmem:[%s2596_s23 + $0x1af8] sm:$0xff] %v1018_v31  ;;  %v1019_v32 = vld [vmem:[%s2587_s3 + $0x1b00] sm:$0xff]  ;;  %v1020_v33 = vld [vmem:[%s2587_s3 + $0x1b08] sm:$0xff] }
 0x1f6   : > { %v1021_v34 = vld [vmem:[%s2587_s3 + $0x1b10] sm:$0xff]  ;;  %2043 = vst [vmem:[%s2596_s23 + $0x1b00] sm:$0xff] %v1019_v32  ;;  %2044 = vst [vmem:[%s2596_s23 + $0x1b08] sm:$0xff] %v1020_v33  ;;  %v1022_v35 = vld [vmem:[%s2587_s3 + $0x1b18] sm:$0xff] }
 0x1f7   : > { %2045 = vst [vmem:[%s2596_s23 + $0x1b10] sm:$0xff] %v1021_v34  ;;  %v1023_v36 = vld [vmem:[%s2587_s3 + $0x1b20] sm:$0xff]  ;;  %v1024_v37 = vld [vmem:[%s2587_s3 + $0x1b28] sm:$0xff]  ;;  %2046 = vst [vmem:[%s2596_s23 + $0x1b18] sm:$0xff] %v1022_v35 }
 0x1f8   : > { %2047 = vst [vmem:[%s2596_s23 + $0x1b20] sm:$0xff] %v1023_v36  ;;  %2048 = vst [vmem:[%s2596_s23 + $0x1b28] sm:$0xff] %v1024_v37  ;;  %v1025_v38 = vld [vmem:[%s2587_s3 + $0x1b30] sm:$0xff]  ;;  %v1026_v39 = vld [vmem:[%s2587_s3 + $0x1b38] sm:$0xff] }
 0x1f9   : > { %v1027_v40 = vld [vmem:[%s2587_s3 + $0x1b40] sm:$0xff]  ;;  %2049 = vst [vmem:[%s2596_s23 + $0x1b30] sm:$0xff] %v1025_v38  ;;  %2050 = vst [vmem:[%s2596_s23 + $0x1b38] sm:$0xff] %v1026_v39  ;;  %v1028_v41 = vld [vmem:[%s2587_s3 + $0x1b48] sm:$0xff] }
 0x1fa   : > { %2051 = vst [vmem:[%s2596_s23 + $0x1b40] sm:$0xff] %v1027_v40  ;;  %v1029_v42 = vld [vmem:[%s2587_s3 + $0x1b50] sm:$0xff]  ;;  %v1030_v43 = vld [vmem:[%s2587_s3 + $0x1b58] sm:$0xff]  ;;  %2052 = vst [vmem:[%s2596_s23 + $0x1b48] sm:$0xff] %v1028_v41 }
 0x1fb   : > { %2053 = vst [vmem:[%s2596_s23 + $0x1b50] sm:$0xff] %v1029_v42  ;;  %2054 = vst [vmem:[%s2596_s23 + $0x1b58] sm:$0xff] %v1030_v43  ;;  %v1031_v44 = vld [vmem:[%s2587_s3 + $0x1b60] sm:$0xff]  ;;  %v1032_v45 = vld [vmem:[%s2587_s3 + $0x1b68] sm:$0xff] }
 0x1fc   : > { %v1033_v46 = vld [vmem:[%s2587_s3 + $0x1b70] sm:$0xff]  ;;  %2055 = vst [vmem:[%s2596_s23 + $0x1b60] sm:$0xff] %v1031_v44  ;;  %2056 = vst [vmem:[%s2596_s23 + $0x1b68] sm:$0xff] %v1032_v45  ;;  %v1034_v47 = vld [vmem:[%s2587_s3 + $0x1b78] sm:$0xff] }
 0x1fd   : > { %2057 = vst [vmem:[%s2596_s23 + $0x1b70] sm:$0xff] %v1033_v46  ;;  %v1035_v48 = vld [vmem:[%s2587_s3 + $0x1b80] sm:$0xff]  ;;  %v1036_v49 = vld [vmem:[%s2587_s3 + $0x1b88] sm:$0xff]  ;;  %2058 = vst [vmem:[%s2596_s23 + $0x1b78] sm:$0xff] %v1034_v47 }
 0x1fe   : > { %2059 = vst [vmem:[%s2596_s23 + $0x1b80] sm:$0xff] %v1035_v48  ;;  %2060 = vst [vmem:[%s2596_s23 + $0x1b88] sm:$0xff] %v1036_v49  ;;  %v1037_v50 = vld [vmem:[%s2587_s3 + $0x1b90] sm:$0xff]  ;;  %v1038_v51 = vld [vmem:[%s2587_s3 + $0x1b98] sm:$0xff] }
 0x1ff   : > { %v1039_v52 = vld [vmem:[%s2587_s3 + $0x1ba0] sm:$0xff]  ;;  %2061 = vst [vmem:[%s2596_s23 + $0x1b90] sm:$0xff] %v1037_v50  ;;  %2062 = vst [vmem:[%s2596_s23 + $0x1b98] sm:$0xff] %v1038_v51  ;;  %v1040_v53 = vld [vmem:[%s2587_s3 + $0x1ba8] sm:$0xff] }
 0x200   : > { %2063 = vst [vmem:[%s2596_s23 + $0x1ba0] sm:$0xff] %v1039_v52  ;;  %v1041_v54 = vld [vmem:[%s2587_s3 + $0x1bb0] sm:$0xff]  ;;  %v1042_v55 = vld [vmem:[%s2587_s3 + $0x1bb8] sm:$0xff]  ;;  %2064 = vst [vmem:[%s2596_s23 + $0x1ba8] sm:$0xff] %v1040_v53 }
 0x201   : > { %2065 = vst [vmem:[%s2596_s23 + $0x1bb0] sm:$0xff] %v1041_v54  ;;  %2066 = vst [vmem:[%s2596_s23 + $0x1bb8] sm:$0xff] %v1042_v55  ;;  %v1043_v56 = vld [vmem:[%s2587_s3 + $0x1bc0] sm:$0xff]  ;;  %v1044_v57 = vld [vmem:[%s2587_s3 + $0x1bc8] sm:$0xff] }
 0x202   : > { %v1045_v58 = vld [vmem:[%s2587_s3 + $0x1bd0] sm:$0xff]  ;;  %2067 = vst [vmem:[%s2596_s23 + $0x1bc0] sm:$0xff] %v1043_v56  ;;  %2068 = vst [vmem:[%s2596_s23 + $0x1bc8] sm:$0xff] %v1044_v57  ;;  %v1046_v59 = vld [vmem:[%s2587_s3 + $0x1bd8] sm:$0xff] }
 0x203   : > { %2069 = vst [vmem:[%s2596_s23 + $0x1bd0] sm:$0xff] %v1045_v58  ;;  %v1047_v60 = vld [vmem:[%s2587_s3 + $0x1be0] sm:$0xff]  ;;  %v1048_v61 = vld [vmem:[%s2587_s3 + $0x1be8] sm:$0xff]  ;;  %2070 = vst [vmem:[%s2596_s23 + $0x1bd8] sm:$0xff] %v1046_v59 }
 0x204   : > { %2071 = vst [vmem:[%s2596_s23 + $0x1be0] sm:$0xff] %v1047_v60  ;;  %2072 = vst [vmem:[%s2596_s23 + $0x1be8] sm:$0xff] %v1048_v61  ;;  %v1049_v62 = vld [vmem:[%s2587_s3 + $0x1bf0] sm:$0xff]  ;;  %v1050_v63 = vld [vmem:[%s2587_s3 + $0x1bf8] sm:$0xff] }
 0x205   : > { %v1051_v0 = vld [vmem:[%s2587_s3 + $0x1c00] sm:$0xff]  ;;  %2073 = vst [vmem:[%s2596_s23 + $0x1bf0] sm:$0xff] %v1049_v62  ;;  %2074 = vst [vmem:[%s2596_s23 + $0x1bf8] sm:$0xff] %v1050_v63  ;;  %v1052_v1 = vld [vmem:[%s2587_s3 + $0x1c08] sm:$0xff] }
 0x206   : > { %2075 = vst [vmem:[%s2596_s23 + $0x1c00] sm:$0xff] %v1051_v0  ;;  %v1053_v2 = vld [vmem:[%s2587_s3 + $0x1c10] sm:$0xff]  ;;  %v1054_v3 = vld [vmem:[%s2587_s3 + $0x1c18] sm:$0xff]  ;;  %2076 = vst [vmem:[%s2596_s23 + $0x1c08] sm:$0xff] %v1052_v1 }
 0x207   : > { %2077 = vst [vmem:[%s2596_s23 + $0x1c10] sm:$0xff] %v1053_v2  ;;  %2078 = vst [vmem:[%s2596_s23 + $0x1c18] sm:$0xff] %v1054_v3  ;;  %v1055_v4 = vld [vmem:[%s2587_s3 + $0x1c20] sm:$0xff]  ;;  %v1056_v5 = vld [vmem:[%s2587_s3 + $0x1c28] sm:$0xff] }
 0x208   : > { %v1057_v6 = vld [vmem:[%s2587_s3 + $0x1c30] sm:$0xff]  ;;  %2079 = vst [vmem:[%s2596_s23 + $0x1c20] sm:$0xff] %v1055_v4  ;;  %2080 = vst [vmem:[%s2596_s23 + $0x1c28] sm:$0xff] %v1056_v5  ;;  %v1058_v7 = vld [vmem:[%s2587_s3 + $0x1c38] sm:$0xff] }
 0x209   : > { %2081 = vst [vmem:[%s2596_s23 + $0x1c30] sm:$0xff] %v1057_v6  ;;  %v1059_v8 = vld [vmem:[%s2587_s3 + $0x1c40] sm:$0xff]  ;;  %v1060_v9 = vld [vmem:[%s2587_s3 + $0x1c48] sm:$0xff]  ;;  %2082 = vst [vmem:[%s2596_s23 + $0x1c38] sm:$0xff] %v1058_v7 }
 0x20a   : > { %2083 = vst [vmem:[%s2596_s23 + $0x1c40] sm:$0xff] %v1059_v8  ;;  %2084 = vst [vmem:[%s2596_s23 + $0x1c48] sm:$0xff] %v1060_v9  ;;  %v1061_v10 = vld [vmem:[%s2587_s3 + $0x1c50] sm:$0xff]  ;;  %v1062_v11 = vld [vmem:[%s2587_s3 + $0x1c58] sm:$0xff] }
 0x20b   : > { %v1063_v12 = vld [vmem:[%s2587_s3 + $0x1c60] sm:$0xff]  ;;  %2085 = vst [vmem:[%s2596_s23 + $0x1c50] sm:$0xff] %v1061_v10  ;;  %2086 = vst [vmem:[%s2596_s23 + $0x1c58] sm:$0xff] %v1062_v11  ;;  %v1064_v13 = vld [vmem:[%s2587_s3 + $0x1c68] sm:$0xff] }
 0x20c   : > { %2087 = vst [vmem:[%s2596_s23 + $0x1c60] sm:$0xff] %v1063_v12  ;;  %v1065_v14 = vld [vmem:[%s2587_s3 + $0x1c70] sm:$0xff]  ;;  %v1066_v15 = vld [vmem:[%s2587_s3 + $0x1c78] sm:$0xff]  ;;  %2088 = vst [vmem:[%s2596_s23 + $0x1c68] sm:$0xff] %v1064_v13 }
 0x20d   : > { %2089 = vst [vmem:[%s2596_s23 + $0x1c70] sm:$0xff] %v1065_v14  ;;  %2090 = vst [vmem:[%s2596_s23 + $0x1c78] sm:$0xff] %v1066_v15  ;;  %v1067_v16 = vld [vmem:[%s2587_s3 + $0x1c80] sm:$0xff]  ;;  %v1068_v17 = vld [vmem:[%s2587_s3 + $0x1c88] sm:$0xff] }
 0x20e   : > { %v1069_v18 = vld [vmem:[%s2587_s3 + $0x1c90] sm:$0xff]  ;;  %2091 = vst [vmem:[%s2596_s23 + $0x1c80] sm:$0xff] %v1067_v16  ;;  %2092 = vst [vmem:[%s2596_s23 + $0x1c88] sm:$0xff] %v1068_v17  ;;  %v1070_v19 = vld [vmem:[%s2587_s3 + $0x1c98] sm:$0xff] }
 0x20f   : > { %2093 = vst [vmem:[%s2596_s23 + $0x1c90] sm:$0xff] %v1069_v18  ;;  %v1071_v20 = vld [vmem:[%s2587_s3 + $0x1ca0] sm:$0xff]  ;;  %v1072_v21 = vld [vmem:[%s2587_s3 + $0x1ca8] sm:$0xff]  ;;  %2094 = vst [vmem:[%s2596_s23 + $0x1c98] sm:$0xff] %v1070_v19 }
 0x210   : > { %2095 = vst [vmem:[%s2596_s23 + $0x1ca0] sm:$0xff] %v1071_v20  ;;  %2096 = vst [vmem:[%s2596_s23 + $0x1ca8] sm:$0xff] %v1072_v21  ;;  %v1073_v22 = vld [vmem:[%s2587_s3 + $0x1cb0] sm:$0xff]  ;;  %v1074_v23 = vld [vmem:[%s2587_s3 + $0x1cb8] sm:$0xff] }
 0x211   : > { %v1075_v24 = vld [vmem:[%s2587_s3 + $0x1cc0] sm:$0xff]  ;;  %2097 = vst [vmem:[%s2596_s23 + $0x1cb0] sm:$0xff] %v1073_v22  ;;  %2098 = vst [vmem:[%s2596_s23 + $0x1cb8] sm:$0xff] %v1074_v23  ;;  %v1076_v25 = vld [vmem:[%s2587_s3 + $0x1cc8] sm:$0xff] }
 0x212   : > { %2099 = vst [vmem:[%s2596_s23 + $0x1cc0] sm:$0xff] %v1075_v24  ;;  %v1077_v26 = vld [vmem:[%s2587_s3 + $0x1cd0] sm:$0xff]  ;;  %v1078_v27 = vld [vmem:[%s2587_s3 + $0x1cd8] sm:$0xff]  ;;  %2100 = vst [vmem:[%s2596_s23 + $0x1cc8] sm:$0xff] %v1076_v25 }
 0x213   : > { %2101 = vst [vmem:[%s2596_s23 + $0x1cd0] sm:$0xff] %v1077_v26  ;;  %2102 = vst [vmem:[%s2596_s23 + $0x1cd8] sm:$0xff] %v1078_v27  ;;  %v1079_v28 = vld [vmem:[%s2587_s3 + $0x1ce0] sm:$0xff]  ;;  %v1080_v29 = vld [vmem:[%s2587_s3 + $0x1ce8] sm:$0xff] }
 0x214   : > { %v1081_v30 = vld [vmem:[%s2587_s3 + $0x1cf0] sm:$0xff]  ;;  %2103 = vst [vmem:[%s2596_s23 + $0x1ce0] sm:$0xff] %v1079_v28  ;;  %2104 = vst [vmem:[%s2596_s23 + $0x1ce8] sm:$0xff] %v1080_v29  ;;  %v1082_v31 = vld [vmem:[%s2587_s3 + $0x1cf8] sm:$0xff] }
 0x215   : > { %2105 = vst [vmem:[%s2596_s23 + $0x1cf0] sm:$0xff] %v1081_v30  ;;  %v1083_v32 = vld [vmem:[%s2587_s3 + $0x1d00] sm:$0xff]  ;;  %v1084_v33 = vld [vmem:[%s2587_s3 + $0x1d08] sm:$0xff]  ;;  %2106 = vst [vmem:[%s2596_s23 + $0x1cf8] sm:$0xff] %v1082_v31 }
 0x216   : > { %2107 = vst [vmem:[%s2596_s23 + $0x1d00] sm:$0xff] %v1083_v32  ;;  %2108 = vst [vmem:[%s2596_s23 + $0x1d08] sm:$0xff] %v1084_v33  ;;  %v1085_v34 = vld [vmem:[%s2587_s3 + $0x1d10] sm:$0xff]  ;;  %v1086_v35 = vld [vmem:[%s2587_s3 + $0x1d18] sm:$0xff] }
 0x217   : > { %v1087_v36 = vld [vmem:[%s2587_s3 + $0x1d20] sm:$0xff]  ;;  %2109 = vst [vmem:[%s2596_s23 + $0x1d10] sm:$0xff] %v1085_v34  ;;  %2110 = vst [vmem:[%s2596_s23 + $0x1d18] sm:$0xff] %v1086_v35  ;;  %v1088_v37 = vld [vmem:[%s2587_s3 + $0x1d28] sm:$0xff] }
 0x218   : > { %2111 = vst [vmem:[%s2596_s23 + $0x1d20] sm:$0xff] %v1087_v36  ;;  %v1089_v38 = vld [vmem:[%s2587_s3 + $0x1d30] sm:$0xff]  ;;  %v1090_v39 = vld [vmem:[%s2587_s3 + $0x1d38] sm:$0xff]  ;;  %2112 = vst [vmem:[%s2596_s23 + $0x1d28] sm:$0xff] %v1088_v37 }
 0x219   : > { %2113 = vst [vmem:[%s2596_s23 + $0x1d30] sm:$0xff] %v1089_v38  ;;  %2114 = vst [vmem:[%s2596_s23 + $0x1d38] sm:$0xff] %v1090_v39  ;;  %v1091_v40 = vld [vmem:[%s2587_s3 + $0x1d40] sm:$0xff]  ;;  %v1092_v41 = vld [vmem:[%s2587_s3 + $0x1d48] sm:$0xff] }
 0x21a   : > { %v1093_v42 = vld [vmem:[%s2587_s3 + $0x1d50] sm:$0xff]  ;;  %2115 = vst [vmem:[%s2596_s23 + $0x1d40] sm:$0xff] %v1091_v40  ;;  %2116 = vst [vmem:[%s2596_s23 + $0x1d48] sm:$0xff] %v1092_v41  ;;  %v1094_v43 = vld [vmem:[%s2587_s3 + $0x1d58] sm:$0xff] }
 0x21b   : > { %2117 = vst [vmem:[%s2596_s23 + $0x1d50] sm:$0xff] %v1093_v42  ;;  %v1095_v44 = vld [vmem:[%s2587_s3 + $0x1d60] sm:$0xff]  ;;  %v1096_v45 = vld [vmem:[%s2587_s3 + $0x1d68] sm:$0xff]  ;;  %2118 = vst [vmem:[%s2596_s23 + $0x1d58] sm:$0xff] %v1094_v43 }
 0x21c   : > { %2119 = vst [vmem:[%s2596_s23 + $0x1d60] sm:$0xff] %v1095_v44  ;;  %2120 = vst [vmem:[%s2596_s23 + $0x1d68] sm:$0xff] %v1096_v45  ;;  %v1097_v46 = vld [vmem:[%s2587_s3 + $0x1d70] sm:$0xff]  ;;  %v1098_v47 = vld [vmem:[%s2587_s3 + $0x1d78] sm:$0xff] }
 0x21d   : > { %v1099_v48 = vld [vmem:[%s2587_s3 + $0x1d80] sm:$0xff]  ;;  %2121 = vst [vmem:[%s2596_s23 + $0x1d70] sm:$0xff] %v1097_v46  ;;  %2122 = vst [vmem:[%s2596_s23 + $0x1d78] sm:$0xff] %v1098_v47  ;;  %v1100_v49 = vld [vmem:[%s2587_s3 + $0x1d88] sm:$0xff] }
 0x21e   : > { %2123 = vst [vmem:[%s2596_s23 + $0x1d80] sm:$0xff] %v1099_v48  ;;  %v1101_v50 = vld [vmem:[%s2587_s3 + $0x1d90] sm:$0xff]  ;;  %v1102_v51 = vld [vmem:[%s2587_s3 + $0x1d98] sm:$0xff]  ;;  %2124 = vst [vmem:[%s2596_s23 + $0x1d88] sm:$0xff] %v1100_v49 }
 0x21f   : > { %2125 = vst [vmem:[%s2596_s23 + $0x1d90] sm:$0xff] %v1101_v50  ;;  %2126 = vst [vmem:[%s2596_s23 + $0x1d98] sm:$0xff] %v1102_v51  ;;  %v1103_v52 = vld [vmem:[%s2587_s3 + $0x1da0] sm:$0xff]  ;;  %v1104_v53 = vld [vmem:[%s2587_s3 + $0x1da8] sm:$0xff] }
 0x220   : > { %v1105_v54 = vld [vmem:[%s2587_s3 + $0x1db0] sm:$0xff]  ;;  %2127 = vst [vmem:[%s2596_s23 + $0x1da0] sm:$0xff] %v1103_v52  ;;  %2128 = vst [vmem:[%s2596_s23 + $0x1da8] sm:$0xff] %v1104_v53  ;;  %v1106_v55 = vld [vmem:[%s2587_s3 + $0x1db8] sm:$0xff] }
 0x221   : > { %2129 = vst [vmem:[%s2596_s23 + $0x1db0] sm:$0xff] %v1105_v54  ;;  %v1107_v56 = vld [vmem:[%s2587_s3 + $0x1dc0] sm:$0xff]  ;;  %v1108_v57 = vld [vmem:[%s2587_s3 + $0x1dc8] sm:$0xff]  ;;  %2130 = vst [vmem:[%s2596_s23 + $0x1db8] sm:$0xff] %v1106_v55 }
 0x222   : > { %2131 = vst [vmem:[%s2596_s23 + $0x1dc0] sm:$0xff] %v1107_v56  ;;  %2132 = vst [vmem:[%s2596_s23 + $0x1dc8] sm:$0xff] %v1108_v57  ;;  %v1109_v58 = vld [vmem:[%s2587_s3 + $0x1dd0] sm:$0xff]  ;;  %v1110_v59 = vld [vmem:[%s2587_s3 + $0x1dd8] sm:$0xff] }
 0x223   : > { %v1111_v60 = vld [vmem:[%s2587_s3 + $0x1de0] sm:$0xff]  ;;  %2133 = vst [vmem:[%s2596_s23 + $0x1dd0] sm:$0xff] %v1109_v58  ;;  %2134 = vst [vmem:[%s2596_s23 + $0x1dd8] sm:$0xff] %v1110_v59  ;;  %v1112_v61 = vld [vmem:[%s2587_s3 + $0x1de8] sm:$0xff] }
 0x224   : > { %2135 = vst [vmem:[%s2596_s23 + $0x1de0] sm:$0xff] %v1111_v60  ;;  %v1113_v62 = vld [vmem:[%s2587_s3 + $0x1df0] sm:$0xff]  ;;  %v1114_v63 = vld [vmem:[%s2587_s3 + $0x1df8] sm:$0xff]  ;;  %2136 = vst [vmem:[%s2596_s23 + $0x1de8] sm:$0xff] %v1112_v61 }
 0x225   : > { %2137 = vst [vmem:[%s2596_s23 + $0x1df0] sm:$0xff] %v1113_v62  ;;  %2138 = vst [vmem:[%s2596_s23 + $0x1df8] sm:$0xff] %v1114_v63  ;;  %v1115_v0 = vld [vmem:[%s2587_s3 + $0x1e00] sm:$0xff]  ;;  %v1116_v1 = vld [vmem:[%s2587_s3 + $0x1e08] sm:$0xff] }
 0x226   : > { %v1117_v2 = vld [vmem:[%s2587_s3 + $0x1e10] sm:$0xff]  ;;  %2139 = vst [vmem:[%s2596_s23 + $0x1e00] sm:$0xff] %v1115_v0  ;;  %2140 = vst [vmem:[%s2596_s23 + $0x1e08] sm:$0xff] %v1116_v1  ;;  %v1118_v3 = vld [vmem:[%s2587_s3 + $0x1e18] sm:$0xff] }
 0x227   : > { %2141 = vst [vmem:[%s2596_s23 + $0x1e10] sm:$0xff] %v1117_v2  ;;  %v1119_v4 = vld [vmem:[%s2587_s3 + $0x1e20] sm:$0xff]  ;;  %v1120_v5 = vld [vmem:[%s2587_s3 + $0x1e28] sm:$0xff]  ;;  %2142 = vst [vmem:[%s2596_s23 + $0x1e18] sm:$0xff] %v1118_v3 }
 0x228   : > { %2143 = vst [vmem:[%s2596_s23 + $0x1e20] sm:$0xff] %v1119_v4  ;;  %2144 = vst [vmem:[%s2596_s23 + $0x1e28] sm:$0xff] %v1120_v5  ;;  %v1121_v6 = vld [vmem:[%s2587_s3 + $0x1e30] sm:$0xff]  ;;  %v1122_v7 = vld [vmem:[%s2587_s3 + $0x1e38] sm:$0xff] }
 0x229   : > { %v1123_v8 = vld [vmem:[%s2587_s3 + $0x1e40] sm:$0xff]  ;;  %2145 = vst [vmem:[%s2596_s23 + $0x1e30] sm:$0xff] %v1121_v6  ;;  %2146 = vst [vmem:[%s2596_s23 + $0x1e38] sm:$0xff] %v1122_v7  ;;  %v1124_v9 = vld [vmem:[%s2587_s3 + $0x1e48] sm:$0xff] }
 0x22a   : > { %2147 = vst [vmem:[%s2596_s23 + $0x1e40] sm:$0xff] %v1123_v8  ;;  %v1125_v10 = vld [vmem:[%s2587_s3 + $0x1e50] sm:$0xff]  ;;  %v1126_v11 = vld [vmem:[%s2587_s3 + $0x1e58] sm:$0xff]  ;;  %2148 = vst [vmem:[%s2596_s23 + $0x1e48] sm:$0xff] %v1124_v9 }
 0x22b   : > { %2149 = vst [vmem:[%s2596_s23 + $0x1e50] sm:$0xff] %v1125_v10  ;;  %2150 = vst [vmem:[%s2596_s23 + $0x1e58] sm:$0xff] %v1126_v11  ;;  %v1127_v12 = vld [vmem:[%s2587_s3 + $0x1e60] sm:$0xff]  ;;  %v1128_v13 = vld [vmem:[%s2587_s3 + $0x1e68] sm:$0xff] }
 0x22c   : > { %v1129_v14 = vld [vmem:[%s2587_s3 + $0x1e70] sm:$0xff]  ;;  %2151 = vst [vmem:[%s2596_s23 + $0x1e60] sm:$0xff] %v1127_v12  ;;  %2152 = vst [vmem:[%s2596_s23 + $0x1e68] sm:$0xff] %v1128_v13  ;;  %v1130_v15 = vld [vmem:[%s2587_s3 + $0x1e78] sm:$0xff] }
 0x22d   : > { %2153 = vst [vmem:[%s2596_s23 + $0x1e70] sm:$0xff] %v1129_v14  ;;  %v1131_v16 = vld [vmem:[%s2587_s3 + $0x1e80] sm:$0xff]  ;;  %v1132_v17 = vld [vmem:[%s2587_s3 + $0x1e88] sm:$0xff]  ;;  %2154 = vst [vmem:[%s2596_s23 + $0x1e78] sm:$0xff] %v1130_v15 }
 0x22e   : > { %2155 = vst [vmem:[%s2596_s23 + $0x1e80] sm:$0xff] %v1131_v16  ;;  %2156 = vst [vmem:[%s2596_s23 + $0x1e88] sm:$0xff] %v1132_v17  ;;  %v1133_v18 = vld [vmem:[%s2587_s3 + $0x1e90] sm:$0xff]  ;;  %v1134_v19 = vld [vmem:[%s2587_s3 + $0x1e98] sm:$0xff] }
 0x22f   : > { %v1135_v20 = vld [vmem:[%s2587_s3 + $0x1ea0] sm:$0xff]  ;;  %2157 = vst [vmem:[%s2596_s23 + $0x1e90] sm:$0xff] %v1133_v18  ;;  %2158 = vst [vmem:[%s2596_s23 + $0x1e98] sm:$0xff] %v1134_v19  ;;  %v1136_v21 = vld [vmem:[%s2587_s3 + $0x1ea8] sm:$0xff] }
 0x230   : > { %2159 = vst [vmem:[%s2596_s23 + $0x1ea0] sm:$0xff] %v1135_v20  ;;  %v1137_v22 = vld [vmem:[%s2587_s3 + $0x1eb0] sm:$0xff]  ;;  %v1138_v23 = vld [vmem:[%s2587_s3 + $0x1eb8] sm:$0xff]  ;;  %2160 = vst [vmem:[%s2596_s23 + $0x1ea8] sm:$0xff] %v1136_v21 }
 0x231   : > { %2161 = vst [vmem:[%s2596_s23 + $0x1eb0] sm:$0xff] %v1137_v22  ;;  %2162 = vst [vmem:[%s2596_s23 + $0x1eb8] sm:$0xff] %v1138_v23  ;;  %v1139_v24 = vld [vmem:[%s2587_s3 + $0x1ec0] sm:$0xff]  ;;  %v1140_v25 = vld [vmem:[%s2587_s3 + $0x1ec8] sm:$0xff] }
 0x232   : > { %v1141_v26 = vld [vmem:[%s2587_s3 + $0x1ed0] sm:$0xff]  ;;  %2163 = vst [vmem:[%s2596_s23 + $0x1ec0] sm:$0xff] %v1139_v24  ;;  %2164 = vst [vmem:[%s2596_s23 + $0x1ec8] sm:$0xff] %v1140_v25  ;;  %v1142_v27 = vld [vmem:[%s2587_s3 + $0x1ed8] sm:$0xff] }
 0x233   : > { %2165 = vst [vmem:[%s2596_s23 + $0x1ed0] sm:$0xff] %v1141_v26  ;;  %v1143_v28 = vld [vmem:[%s2587_s3 + $0x1ee0] sm:$0xff]  ;;  %v1144_v29 = vld [vmem:[%s2587_s3 + $0x1ee8] sm:$0xff]  ;;  %2166 = vst [vmem:[%s2596_s23 + $0x1ed8] sm:$0xff] %v1142_v27 }
 0x234   : > { %2167 = vst [vmem:[%s2596_s23 + $0x1ee0] sm:$0xff] %v1143_v28  ;;  %2168 = vst [vmem:[%s2596_s23 + $0x1ee8] sm:$0xff] %v1144_v29  ;;  %v1145_v30 = vld [vmem:[%s2587_s3 + $0x1ef0] sm:$0xff]  ;;  %v1146_v31 = vld [vmem:[%s2587_s3 + $0x1ef8] sm:$0xff] }
 0x235   : > { %v1147_v32 = vld [vmem:[%s2587_s3 + $0x1f00] sm:$0xff]  ;;  %2169 = vst [vmem:[%s2596_s23 + $0x1ef0] sm:$0xff] %v1145_v30  ;;  %2170 = vst [vmem:[%s2596_s23 + $0x1ef8] sm:$0xff] %v1146_v31  ;;  %v1148_v33 = vld [vmem:[%s2587_s3 + $0x1f08] sm:$0xff] }
 0x236   : > { %2171 = vst [vmem:[%s2596_s23 + $0x1f00] sm:$0xff] %v1147_v32  ;;  %v1149_v34 = vld [vmem:[%s2587_s3 + $0x1f10] sm:$0xff]  ;;  %v1150_v35 = vld [vmem:[%s2587_s3 + $0x1f18] sm:$0xff]  ;;  %2172 = vst [vmem:[%s2596_s23 + $0x1f08] sm:$0xff] %v1148_v33 }
 0x237   : > { %2173 = vst [vmem:[%s2596_s23 + $0x1f10] sm:$0xff] %v1149_v34  ;;  %2174 = vst [vmem:[%s2596_s23 + $0x1f18] sm:$0xff] %v1150_v35  ;;  %v1151_v36 = vld [vmem:[%s2587_s3 + $0x1f20] sm:$0xff]  ;;  %v1152_v37 = vld [vmem:[%s2587_s3 + $0x1f28] sm:$0xff] }
 0x238   : > { %v1153_v38 = vld [vmem:[%s2587_s3 + $0x1f30] sm:$0xff]  ;;  %2175 = vst [vmem:[%s2596_s23 + $0x1f20] sm:$0xff] %v1151_v36  ;;  %2176 = vst [vmem:[%s2596_s23 + $0x1f28] sm:$0xff] %v1152_v37  ;;  %v1154_v39 = vld [vmem:[%s2587_s3 + $0x1f38] sm:$0xff] }
 0x239   : > { %2177 = vst [vmem:[%s2596_s23 + $0x1f30] sm:$0xff] %v1153_v38  ;;  %v1155_v40 = vld [vmem:[%s2587_s3 + $0x1f40] sm:$0xff]  ;;  %v1156_v41 = vld [vmem:[%s2587_s3 + $0x1f48] sm:$0xff]  ;;  %2178 = vst [vmem:[%s2596_s23 + $0x1f38] sm:$0xff] %v1154_v39 }
 0x23a   : > { %2179 = vst [vmem:[%s2596_s23 + $0x1f40] sm:$0xff] %v1155_v40  ;;  %2180 = vst [vmem:[%s2596_s23 + $0x1f48] sm:$0xff] %v1156_v41  ;;  %v1157_v42 = vld [vmem:[%s2587_s3 + $0x1f50] sm:$0xff]  ;;  %v1158_v43 = vld [vmem:[%s2587_s3 + $0x1f58] sm:$0xff] }
 0x23b   : > { %v1159_v44 = vld [vmem:[%s2587_s3 + $0x1f60] sm:$0xff]  ;;  %2181 = vst [vmem:[%s2596_s23 + $0x1f50] sm:$0xff] %v1157_v42  ;;  %2182 = vst [vmem:[%s2596_s23 + $0x1f58] sm:$0xff] %v1158_v43  ;;  %v1160_v45 = vld [vmem:[%s2587_s3 + $0x1f68] sm:$0xff] }
 0x23c   : > { %2183 = vst [vmem:[%s2596_s23 + $0x1f60] sm:$0xff] %v1159_v44  ;;  %v1161_v46 = vld [vmem:[%s2587_s3 + $0x1f70] sm:$0xff]  ;;  %v1162_v47 = vld [vmem:[%s2587_s3 + $0x1f78] sm:$0xff]  ;;  %2184 = vst [vmem:[%s2596_s23 + $0x1f68] sm:$0xff] %v1160_v45 }
 0x23d   : > { %2185 = vst [vmem:[%s2596_s23 + $0x1f70] sm:$0xff] %v1161_v46  ;;  %2186 = vst [vmem:[%s2596_s23 + $0x1f78] sm:$0xff] %v1162_v47  ;;  %v1163_v48 = vld [vmem:[%s2587_s3 + $0x1f80] sm:$0xff]  ;;  %v1164_v49 = vld [vmem:[%s2587_s3 + $0x1f88] sm:$0xff] }
 0x23e   : > { %v1165_v50 = vld [vmem:[%s2587_s3 + $0x1f90] sm:$0xff]  ;;  %2187 = vst [vmem:[%s2596_s23 + $0x1f80] sm:$0xff] %v1163_v48  ;;  %2188 = vst [vmem:[%s2596_s23 + $0x1f88] sm:$0xff] %v1164_v49  ;;  %v1166_v51 = vld [vmem:[%s2587_s3 + $0x1f98] sm:$0xff] }
 0x23f   : > { %2189 = vst [vmem:[%s2596_s23 + $0x1f90] sm:$0xff] %v1165_v50  ;;  %v1167_v52 = vld [vmem:[%s2587_s3 + $0x1fa0] sm:$0xff]  ;;  %v1168_v53 = vld [vmem:[%s2587_s3 + $0x1fa8] sm:$0xff]  ;;  %2190 = vst [vmem:[%s2596_s23 + $0x1f98] sm:$0xff] %v1166_v51  ;;  %2210 = sbr.rel (!%p2529_p9) target bundleno = 610 (0x262), region = 32 }
 0x240   : > { %2191 = vst [vmem:[%s2596_s23 + $0x1fa0] sm:$0xff] %v1167_v52  ;;  %2192 = vst [vmem:[%s2596_s23 + $0x1fa8] sm:$0xff] %v1168_v53  ;;  %v1169_v54 = vld [vmem:[%s2587_s3 + $0x1fb0] sm:$0xff]  ;;  %v1170_v55 = vld [vmem:[%s2587_s3 + $0x1fb8] sm:$0xff] }
 0x241   : > { %v1171_v56 = vld [vmem:[%s2587_s3 + $0x1fc0] sm:$0xff]  ;;  %2193 = vst [vmem:[%s2596_s23 + $0x1fb0] sm:$0xff] %v1169_v54  ;;  %2194 = vst [vmem:[%s2596_s23 + $0x1fb8] sm:$0xff] %v1170_v55  ;;  %v1172_v57 = vld [vmem:[%s2587_s3 + $0x1fc8] sm:$0xff] }
 0x242   : > { %2195 = vst [vmem:[%s2596_s23 + $0x1fc0] sm:$0xff] %v1171_v56  ;;  %v1173_v58 = vld [vmem:[%s2587_s3 + $0x1fd0] sm:$0xff]  ;;  %v1174_v59 = vld [vmem:[%s2587_s3 + $0x1fd8] sm:$0xff]  ;;  %2196 = vst [vmem:[%s2596_s23 + $0x1fc8] sm:$0xff] %v1172_v57 }
 0x243   : > { %2197 = vst [vmem:[%s2596_s23 + $0x1fd0] sm:$0xff] %v1173_v58  ;;  %2198 = vst [vmem:[%s2596_s23 + $0x1fd8] sm:$0xff] %v1174_v59  ;;  %v1175_v60 = vld [vmem:[%s2587_s3 + $0x1fe0] sm:$0xff]  ;;  %v1176_v61 = vld [vmem:[%s2587_s3 + $0x1fe8] sm:$0xff] }
 0x244   : > { %v1177_v62 = vld [vmem:[%s2587_s3 + $0x1ff0] sm:$0xff]  ;;  %2199 = vst [vmem:[%s2596_s23 + $0x1fe0] sm:$0xff] %v1175_v60  ;;  %2200 = vst [vmem:[%s2596_s23 + $0x1fe8] sm:$0xff] %v1176_v61  ;;  %v1178_v63 = vld [vmem:[%s2587_s3 + $0x1ff8] sm:$0xff] }
 0x245   : > { %2201 = vst [vmem:[%s2596_s23 + $0x1ff0] sm:$0xff] %v1177_v62  ;;  %2202 = vst [vmem:[%s2596_s23 + $0x1ff8] sm:$0xff] %v1178_v63 }
 0x246   : > { %s4718_s30 = smov (!%p2213_p6, %s2212_s30), 64 }
 0x247   : > { %s4647_s2 = sshll.u32 %s4718_s30, 11 }
 0x248   : > { %s2218_s4 = ssub.s32 131072, %s4647_s2 }
 0x249   : > { %2219 = vsyncadd %s2204_s16, %s2218_s4  ;;  %p2317_p10 = scmp.ne.s32.totalorder %s4647_s2, 0  ;;  %s2329_s17 = sshll.u32 %s2506_s10, 17 }
 0x24a   : > { %s4657_s13 = scalar_lea.hbm %s4706_s1, %s2329_s17  ;;  %s2225_s14 = sshll.u32 %s2596_s23, 4  ;;  %s4660_s14 = int_to_ptr.vmem [resolvable:$true] %s2225_s14 }
 0x24b   : > { %s2401_s19 = scalar_lea.vmem %s4660_s14, %s4647_s2  ;;  %s2472_s20 = smov [#allocation5]  }
 0x24c   : > { %p2402_p9 = scmp.ne.s32.totalorder %s4660_s14, %s2401_s19  ;;  %s2405_s21 = sshll.u32 %s2472_s20, 4  ;;  %s2406_s21 = int_to_ptr.vmem [resolvable:$false] %s2405_s21 }
 0x24d   : > { %s2407_s10 = scalar_lea.vmem %s2406_s21, 262144  ;;  %p2408_p12 = scmp.lt.s32.totalorder %s4660_s14, %s2406_s21 }
 0x24e   : > { %p2403_p13 = pnand %p2402_p9, %p2317_p10  ;;  %p2409_p0 = scmp.lt.s32.totalorder %s2407_s10, %s2401_s19 }
 0x250   : > { %p2404_p11 = pneg %p2403_p13  ;;  %p2410_p1 = por %p2409_p0, %p2408_p12 }
 0x252   : > { %p2411_p3 = pnand %p2410_p1, %p2404_p11 }
 0x254   : > { %2414 = shalt.err (!%p2411_p3)
}
 0x255   : > { %s2415_s22 = scalar_lea.hbm %s4657_s13, %s4647_s2  ;;  %s2419_s28 = scalar_lea.hbm %s4706_s1, 512000 }
 0x256   : > { %p2416_p4 = scmp.ne.s32.totalorder %s4657_s13, %s2415_s22  ;;  %p2420_p7 = scmp.lt.u32.totalorder %s4657_s13, %s4706_s1 }
 0x257   : > { %p2421_p8 = scmp.lt.u32.totalorder %s2419_s28, %s2415_s22  ;;  %p2423_p9 = scmp.lt.u32.totalorder %s2415_s22, %s4657_s13 }
 0x258   : > { %p2417_p5 = pnand %p2416_p4, %p2317_p10 }
 0x259   : > { %p2422_p6 = por %p2421_p8, %p2420_p7 }
 0x25a   : > { %p2418_p2 = pneg %p2417_p5 }
 0x25b   : > { %p2424_p13 = por %p2423_p9, %p2422_p6 }
 0x25d   : > { %p2425_p11 = pnand %p2424_p13, %p2418_p2 }
 0x25f   : > { %2428 = shalt.err (!%p2425_p11)
}
 0x260   : > { %s2473_s23 = smov 2048   ;;  %s2474_s25 = smov 128  }
 0x261   : > { %2231 = dma.vmem_to_hbm [thread:$0]  (%p2317_p10), %s4660_s14, %s4647_s2, %s4657_s13, %s2204_s16, %s2473_s23, %s2473_s23, %s2474_s25  }
 0x262 PF: > { %p2336_p12 = scmp.ge.s32.totalorder %s2467_s9, 2  ;;  %s2240_s30 = sand.u32 1, %s2455_s6  }
 0x263   : > { %p4710_p0 = scmp.ne.s32.totalorder %s4709_s18, 0  ;;  %s2241_s4 = scalar_lea.sflag [#allocation4], %s2240_s30 }
 0x265   : > { %p2333_p1 = pnand %p2336_p12, %p4710_p0 }
 0x267   : > { %2450 = dma.done.wait (!%p2333_p1), %s2241_s4, 131072  }
 0x268   : > { %2452 = vsyncadd (!%p2333_p1), %s2241_s4, 4294836224  ;;  %p14_p3 = scmp.ge.s32.totalorder %s2510_s12, 6   ;;  %s4711_s6 = smov %s2459_s7 }
 0x269   : > { %s4712_s7 = smov %s2463_s8  ;;  %s4713_s8 = smov %s2522_s15 }
 0x26a   : > { %s4714_s9 = smov %s2510_s12  ;;  %16 = sbr.rel (!%p14_p3) target bundleno = 5 (0x5), region = 69 }
 0x271   :  { %2246 = vsyncpa [#allocation3], 1 }
 0x272   :  { %2248 = vsyncpa [#allocation3 + $0x1], 1 }
 0x273   :  { %2249 = vsyncpa [#allocation4], 1 }
 0x274   :  { %2251 = vsyncpa [#allocation4 + $0x1], 1 }

</bundles_post_ra>
